<compile_context>
chip_gen: v7x
topology: tpu7x:2x2x1
jax: 0.10.0
libtpu: 0.0.40
codegen_flags: <defaults>
</compile_context>

<pallas_src>
import functools
import math

import jax
import jax.numpy as jnp
from jax.experimental import pallas as pl
from jax.experimental.pallas import tpu as pltpu

BN_EPS = 1e-5
LANES = 128


def _round_up(x, m):
    return ((x + m - 1) // m) * m


# ------------------------------ Pallas kernel -------------------------------


def _conv3x3_bn_silu_kernel(x_ref, w_ref, scale_ref, shift_ref, *rest, th, W, add):
    """One (batch, row-tile) step of a 3x3/s1/p1 conv + BN + SiLU (+ residual).

    x_ref     : (H+2, W+2, Cin)  bf16   spatially padded input image (this batch)
    w_ref     : (9, Cin, CoutP)  bf16   tap-major weights, BN scale NOT folded in
    scale_ref : (1, CoutP)       f32    folded BN scale
    shift_ref : (1, CoutP)       f32    folded BN shift
    res_ref   : (th, W, CoutP)   f32    residual tile (only when add=True)
    o_ref     : (th, W, CoutP)          output tile
    """
    if add:
        res_ref, o_ref = rest
    else:
        (o_ref,) = rest
    cin = x_ref.shape[-1]
    coutp = o_ref.shape[-1]

    r = pl.program_id(1)
    row0 = pl.multiple_of(r * th, th)
    # (th+2, W+2, Cin) window covering this row tile plus its 1-row halo.
    xw = x_ref[pl.ds(row0, th + 2)]

    acc = jnp.zeros((th * W, coutp), jnp.float32)
    for ki in range(3):
        for kj in range(3):
            xt = xw[ki:ki + th, kj:kj + W, :].reshape(th * W, cin)
            acc = acc + jnp.dot(xt, w_ref[ki * 3 + kj],
                                preferred_element_type=jnp.float32)

    y = acc * scale_ref[...] + shift_ref[...]     # folded BatchNorm (inference)
    y = y * jax.nn.sigmoid(y)                     # SiLU
    if add:
        y = y + res_ref[...].reshape(th * W, coutp).astype(jnp.float32)
    o_ref[...] = y.reshape(th, W, coutp).astype(o_ref.dtype)


# ------------------------------ host wrapper --------------------------------


def conv3x3_bn_silu(x_nhwc, w, bn, *, out_dtype=jnp.float32, residual=None):
    """SiLU(BN(conv3x3(x))) [+ residual].  Returns (B, H, W, CoutP) with
    CoutP = round_up(Cout, 128); the padded output channels are exactly zero."""
    B, H, W, Cin = x_nhwc.shape
    Cout, Cin_w = w.shape[0], w.shape[1]
    assert Cin_w <= Cin, "weight input channels exceed activation channels"
    CoutP = max(LANES, _round_up(Cout, LANES))

    # ---- trace-time weight / BN prep (tiny, constant-folded) ----
    wt = jnp.transpose(w, (2, 3, 1, 0)).reshape(9, Cin_w, Cout)      # tap-major
    if Cin_w < Cin:  # activation channels may already be lane-padded with zeros
        wt = jnp.pad(wt, ((0, 0), (0, Cin - Cin_w), (0, 0)))
    wt = jnp.pad(wt, ((0, 0), (0, 0), (0, CoutP - Cout))).astype(jnp.bfloat16)

    scale = bn["gamma"] / jnp.sqrt(bn["var"] + BN_EPS)
    shift = bn["beta"] - bn["mean"] * scale
    scale = jnp.pad(scale, (0, CoutP - Cout)).reshape(1, CoutP).astype(jnp.float32)
    shift = jnp.pad(shift, (0, CoutP - Cout)).reshape(1, CoutP).astype(jnp.float32)

    # Spatial padding once (+2 rows/cols, NOT 9x im2col); MXU operands in bf16.
    xp = jnp.pad(x_nhwc.astype(jnp.bfloat16), ((0, 0), (1, 1), (1, 1), (0, 0)))

    add = residual is not None
    if add:
        res = residual.astype(jnp.float32)
        rc = res.shape[-1]
        if rc != CoutP:
            res = jnp.pad(res, ((0, 0), (0, 0), (0, 0), (0, CoutP - rc)))

    # Row-tile size: largest divisor of H keeping the f32 accumulator <= ~2 MiB.
    budget_rows = max(1, (2 * 1024 * 1024) // (4 * W * CoutP))
    th = 1
    for d in range(1, H + 1):
        if H % d == 0 and d <= budget_rows:
            th = d
    R = H // th

    # Rough VMEM budget (double-buffered tiles) -> explicit scoped-vmem limit.
    out_b = jnp.dtype(out_dtype).itemsize
    est = (2 * (H + 2) * (W + 2) * Cin * 2          # input image (bf16)
           + 9 * Cin * CoutP * 2                    # weights
           + 2 * th * W * CoutP * out_b             # output tiles
           + (2 * th * W * CoutP * 4 if add else 0) # residual tiles
           + 2 * th * W * CoutP * 4                 # accumulator / temps
           + (1 << 20))
    vmem_limit = int(min(max(2 * est, 32 * 1024 * 1024), 56 * 1024 * 1024))

    kern = functools.partial(_conv3x3_bn_silu_kernel, th=th, W=W, add=add)

    in_specs = [
        pl.BlockSpec((None, H + 2, W + 2, Cin), lambda b, r: (b, 0, 0, 0)),
        pl.BlockSpec((9, Cin, CoutP), lambda b, r: (0, 0, 0)),
        pl.BlockSpec((1, CoutP), lambda b, r: (0, 0)),
        pl.BlockSpec((1, CoutP), lambda b, r: (0, 0)),
    ]
    args = [xp, wt, scale, shift]
    if add:
        in_specs.append(pl.BlockSpec((None, th, W, CoutP), lambda b, r: (b, r, 0, 0)))
        args.append(res)

    return pl.pallas_call(
        kern,
        out_shape=jax.ShapeDtypeStruct((B, H, W, CoutP), out_dtype),
        grid=(B, R),
        in_specs=in_specs,
        out_specs=pl.BlockSpec((None, th, W, CoutP), lambda b, r: (b, r, 0, 0)),
        compiler_params=pltpu.CompilerParams(
            dimension_semantics=("parallel", "parallel"),
            vmem_limit_bytes=vmem_limit),
    )(*args)


def bottleneck_forward(params, x_nchw, *, shortcut=True):
    """Bottleneck.forward: x + cv2(cv1(x)) if (shortcut and c1 == c2) else cv2(cv1(x)).
    Public API is NCHW f32 (matches PyTorch); compute is NHWC / bf16-MXU."""
    x = jnp.transpose(x_nchw, (0, 2, 3, 1)).astype(jnp.float32)   # NCHW -> NHWC
    c1 = x.shape[-1]
    c2 = params["cv2"]["w"].shape[0]
    add = shortcut and (c1 == c2)

    # cv1: intermediate activation stored lane-padded in bf16 (feeds cv2's MXU).
    y1 = conv3x3_bn_silu(x, params["cv1"]["w"], params["cv1"]["bn"],
                         out_dtype=jnp.bfloat16)
    # cv2: residual add fused into the kernel epilogue when the shortcut applies.
    y2 = conv3x3_bn_silu(y1, params["cv2"]["w"], params["cv2"]["bn"],
                         out_dtype=jnp.float32,
                         residual=x if add else None)
    y2 = y2[..., :c2]
    return jnp.transpose(y2, (0, 3, 1, 2))                        # NHWC -> NCHW


# ------------------------- deterministic parameter init ---------------------


def init_bn(key, c):
    k1, k2, k3, k4 = jax.random.split(key, 4)
    return dict(
        gamma=jax.random.uniform(k1, (c,), minval=0.5, maxval=1.5),
        beta=0.1 * jax.random.normal(k2, (c,)),
        mean=0.1 * jax.random.normal(k3, (c,)),
        var=jax.random.uniform(k4, (c,), minval=0.5, maxval=1.5),
    )


def init_conv_bn(key, cin, cout, k=3):
    k1, k2 = jax.random.split(key)
    std = 1.0 / math.sqrt(cin * k * k)
    return dict(
        w=jax.random.uniform(k1, (cout, cin, k, k), minval=-std, maxval=std),
        bn=init_bn(k2, cout),
    )


def init_params(key, c1, c2, e=0.5):
    c_ = int(c2 * e)
    k1, k2 = jax.random.split(key)
    # Bottleneck defaults: k=(3,3), g=1.  TODO(synk): grouped conv (g>1) not implemented.
    return dict(cv1=init_conv_bn(k1, c1, c_, 3),
                cv2=init_conv_bn(k2, c_, c2, 3))


# ----------------------------------- main -----------------------------------

if __name__ == "__main__":
    key = jax.random.PRNGKey(0)
    kp, kx = jax.random.split(key)
    B, c1, c2, H, W = 2, 8, 8, 16, 16
    params = init_params(kp, c1, c2, e=0.5)
    x = jax.random.normal(kx, (B, c1, H, W), dtype=jnp.float32)

    fwd = jax.jit(functools.partial(bottleneck_forward, shortcut=True))
    out = jax.block_until_ready(fwd(params, x))
    assert out.shape == (B, c2, H, W), out.shape
    assert bool(jnp.all(jnp.isfinite(out)))
    print("KERNEL_OK")
</pallas_src>

<mosaic_0001>
module attributes {stable_mosaic.version = 11 : i64} {
  func.func @_conv3x3_bn_silu_kernel(%arg0: i32, %arg1: i32, %arg2: memref<1x18x18x8xbf16, #tpu.memory_space<vmem>>, %arg3: memref<9x8x128xbf16, #tpu.memory_space<vmem>>, %arg4: memref<1x128xf32, #tpu.memory_space<vmem>>, %arg5: memref<1x128xf32, #tpu.memory_space<vmem>>, %arg6: memref<1x16x16x128xbf16, #tpu.memory_space<vmem>>) attributes {dimension_semantics = [#tpu.dimension_semantics<parallel>, #tpu.dimension_semantics<parallel>], iteration_bounds = array<i64: 2, 1>, scalar_prefetch = 0 : i64, scratch_operands = 0 : i64, tpu.core_type = #tpu.core_type<tc>, window_params = [{transform_indices = @transform_0, window_bounds = array<i64: 1, 18, 18, 8>}, {pipeline_mode = #tpu.pipeline_mode<synchronous>, transform_indices = @transform_1, window_bounds = array<i64: 9, 8, 128>}, {pipeline_mode = #tpu.pipeline_mode<synchronous>, transform_indices = @transform_2, window_bounds = array<i64: 1, 128>}, {pipeline_mode = #tpu.pipeline_mode<synchronous>, transform_indices = @transform_3, window_bounds = array<i64: 1, 128>}, {transform_indices = @transform_4, window_bounds = array<i64: 1, 16, 16, 128>}]} {
    %c16_i32 = arith.constant 16 : i32
    %0 = arith.muli %arg1, %c16_i32 : i32
    %1 = tpu.assume_multiple %0, 16 : i32
    %c0 = arith.constant 0 : index
    %2 = arith.index_cast %1 : i32 to index
    %c0_0 = arith.constant 0 : index
    %c0_1 = arith.constant 0 : index
    %3 = vector.load %arg2[%c0, %2, %c0_0, %c0_1] : memref<1x18x18x8xbf16, #tpu.memory_space<vmem>>, vector<1x18x18x8xbf16>
    %4 = vector.shape_cast %3 : vector<1x18x18x8xbf16> to vector<18x18x8xbf16>
    %cst = arith.constant 0.000000e+00 : f32
    %5 = vector.broadcast %cst : f32 to vector<256x128xf32>
    %6 = vector.extract_strided_slice %4 {offsets = [0, 0, 0], sizes = [16, 16, 8], strides = [1, 1, 1]} : vector<18x18x8xbf16> to vector<16x16x8xbf16>
    %7 = vector.shape_cast %6 : vector<16x16x8xbf16> to vector<256x8xbf16>
    %c0_2 = arith.constant 0 : index
    %c0_3 = arith.constant 0 : index
    %c0_4 = arith.constant 0 : index
    %8 = vector.load %arg3[%c0_2, %c0_3, %c0_4] : memref<9x8x128xbf16, #tpu.memory_space<vmem>>, vector<1x8x128xbf16>
    %9 = vector.shape_cast %8 : vector<1x8x128xbf16> to vector<8x128xbf16>
    %cst_5 = arith.constant dense<0.000000e+00> : vector<256x128xf32>
    %10 = tpu.matmul %7, %9, %cst_5 {dimension_numbers = #tpu.dot_dimension_numbers<[1], [0], [0], [1], [0, 0, 1, 1], [], []>} : vector<256x8xbf16>, vector<8x128xbf16>, vector<256x128xf32> -> vector<256x128xf32>
    %11 = arith.addf %5, %10 : vector<256x128xf32>
    %12 = vector.extract_strided_slice %4 {offsets = [0, 1, 0], sizes = [16, 16, 8], strides = [1, 1, 1]} : vector<18x18x8xbf16> to vector<16x16x8xbf16>
    %13 = vector.shape_cast %12 : vector<16x16x8xbf16> to vector<256x8xbf16>
    %c1 = arith.constant 1 : index
    %c0_6 = arith.constant 0 : index
    %c0_7 = arith.constant 0 : index
    %14 = vector.load %arg3[%c1, %c0_6, %c0_7] : memref<9x8x128xbf16, #tpu.memory_space<vmem>>, vector<1x8x128xbf16>
    %15 = vector.shape_cast %14 : vector<1x8x128xbf16> to vector<8x128xbf16>
    %cst_8 = arith.constant dense<0.000000e+00> : vector<256x128xf32>
    %16 = tpu.matmul %13, %15, %cst_8 {dimension_numbers = #tpu.dot_dimension_numbers<[1], [0], [0], [1], [0, 0, 1, 1], [], []>} : vector<256x8xbf16>, vector<8x128xbf16>, vector<256x128xf32> -> vector<256x128xf32>
    %17 = arith.addf %11, %16 : vector<256x128xf32>
    %18 = vector.extract_strided_slice %4 {offsets = [0, 2, 0], sizes = [16, 16, 8], strides = [1, 1, 1]} : vector<18x18x8xbf16> to vector<16x16x8xbf16>
    %19 = vector.shape_cast %18 : vector<16x16x8xbf16> to vector<256x8xbf16>
    %c2 = arith.constant 2 : index
    %c0_9 = arith.constant 0 : index
    %c0_10 = arith.constant 0 : index
    %20 = vector.load %arg3[%c2, %c0_9, %c0_10] : memref<9x8x128xbf16, #tpu.memory_space<vmem>>, vector<1x8x128xbf16>
    %21 = vector.shape_cast %20 : vector<1x8x128xbf16> to vector<8x128xbf16>
    %cst_11 = arith.constant dense<0.000000e+00> : vector<256x128xf32>
    %22 = tpu.matmul %19, %21, %cst_11 {dimension_numbers = #tpu.dot_dimension_numbers<[1], [0], [0], [1], [0, 0, 1, 1], [], []>} : vector<256x8xbf16>, vector<8x128xbf16>, vector<256x128xf32> -> vector<256x128xf32>
    %23 = arith.addf %17, %22 : vector<256x128xf32>
    %24 = vector.extract_strided_slice %4 {offsets = [1, 0, 0], sizes = [16, 16, 8], strides = [1, 1, 1]} : vector<18x18x8xbf16> to vector<16x16x8xbf16>
    %25 = vector.shape_cast %24 : vector<16x16x8xbf16> to vector<256x8xbf16>
    %c3 = arith.constant 3 : index
    %c0_12 = arith.constant 0 : index
    %c0_13 = arith.constant 0 : index
    %26 = vector.load %arg3[%c3, %c0_12, %c0_13] : memref<9x8x128xbf16, #tpu.memory_space<vmem>>, vector<1x8x128xbf16>
    %27 = vector.shape_cast %26 : vector<1x8x128xbf16> to vector<8x128xbf16>
    %cst_14 = arith.constant dense<0.000000e+00> : vector<256x128xf32>
    %28 = tpu.matmul %25, %27, %cst_14 {dimension_numbers = #tpu.dot_dimension_numbers<[1], [0], [0], [1], [0, 0, 1, 1], [], []>} : vector<256x8xbf16>, vector<8x128xbf16>, vector<256x128xf32> -> vector<256x128xf32>
    %29 = arith.addf %23, %28 : vector<256x128xf32>
    %30 = vector.extract_strided_slice %4 {offsets = [1, 1, 0], sizes = [16, 16, 8], strides = [1, 1, 1]} : vector<18x18x8xbf16> to vector<16x16x8xbf16>
    %31 = vector.shape_cast %30 : vector<16x16x8xbf16> to vector<256x8xbf16>
    %c4 = arith.constant 4 : index
    %c0_15 = arith.constant 0 : index
    %c0_16 = arith.constant 0 : index
    %32 = vector.load %arg3[%c4, %c0_15, %c0_16] : memref<9x8x128xbf16, #tpu.memory_space<vmem>>, vector<1x8x128xbf16>
    %33 = vector.shape_cast %32 : vector<1x8x128xbf16> to vector<8x128xbf16>
    %cst_17 = arith.constant dense<0.000000e+00> : vector<256x128xf32>
    %34 = tpu.matmul %31, %33, %cst_17 {dimension_numbers = #tpu.dot_dimension_numbers<[1], [0], [0], [1], [0, 0, 1, 1], [], []>} : vector<256x8xbf16>, vector<8x128xbf16>, vector<256x128xf32> -> vector<256x128xf32>
    %35 = arith.addf %29, %34 : vector<256x128xf32>
    %36 = vector.extract_strided_slice %4 {offsets = [1, 2, 0], sizes = [16, 16, 8], strides = [1, 1, 1]} : vector<18x18x8xbf16> to vector<16x16x8xbf16>
    %37 = vector.shape_cast %36 : vector<16x16x8xbf16> to vector<256x8xbf16>
    %c5 = arith.constant 5 : index
    %c0_18 = arith.constant 0 : index
    %c0_19 = arith.constant 0 : index
    %38 = vector.load %arg3[%c5, %c0_18, %c0_19] : memref<9x8x128xbf16, #tpu.memory_space<vmem>>, vector<1x8x128xbf16>
    %39 = vector.shape_cast %38 : vector<1x8x128xbf16> to vector<8x128xbf16>
    %cst_20 = arith.constant dense<0.000000e+00> : vector<256x128xf32>
    %40 = tpu.matmul %37, %39, %cst_20 {dimension_numbers = #tpu.dot_dimension_numbers<[1], [0], [0], [1], [0, 0, 1, 1], [], []>} : vector<256x8xbf16>, vector<8x128xbf16>, vector<256x128xf32> -> vector<256x128xf32>
    %41 = arith.addf %35, %40 : vector<256x128xf32>
    %42 = vector.extract_strided_slice %4 {offsets = [2, 0, 0], sizes = [16, 16, 8], strides = [1, 1, 1]} : vector<18x18x8xbf16> to vector<16x16x8xbf16>
    %43 = vector.shape_cast %42 : vector<16x16x8xbf16> to vector<256x8xbf16>
    %c6 = arith.constant 6 : index
    %c0_21 = arith.constant 0 : index
    %c0_22 = arith.constant 0 : index
    %44 = vector.load %arg3[%c6, %c0_21, %c0_22] : memref<9x8x128xbf16, #tpu.memory_space<vmem>>, vector<1x8x128xbf16>
    %45 = vector.shape_cast %44 : vector<1x8x128xbf16> to vector<8x128xbf16>
    %cst_23 = arith.constant dense<0.000000e+00> : vector<256x128xf32>
    %46 = tpu.matmul %43, %45, %cst_23 {dimension_numbers = #tpu.dot_dimension_numbers<[1], [0], [0], [1], [0, 0, 1, 1], [], []>} : vector<256x8xbf16>, vector<8x128xbf16>, vector<256x128xf32> -> vector<256x128xf32>
    %47 = arith.addf %41, %46 : vector<256x128xf32>
    %48 = vector.extract_strided_slice %4 {offsets = [2, 1, 0], sizes = [16, 16, 8], strides = [1, 1, 1]} : vector<18x18x8xbf16> to vector<16x16x8xbf16>
    %49 = vector.shape_cast %48 : vector<16x16x8xbf16> to vector<256x8xbf16>
    %c7 = arith.constant 7 : index
    %c0_24 = arith.constant 0 : index
    %c0_25 = arith.constant 0 : index
    %50 = vector.load %arg3[%c7, %c0_24, %c0_25] : memref<9x8x128xbf16, #tpu.memory_space<vmem>>, vector<1x8x128xbf16>
    %51 = vector.shape_cast %50 : vector<1x8x128xbf16> to vector<8x128xbf16>
    %cst_26 = arith.constant dense<0.000000e+00> : vector<256x128xf32>
    %52 = tpu.matmul %49, %51, %cst_26 {dimension_numbers = #tpu.dot_dimension_numbers<[1], [0], [0], [1], [0, 0, 1, 1], [], []>} : vector<256x8xbf16>, vector<8x128xbf16>, vector<256x128xf32> -> vector<256x128xf32>
    %53 = arith.addf %47, %52 : vector<256x128xf32>
    %54 = vector.extract_strided_slice %4 {offsets = [2, 2, 0], sizes = [16, 16, 8], strides = [1, 1, 1]} : vector<18x18x8xbf16> to vector<16x16x8xbf16>
    %55 = vector.shape_cast %54 : vector<16x16x8xbf16> to vector<256x8xbf16>
    %c8 = arith.constant 8 : index
    %c0_27 = arith.constant 0 : index
    %c0_28 = arith.constant 0 : index
    %56 = vector.load %arg3[%c8, %c0_27, %c0_28] : memref<9x8x128xbf16, #tpu.memory_space<vmem>>, vector<1x8x128xbf16>
    %57 = vector.shape_cast %56 : vector<1x8x128xbf16> to vector<8x128xbf16>
    %cst_29 = arith.constant dense<0.000000e+00> : vector<256x128xf32>
    %58 = tpu.matmul %55, %57, %cst_29 {dimension_numbers = #tpu.dot_dimension_numbers<[1], [0], [0], [1], [0, 0, 1, 1], [], []>} : vector<256x8xbf16>, vector<8x128xbf16>, vector<256x128xf32> -> vector<256x128xf32>
    %59 = arith.addf %53, %58 : vector<256x128xf32>
    %c0_30 = arith.constant 0 : index
    %c0_31 = arith.constant 0 : index
    %60 = vector.load %arg4[%c0_30, %c0_31] : memref<1x128xf32, #tpu.memory_space<vmem>>, vector<1x128xf32>
    %61 = vector.broadcast %60 : vector<1x128xf32> to vector<256x128xf32>
    %62 = arith.mulf %59, %61 : vector<256x128xf32>
    %c0_32 = arith.constant 0 : index
    %c0_33 = arith.constant 0 : index
    %63 = vector.load %arg5[%c0_32, %c0_33] : memref<1x128xf32, #tpu.memory_space<vmem>>, vector<1x128xf32>
    %64 = vector.broadcast %63 : vector<1x128xf32> to vector<256x128xf32>
    %65 = arith.addf %62, %64 : vector<256x128xf32>
    %66 = arith.negf %65 : vector<256x128xf32>
    %67 = math.exp %66 : vector<256x128xf32>
    %cst_34 = arith.constant 1.000000e+00 : f32
    %68 = vector.broadcast %cst_34 : f32 to vector<256x128xf32>
    %69 = arith.addf %68, %67 : vector<256x128xf32>
    %70 = arith.divf %68, %69 : vector<256x128xf32>
    %71 = arith.mulf %65, %70 : vector<256x128xf32>
    %72 = vector.shape_cast %71 : vector<256x128xf32> to vector<16x16x128xf32>
    %73 = arith.truncf %72 : vector<16x16x128xf32> to vector<16x16x128xbf16>
    %c0_35 = arith.constant 0 : index
    %c0_36 = arith.constant 0 : index
    %c0_37 = arith.constant 0 : index
    %c0_38 = arith.constant 0 : index
    %74 = vector.load %arg6[%c0_35, %c0_36, %c0_37, %c0_38] : memref<1x16x16x128xbf16, #tpu.memory_space<vmem>>, vector<1x16x16x128xbf16>
    %75 = vector.shape_cast %74 : vector<1x16x16x128xbf16> to vector<16x16x128xbf16>
    %76 = vector.shape_cast %73 : vector<16x16x128xbf16> to vector<1x16x16x128xbf16>
    tpu.vector_store %arg6[%c0_35, %c0_36, %c0_37, %c0_38], %76 {strides = array<i32>} : memref<1x16x16x128xbf16, #tpu.memory_space<vmem>>, vector<1x16x16x128xbf16>,
    return
  }
  func.func @transform_0(%arg0: i32, %arg1: i32) -> (i32, i32, i32, i32) {
    %c0_i32 = arith.constant 0 : i32
    %c0_i32_0 = arith.constant 0 : i32
    %c0_i32_1 = arith.constant 0 : i32
    %c0_i32_2 = arith.constant 0 : i32
    return %arg0, %c0_i32, %c0_i32_0, %c0_i32_1 : i32, i32, i32, i32
  }
  func.func @transform_1(%arg0: i32, %arg1: i32) -> (i32, i32, i32) {
    %c0_i32 = arith.constant 0 : i32
    %c0_i32_0 = arith.constant 0 : i32
    %c0_i32_1 = arith.constant 0 : i32
    %c0_i32_2 = arith.constant 0 : i32
    return %c0_i32, %c0_i32_0, %c0_i32_1 : i32, i32, i32
  }
  func.func @transform_2(%arg0: i32, %arg1: i32) -> (i32, i32) {
    %c0_i32 = arith.constant 0 : i32
    %c0_i32_0 = arith.constant 0 : i32
    %c0_i32_1 = arith.constant 0 : i32
    return %c0_i32, %c0_i32_0 : i32, i32
  }
  func.func @transform_3(%arg0: i32, %arg1: i32) -> (i32, i32) {
    %c0_i32 = arith.constant 0 : i32
    %c0_i32_0 = arith.constant 0 : i32
    %c0_i32_1 = arith.constant 0 : i32
    return %c0_i32, %c0_i32_0 : i32, i32
  }
  func.func @transform_4(%arg0: i32, %arg1: i32) -> (i32, i32, i32, i32) {
    %c0_i32 = arith.constant 0 : i32
    %c0_i32_0 = arith.constant 0 : i32
    %c0_i32_1 = arith.constant 0 : i32
    return %arg0, %arg1, %c0_i32, %c0_i32_0 : i32, i32, i32, i32
  }
}

module attributes {stable_mosaic.version = 11 : i64} {
  func.func @_conv3x3_bn_silu_kernel(%arg0: i32, %arg1: i32, %arg2: memref<1x18x18x128xbf16, #tpu.memory_space<vmem>>, %arg3: memref<9x128x128xbf16, #tpu.memory_space<vmem>>, %arg4: memref<1x128xf32, #tpu.memory_space<vmem>>, %arg5: memref<1x128xf32, #tpu.memory_space<vmem>>, %arg6: memref<1x16x16x128xf32, #tpu.memory_space<vmem>>, %arg7: memref<1x16x16x128xf32, #tpu.memory_space<vmem>>) attributes {dimension_semantics = [#tpu.dimension_semantics<parallel>, #tpu.dimension_semantics<parallel>], iteration_bounds = array<i64: 2, 1>, scalar_prefetch = 0 : i64, scratch_operands = 0 : i64, tpu.core_type = #tpu.core_type<tc>, window_params = [{transform_indices = @transform_0, window_bounds = array<i64: 1, 18, 18, 128>}, {pipeline_mode = #tpu.pipeline_mode<synchronous>, transform_indices = @transform_1, window_bounds = array<i64: 9, 128, 128>}, {pipeline_mode = #tpu.pipeline_mode<synchronous>, transform_indices = @transform_2, window_bounds = array<i64: 1, 128>}, {pipeline_mode = #tpu.pipeline_mode<synchronous>, transform_indices = @transform_3, window_bounds = array<i64: 1, 128>}, {transform_indices = @transform_4, window_bounds = array<i64: 1, 16, 16, 128>}, {transform_indices = @transform_5, window_bounds = array<i64: 1, 16, 16, 128>}]} {
    %c16_i32 = arith.constant 16 : i32
    %0 = arith.muli %arg1, %c16_i32 : i32
    %1 = tpu.assume_multiple %0, 16 : i32
    %c0 = arith.constant 0 : index
    %2 = arith.index_cast %1 : i32 to index
    %c0_0 = arith.constant 0 : index
    %c0_1 = arith.constant 0 : index
    %3 = vector.load %arg2[%c0, %2, %c0_0, %c0_1] : memref<1x18x18x128xbf16, #tpu.memory_space<vmem>>, vector<1x18x18x128xbf16>
    %4 = vector.shape_cast %3 : vector<1x18x18x128xbf16> to vector<18x18x128xbf16>
    %cst = arith.constant 0.000000e+00 : f32
    %5 = vector.broadcast %cst : f32 to vector<256x128xf32>
    %6 = vector.extract_strided_slice %4 {offsets = [0, 0, 0], sizes = [16, 16, 128], strides = [1, 1, 1]} : vector<18x18x128xbf16> to vector<16x16x128xbf16>
    %7 = vector.shape_cast %6 : vector<16x16x128xbf16> to vector<256x128xbf16>
    %c0_2 = arith.constant 0 : index
    %c0_3 = arith.constant 0 : index
    %c0_4 = arith.constant 0 : index
    %8 = vector.load %arg3[%c0_2, %c0_3, %c0_4] : memref<9x128x128xbf16, #tpu.memory_space<vmem>>, vector<1x128x128xbf16>
    %9 = vector.shape_cast %8 : vector<1x128x128xbf16> to vector<128x128xbf16>
    %cst_5 = arith.constant dense<0.000000e+00> : vector<256x128xf32>
    %10 = tpu.matmul %7, %9, %cst_5 {dimension_numbers = #tpu.dot_dimension_numbers<[1], [0], [0], [1], [0, 0, 1, 1], [], []>} : vector<256x128xbf16>, vector<128x128xbf16>, vector<256x128xf32> -> vector<256x128xf32>
    %11 = arith.addf %5, %10 : vector<256x128xf32>
    %12 = vector.extract_strided_slice %4 {offsets = [0, 1, 0], sizes = [16, 16, 128], strides = [1, 1, 1]} : vector<18x18x128xbf16> to vector<16x16x128xbf16>
    %13 = vector.shape_cast %12 : vector<16x16x128xbf16> to vector<256x128xbf16>
    %c1 = arith.constant 1 : index
    %c0_6 = arith.constant 0 : index
    %c0_7 = arith.constant 0 : index
    %14 = vector.load %arg3[%c1, %c0_6, %c0_7] : memref<9x128x128xbf16, #tpu.memory_space<vmem>>, vector<1x128x128xbf16>
    %15 = vector.shape_cast %14 : vector<1x128x128xbf16> to vector<128x128xbf16>
    %cst_8 = arith.constant dense<0.000000e+00> : vector<256x128xf32>
    %16 = tpu.matmul %13, %15, %cst_8 {dimension_numbers = #tpu.dot_dimension_numbers<[1], [0], [0], [1], [0, 0, 1, 1], [], []>} : vector<256x128xbf16>, vector<128x128xbf16>, vector<256x128xf32> -> vector<256x128xf32>
    %17 = arith.addf %11, %16 : vector<256x128xf32>
    %18 = vector.extract_strided_slice %4 {offsets = [0, 2, 0], sizes = [16, 16, 128], strides = [1, 1, 1]} : vector<18x18x128xbf16> to vector<16x16x128xbf16>
    %19 = vector.shape_cast %18 : vector<16x16x128xbf16> to vector<256x128xbf16>
    %c2 = arith.constant 2 : index
    %c0_9 = arith.constant 0 : index
    %c0_10 = arith.constant 0 : index
    %20 = vector.load %arg3[%c2, %c0_9, %c0_10] : memref<9x128x128xbf16, #tpu.memory_space<vmem>>, vector<1x128x128xbf16>
    %21 = vector.shape_cast %20 : vector<1x128x128xbf16> to vector<128x128xbf16>
    %cst_11 = arith.constant dense<0.000000e+00> : vector<256x128xf32>
    %22 = tpu.matmul %19, %21, %cst_11 {dimension_numbers = #tpu.dot_dimension_numbers<[1], [0], [0], [1], [0, 0, 1, 1], [], []>} : vector<256x128xbf16>, vector<128x128xbf16>, vector<256x128xf32> -> vector<256x128xf32>
    %23 = arith.addf %17, %22 : vector<256x128xf32>
    %24 = vector.extract_strided_slice %4 {offsets = [1, 0, 0], sizes = [16, 16, 128], strides = [1, 1, 1]} : vector<18x18x128xbf16> to vector<16x16x128xbf16>
    %25 = vector.shape_cast %24 : vector<16x16x128xbf16> to vector<256x128xbf16>
    %c3 = arith.constant 3 : index
    %c0_12 = arith.constant 0 : index
    %c0_13 = arith.constant 0 : index
    %26 = vector.load %arg3[%c3, %c0_12, %c0_13] : memref<9x128x128xbf16, #tpu.memory_space<vmem>>, vector<1x128x128xbf16>
    %27 = vector.shape_cast %26 : vector<1x128x128xbf16> to vector<128x128xbf16>
    %cst_14 = arith.constant dense<0.000000e+00> : vector<256x128xf32>
    %28 = tpu.matmul %25, %27, %cst_14 {dimension_numbers = #tpu.dot_dimension_numbers<[1], [0], [0], [1], [0, 0, 1, 1], [], []>} : vector<256x128xbf16>, vector<128x128xbf16>, vector<256x128xf32> -> vector<256x128xf32>
    %29 = arith.addf %23, %28 : vector<256x128xf32>
    %30 = vector.extract_strided_slice %4 {offsets = [1, 1, 0], sizes = [16, 16, 128], strides = [1, 1, 1]} : vector<18x18x128xbf16> to vector<16x16x128xbf16>
    %31 = vector.shape_cast %30 : vector<16x16x128xbf16> to vector<256x128xbf16>
    %c4 = arith.constant 4 : index
    %c0_15 = arith.constant 0 : index
    %c0_16 = arith.constant 0 : index
    %32 = vector.load %arg3[%c4, %c0_15, %c0_16] : memref<9x128x128xbf16, #tpu.memory_space<vmem>>, vector<1x128x128xbf16>
    %33 = vector.shape_cast %32 : vector<1x128x128xbf16> to vector<128x128xbf16>
    %cst_17 = arith.constant dense<0.000000e+00> : vector<256x128xf32>
    %34 = tpu.matmul %31, %33, %cst_17 {dimension_numbers = #tpu.dot_dimension_numbers<[1], [0], [0], [1], [0, 0, 1, 1], [], []>} : vector<256x128xbf16>, vector<128x128xbf16>, vector<256x128xf32> -> vector<256x128xf32>
    %35 = arith.addf %29, %34 : vector<256x128xf32>
    %36 = vector.extract_strided_slice %4 {offsets = [1, 2, 0], sizes = [16, 16, 128], strides = [1, 1, 1]} : vector<18x18x128xbf16> to vector<16x16x128xbf16>
    %37 = vector.shape_cast %36 : vector<16x16x128xbf16> to vector<256x128xbf16>
    %c5 = arith.constant 5 : index
    %c0_18 = arith.constant 0 : index
    %c0_19 = arith.constant 0 : index
    %38 = vector.load %arg3[%c5, %c0_18, %c0_19] : memref<9x128x128xbf16, #tpu.memory_space<vmem>>, vector<1x128x128xbf16>
    %39 = vector.shape_cast %38 : vector<1x128x128xbf16> to vector<128x128xbf16>
    %cst_20 = arith.constant dense<0.000000e+00> : vector<256x128xf32>
    %40 = tpu.matmul %37, %39, %cst_20 {dimension_numbers = #tpu.dot_dimension_numbers<[1], [0], [0], [1], [0, 0, 1, 1], [], []>} : vector<256x128xbf16>, vector<128x128xbf16>, vector<256x128xf32> -> vector<256x128xf32>
    %41 = arith.addf %35, %40 : vector<256x128xf32>
    %42 = vector.extract_strided_slice %4 {offsets = [2, 0, 0], sizes = [16, 16, 128], strides = [1, 1, 1]} : vector<18x18x128xbf16> to vector<16x16x128xbf16>
    %43 = vector.shape_cast %42 : vector<16x16x128xbf16> to vector<256x128xbf16>
    %c6 = arith.constant 6 : index
    %c0_21 = arith.constant 0 : index
    %c0_22 = arith.constant 0 : index
    %44 = vector.load %arg3[%c6, %c0_21, %c0_22] : memref<9x128x128xbf16, #tpu.memory_space<vmem>>, vector<1x128x128xbf16>
    %45 = vector.shape_cast %44 : vector<1x128x128xbf16> to vector<128x128xbf16>
    %cst_23 = arith.constant dense<0.000000e+00> : vector<256x128xf32>
    %46 = tpu.matmul %43, %45, %cst_23 {dimension_numbers = #tpu.dot_dimension_numbers<[1], [0], [0], [1], [0, 0, 1, 1], [], []>} : vector<256x128xbf16>, vector<128x128xbf16>, vector<256x128xf32> -> vector<256x128xf32>
    %47 = arith.addf %41, %46 : vector<256x128xf32>
    %48 = vector.extract_strided_slice %4 {offsets = [2, 1, 0], sizes = [16, 16, 128], strides = [1, 1, 1]} : vector<18x18x128xbf16> to vector<16x16x128xbf16>
    %49 = vector.shape_cast %48 : vector<16x16x128xbf16> to vector<256x128xbf16>
    %c7 = arith.constant 7 : index
    %c0_24 = arith.constant 0 : index
    %c0_25 = arith.constant 0 : index
    %50 = vector.load %arg3[%c7, %c0_24, %c0_25] : memref<9x128x128xbf16, #tpu.memory_space<vmem>>, vector<1x128x128xbf16>
    %51 = vector.shape_cast %50 : vector<1x128x128xbf16> to vector<128x128xbf16>
    %cst_26 = arith.constant dense<0.000000e+00> : vector<256x128xf32>
    %52 = tpu.matmul %49, %51, %cst_26 {dimension_numbers = #tpu.dot_dimension_numbers<[1], [0], [0], [1], [0, 0, 1, 1], [], []>} : vector<256x128xbf16>, vector<128x128xbf16>, vector<256x128xf32> -> vector<256x128xf32>
    %53 = arith.addf %47, %52 : vector<256x128xf32>
    %54 = vector.extract_strided_slice %4 {offsets = [2, 2, 0], sizes = [16, 16, 128], strides = [1, 1, 1]} : vector<18x18x128xbf16> to vector<16x16x128xbf16>
    %55 = vector.shape_cast %54 : vector<16x16x128xbf16> to vector<256x128xbf16>
    %c8 = arith.constant 8 : index
    %c0_27 = arith.constant 0 : index
    %c0_28 = arith.constant 0 : index
    %56 = vector.load %arg3[%c8, %c0_27, %c0_28] : memref<9x128x128xbf16, #tpu.memory_space<vmem>>, vector<1x128x128xbf16>
    %57 = vector.shape_cast %56 : vector<1x128x128xbf16> to vector<128x128xbf16>
    %cst_29 = arith.constant dense<0.000000e+00> : vector<256x128xf32>
    %58 = tpu.matmul %55, %57, %cst_29 {dimension_numbers = #tpu.dot_dimension_numbers<[1], [0], [0], [1], [0, 0, 1, 1], [], []>} : vector<256x128xbf16>, vector<128x128xbf16>, vector<256x128xf32> -> vector<256x128xf32>
    %59 = arith.addf %53, %58 : vector<256x128xf32>
    %c0_30 = arith.constant 0 : index
    %c0_31 = arith.constant 0 : index
    %60 = vector.load %arg4[%c0_30, %c0_31] : memref<1x128xf32, #tpu.memory_space<vmem>>, vector<1x128xf32>
    %61 = vector.broadcast %60 : vector<1x128xf32> to vector<256x128xf32>
    %62 = arith.mulf %59, %61 : vector<256x128xf32>
    %c0_32 = arith.constant 0 : index
    %c0_33 = arith.constant 0 : index
    %63 = vector.load %arg5[%c0_32, %c0_33] : memref<1x128xf32, #tpu.memory_space<vmem>>, vector<1x128xf32>
    %64 = vector.broadcast %63 : vector<1x128xf32> to vector<256x128xf32>
    %65 = arith.addf %62, %64 : vector<256x128xf32>
    %66 = arith.negf %65 : vector<256x128xf32>
    %67 = math.exp %66 : vector<256x128xf32>
    %cst_34 = arith.constant 1.000000e+00 : f32
    %68 = vector.broadcast %cst_34 : f32 to vector<256x128xf32>
    %69 = arith.addf %68, %67 : vector<256x128xf32>
    %70 = arith.divf %68, %69 : vector<256x128xf32>
    %71 = arith.mulf %65, %70 : vector<256x128xf32>
    %c0_35 = arith.constant 0 : index
    %c0_36 = arith.constant 0 : index
    %c0_37 = arith.constant 0 : index
    %c0_38 = arith.constant 0 : index
    %72 = vector.load %arg6[%c0_35, %c0_36, %c0_37, %c0_38] : memref<1x16x16x128xf32, #tpu.memory_space<vmem>>, vector<1x16x16x128xf32>
    %73 = vector.shape_cast %72 : vector<1x16x16x128xf32> to vector<16x16x128xf32>
    %74 = vector.shape_cast %73 : vector<16x16x128xf32> to vector<256x128xf32>
    %75 = arith.addf %71, %74 : vector<256x128xf32>
    %76 = vector.shape_cast %75 : vector<256x128xf32> to vector<16x16x128xf32>
    %c0_39 = arith.constant 0 : index
    %c0_40 = arith.constant 0 : index
    %c0_41 = arith.constant 0 : index
    %c0_42 = arith.constant 0 : index
    %77 = vector.load %arg7[%c0_39, %c0_40, %c0_41, %c0_42] : memref<1x16x16x128xf32, #tpu.memory_space<vmem>>, vector<1x16x16x128xf32>
    %78 = vector.shape_cast %77 : vector<1x16x16x128xf32> to vector<16x16x128xf32>
    %79 = vector.shape_cast %76 : vector<16x16x128xf32> to vector<1x16x16x128xf32>
    tpu.vector_store %arg7[%c0_39, %c0_40, %c0_41, %c0_42], %79 {strides = array<i32>} : memref<1x16x16x128xf32, #tpu.memory_space<vmem>>, vector<1x16x16x128xf32>,
    return
  }
  func.func @transform_0(%arg0: i32, %arg1: i32) -> (i32, i32, i32, i32) {
    %c0_i32 = arith.constant 0 : i32
    %c0_i32_0 = arith.constant 0 : i32
    %c0_i32_1 = arith.constant 0 : i32
    %c0_i32_2 = arith.constant 0 : i32
    return %arg0, %c0_i32, %c0_i32_0, %c0_i32_1 : i32, i32, i32, i32
  }
  func.func @transform_1(%arg0: i32, %arg1: i32) -> (i32, i32, i32) {
    %c0_i32 = arith.constant 0 : i32
    %c0_i32_0 = arith.constant 0 : i32
    %c0_i32_1 = arith.constant 0 : i32
    %c0_i32_2 = arith.constant 0 : i32
    return %c0_i32, %c0_i32_0, %c0_i32_1 : i32, i32, i32
  }
  func.func @transform_2(%arg0: i32, %arg1: i32) -> (i32, i32) {
    %c0_i32 = arith.constant 0 : i32
    %c0_i32_0 = arith.constant 0 : i32
    %c0_i32_1 = arith.constant 0 : i32
    return %c0_i32, %c0_i32_0 : i32, i32
  }
  func.func @transform_3(%arg0: i32, %arg1: i32) -> (i32, i32) {
    %c0_i32 = arith.constant 0 : i32
    %c0_i32_0 = arith.constant 0 : i32
    %c0_i32_1 = arith.constant 0 : i32
    return %c0_i32, %c0_i32_0 : i32, i32
  }
  func.func @transform_4(%arg0: i32, %arg1: i32) -> (i32, i32, i32, i32) {
    %c0_i32 = arith.constant 0 : i32
    %c0_i32_0 = arith.constant 0 : i32
    %c0_i32_1 = arith.constant 0 : i32
    return %arg0, %arg1, %c0_i32, %c0_i32_0 : i32, i32, i32, i32
  }
  func.func @transform_5(%arg0: i32, %arg1: i32) -> (i32, i32, i32, i32) {
    %c0_i32 = arith.constant 0 : i32
    %c0_i32_0 = arith.constant 0 : i32
    %c0_i32_1 = arith.constant 0 : i32
    return %arg0, %arg1, %c0_i32, %c0_i32_0 : i32, i32, i32, i32
  }
}

</mosaic_0001>

<bundles_post_ra>
// kernel: bottleneck_forward.2
= control target key start
LH: loop header
LB: loop body
LE: loop exit
PB: predicated region body
PF: predicated region fallthrough
CT: control target
= control target key end

     0   :  { %s4873_s15 = smov 0   ;;  %s4875_s16 = smov 0   ;;  %s6094_s0 = inlined_call_operand.vmem [shape: bf16[2,18,18,8], index: 0, kind: input, shape index: {}]   ;;  %s6095_s1 = inlined_call_operand.vmem [shape: bf16[9,8,128], index: 1, kind: input, shape index: {}]   ;;  %s6096_s2 = inlined_call_operand.vmem [shape: f32[1,128], index: 2, kind: input, shape index: {}]   ;;  %s6097_s3 = inlined_call_operand.vmem [shape: f32[1,128], index: 3, kind: input, shape index: {}]   ;;  %s6098_s4 = inlined_call_operand.vmem [shape: bf16[2,16,16,128], index: 4, kind: output, shape index: {}]  }
   0x1   :  { %s4877_s17 = smov 0  }
   0x2 LB: > { %s26_s18 = sadd.s32 1, %s4842_s16  ;;  %p3498_p0 = scmp.ge.s32.totalorder %s4846_s17, 1  ;;  %s4846_s17 = sphi %s4877_s17, %s14_s17   ;;  %s4842_s16 = sphi %s4875_s16, %s6177_s16   ;;  %s4838_s15 = sphi %s4873_s15, %s6176_s15  }
   0x3   : > { %p28_p1 = scmp.ge.s32.totalorder %s26_s18, 2  ;;  %p176_p2 = scmp.lt.s32.totalorder %s4846_s17, 3 }
   0x5   : > { %s6179_s18 = smov (%p28_p1, %s26_s18), 0  ;;  %p177_p3 = pnand %p3498_p0, %p176_p2 }
   0x7   : > { %180 = sbr.rel (%p177_p3) target bundleno = 596 (0x254), region = 36 }
   0xe   : > { %v3502_v0 = vld [vmem:[%s6095_s1 + $0x4] sm:$0xf]  ;;  %vm769_vm0 = vcmask 1043456   ;;  %v3634_v1 = vld [vmem:[%s6095_s1 + $0x10] sm:$0xf]  ;;  %p207_p4 = scmp.lt.s32.totalorder %s4838_s15, 1 }
   0xf   : > { %4639 = vmatprep.subr.msk.bf16.mxu1 %vm769_vm0, %v3502_v0  ;;  %4643 = vmatprep.subr.msk.bf16.mxu0 %vm769_vm0, %v3634_v1  ;;  %v771_v2 = vsel %vm769_vm0, %v3502_v0, 0  ;;  %v4901_v3 = vsel %vm769_vm0, %v3634_v1, 0  ;;  %v282_v4 = vld [vmem:[%s6095_s1] sm:$0xf]  ;;  %v3653_v5 = vld [vmem:[%s6095_s1 + $0x14] sm:$0xf] }
  0x10   : > { %6130 = vst [vmem:[#allocation2_spill] sm:$0xff] %v4901_v3  ;;  %4076 = vmatpush3.bf16.msra.mxu1 %v771_v2  ;;  %4212 = vmatpush3.bf16.msra.mxu0 %v4901_v3  ;;  %s6181_s15 = smov (!%p207_p4, %s4838_s15), 1  ;;  %vm283_vm1 = vsmask.f32 3328  ;;  %vm284_vm2 = vsmask.f32 7440 }
  0x11   : > { %4640 = vmatprep.subr.msk.bf16.mxu1 %vm769_vm0, %v282_v4  ;;  %4645 = vmatprep.subr.msk.bf16.mxu0 %vm769_vm0, %v3653_v5  ;;  %s4649_s27 = smul.u32 216, %s6181_s15  ;;  %v4921_v6 = vsel %vm769_vm0, %v282_v4, 0  ;;  %v4924_v7 = vsel %vm769_vm0, %v3653_v5, 0  ;;  %v4929_v8 = vld [vmem:[%s6095_s1 + $0x18] sm:$0xf]  ;;  %vm720_vm3 = vcmask 64512   ;;  %vm4965_vm4 = vmor %vm283_vm1, %vm284_vm2 }
  0x12   : > { %v4953_v20 = vsel %vm769_vm0, %v4929_v8, 0  ;;  %vm1242_vm5 = vcmask 1042432   ;;  %vm1243_vm6 = vcmask 1046532   ;;  %s3794_s25 = sshll.u32 %s6181_s15, 7 }
  0x13   : > { %s4918_s30 = scalar_lea.vmem %s6094_s0, %s4649_s27  ;;  %vm5146_vm7 = vmor %vm1242_vm5, %vm1243_vm6  ;;  %s5959_s27 = scalar_lea.vmem %s6098_s4, %s3794_s25 }
  0x14   : > { %v4932_v9 = vld [vmem:[%s4918_s30] sm:$0xf]  ;;  %v4935_v10 = vld [vmem:[%s4918_s30 + $0x4] sm:$0xf]  ;;  %v230_v11 = vld [vmem:[%s4918_s30 + $0x8] sm:$0x1] }
  0x15   : > { %v287_v12 = vshrl.u32 %v4932_v9, 16  ;;  %v290_v13 = vshll.u32 %v4932_v9, 16  ;;  %v296_v14 = vshll.u32 %v4935_v10, 16  ;;  %v300_v15 = vshrl.u32 %v4935_v10, 16  ;;  %v4943_v16 = vld [vmem:[%s4918_s30 + $0xc] sm:$0xf] }
  0x16   : > { %v306_v17 = vshll.u32 %v230_v11, 16  ;;  %v4946_v18 = vld [vmem:[%s4918_s30 + $0x10] sm:$0xf]  ;;  %v4949_v19 = vld [vmem:[%s4918_s30 + $0x14] sm:$0x1]  ;;  %v311_v26 = vshrl.u32 %v4943_v16, 16 }
  0x17   : > { %v289_v21 = vrot.slane %v287_v12, 4  ;;  %v292_v22 = vrot.slane %v290_v13, 5  ;;  %v298_v23 = vrot.slane %v296_v14, 5  ;;  %v302_v24 = vrot.slane %v300_v15, 4  ;;  %v4961_v33 = vld [vmem:[%s4918_s30 + $0x18] sm:$0xf] }
  0x18   : > { %v308_v25 = vrot.slane %v306_v17, 5  ;;  %v314_v27 = vshll.u32 %v4943_v16, 16  ;;  %v320_v28 = vshll.u32 %v4946_v18, 16  ;;  %v324_v31 = vshrl.u32 %v4946_v18, 16  ;;  %v4974_v39 = vld [vmem:[%s4918_s30 + $0x1c] sm:$0xf] }
  0x19   : > { %v293_v29 = vor.u32 %v292_v22, %v289_v21  ;;  %v303_v30 = vor.u32 %v302_v24, %v298_v23  ;;  %v330_v32 = vshll.u32 %v4949_v19, 16  ;;  %v313_v35 = vrot.slane %v311_v26, 4  ;;  %v4978_v46 = vld [vmem:[%s4918_s30 + $0x20] sm:$0x1]  ;;  %v4988_v57 = vld [vmem:[%s4918_s30 + $0x24] sm:$0xf] }
  0x1a   : > { %v316_v36 = vrot.slane %v314_v27, 5  ;;  %v322_v37 = vrot.slane %v320_v28, 5  ;;  %v4971_v38 = vcombine.low %v4943_v16, %v4946_v18  ;;  %v326_v42 = vrot.slane %v324_v31, 4  ;;  %v4993_v62 = vld [vmem:[%s4918_s30 + $0x28] sm:$0xf] }
  0x1b   : > { %v294_v40 = vrot.slane %v293_v29, 4  ;;  %v304_v41 = vrot.slane %v303_v30, 4  ;;  %v332_v43 = vrot.slane %v330_v32, 5  ;;  %v1257_v45 = vrot.slane %v4949_v19, 5  ;;  %v5001_v4 = vld [vmem:[%s4918_s30 + $0x2c] sm:$0x1] }
  0x1c   : > { %v317_v44 = vor.u32 %v316_v36, %v313_v35  ;;  %v335_v47 = vshrl.u32 %v4961_v33, 16  ;;  %v338_v48 = vshll.u32 %v4961_v33, 16  ;;  %v327_v51 = vor.u32 %v326_v42, %v322_v37  ;;  %v5007_v14 = vld [vmem:[%s4918_s30 + $0x30] sm:$0xf]  ;;  %v5019_v28 = vld [vmem:[%s4918_s30 + $0x34] sm:$0xf] }
  0x1d   : > { %v299_v49 = vsel %vm4965_vm4, %v294_v40, %v298_v23  ;;  %v309_v50 = vsel %vm4965_vm4, %v304_v41, %v308_v25  ;;  %v344_v52 = vshll.u32 %v4974_v39, 16  ;;  %v348_v60 = vshrl.u32 %v4974_v39, 16  ;;  %v5014_v23 = vld [vmem:[%s6095_s1 + $0x8] sm:$0xf]  ;;  %v5026_v32 = vld [vmem:[%s4918_s30 + $0x38] sm:$0x1] }
  0x1e   : > { %v3503_v53 = vcombine.low %v299_v49, %v309_v50  ;;  %v318_v54 = vrot.slane %v317_v44, 4  ;;  %v337_v55 = vrot.slane %v335_v47, 4  ;;  %v340_v56 = vrot.slane %v338_v48, 5  ;;  %v5034_v48 = vld [vmem:[%s4918_s30 + $0x3c] sm:$0xf] }
  0x1f   : > { %v328_v58 = vrot.slane %v327_v51, 4  ;;  %v346_v59 = vrot.slane %v344_v52, 5  ;;  %v354_v61 = vshll.u32 %v4978_v46, 16  ;;  %v1261_v1 = vrot.slane %v4974_v39, 5  ;;  %v5042_v52 = vld [vmem:[%s4918_s30 + $0x40] sm:$0xf] }
  0x20   : > { %4077 = vmatprep.mubr.msk.bf16.mxu1 %vm720_vm3, %v3503_v53  ;;  %v323_v63 = vsel %vm4965_vm4, %v318_v54, %v322_v37  ;;  %v341_v0 = vor.u32 %v340_v56, %v337_v55  ;;  %v1264_v2 = vrot.slane %v4978_v46, 5  ;;  %v350_v11 = vrot.slane %v348_v60, 4 }
  0x21   : > { %v333_v5 = vsel %vm4965_vm4, %v328_v58, %v332_v43  ;;  %v356_v12 = vrot.slane %v354_v61, 5  ;;  %v359_v13 = vshrl.u32 %v4988_v57, 16  ;;  %v362_v21 = vshll.u32 %v4988_v57, 16 }
  0x22   : > { %v3504_v15 = vcombine.low %v323_v63, %v333_v5  ;;  %v342_v17 = vrot.slane %v341_v0, 4  ;;  %v368_v22 = vshll.u32 %v4993_v62, 16  ;;  %v351_v24 = vor.u32 %v350_v11, %v346_v59  ;;  %v5054_v5 = vld [vmem:[%s4918_s30 + $0x44] sm:$0x1] }
  0x23   : > { %v361_v25 = vrot.slane %v359_v13, 4  ;;  %v372_v26 = vshrl.u32 %v4993_v62, 16  ;;  %v378_v27 = vshll.u32 %v5001_v4, 16  ;;  %v364_v30 = vrot.slane %v362_v21, 5  ;;  %v5059_v13 = vld [vmem:[%s4918_s30 + $0x48] sm:$0xf] }
  0x24   : > { %4213 = vmatprep.mubr.msk.bf16.mxu0 %vm720_vm3, %v3504_v15  ;;  %4078 = vmatmul.mubr.msk.bf16.vlgmr.msra.gmra.mrb[0].mxu1 %vm720_vm3, %v3504_v15  ;;  %v347_v29 = vsel %vm4965_vm4, %v342_v17, %v346_v59  ;;  %v370_v31 = vrot.slane %v368_v22, 5  ;;  %v383_v35 = vshrl.u32 %v5007_v14, 16  ;;  %v352_v36 = vrot.slane %v351_v24, 4  ;;  %v5066_v24 = vld [vmem:[%s4918_s30 + $0x4c] sm:$0xf] }
  0x25   : > { %4110 = vmatpush3.bf16.msra.mxu1 %v4921_v6  ;;  %v374_v37 = vrot.slane %v372_v26, 4  ;;  %v380_v40 = vrot.slane %v378_v27, 5  ;;  %v386_v41 = vshll.u32 %v5007_v14, 16  ;;  %v365_v42 = vor.u32 %v364_v30, %v361_v25 }
  0x26   : > { %v385_v43 = vrot.slane %v383_v35, 4  ;;  %v392_v44 = vshll.u32 %v5019_v28, 16  ;;  %v396_v47 = vshrl.u32 %v5019_v28, 16  ;;  %4641 = vmatprep.subr.msk.bf16.mxu1 %vm769_vm0, %v5014_v23  ;;  %v357_v49 = vsel %vm4965_vm4, %v352_v36, %v356_v12 }
  0x27   : > { %v375_v6 = vor.u32 %v374_v37, %v370_v31  ;;  %v388_v50 = vrot.slane %v386_v41, 5  ;;  %v402_v51 = vshll.u32 %v5026_v32, 16  ;;  %v5044_v53 = vcombine.low %v347_v29, %v357_v49 }
  0x28   : > { %v366_v54 = vrot.slane %v365_v42, 4  ;;  %v394_v55 = vrot.slane %v392_v44, 5  ;;  %v398_v56 = vrot.slane %v396_v47, 4  ;;  %v407_v61 = vshrl.u32 %v5034_v48, 16  ;;  %v5088_v42 = vld [vmem:[%s4918_s30 + $0x54] sm:$0xf] }
  0x29   : > { %6133 = vst [vmem:[#allocation3_spill] sm:$0xff] %v5044_v53  ;;  %v376_v58 = vrot.slane %v375_v6, 4  ;;  %v389_v59 = vor.u32 %v388_v50, %v385_v43  ;;  %v404_v60 = vrot.slane %v402_v51, 5  ;;  %4214 = vmatmul.mubr.msk.bf16.vlgmr.msra.gmra.mrb[0].mxu0 %vm720_vm3, %v5044_v53  ;;  %4081 = vmatprep.mubr.msk.bf16.mxu1 %vm720_vm3, %v5044_v53  ;;  %v410_v11 = vshll.u32 %v5034_v48, 16  ;;  %6135 = vst [vmem:[#allocation5_spill] sm:$0xff] %v5088_v42 }
  0x2a   : > { %v371_v63 = vsel %vm4965_vm4, %v366_v54, %v370_v31  ;;  %v399_v0 = vor.u32 %v398_v56, %v394_v55  ;;  %v416_v12 = vshll.u32 %v5042_v52, 16  ;;  %4246 = vmatpush3.bf16.msra.mxu0 %v4924_v7  ;;  %v409_v21 = vrot.slane %v407_v61, 4  ;;  %v5093_v6 = vld [vmem:[%s4918_s30 + $0x58] sm:$0xf] }
  0x2b   : > { %v381_v15 = vsel %vm4965_vm4, %v376_v58, %v380_v40  ;;  %v390_v17 = vrot.slane %v389_v59, 4  ;;  %v420_v22 = vshrl.u32 %v5042_v52, 16  ;;  %v412_v27 = vrot.slane %v410_v11, 5  ;;  %4646 = vmatprep.subr.msk.bf16.mxu0 %vm769_vm0, %v4929_v8  ;;  %v5083_v8 = vld [vmem:[%s4918_s30 + $0x50] sm:$0x1] }
  0x2c   : > { %v5068_v25 = vcombine.low %v371_v63, %v381_v15  ;;  %v400_v26 = vrot.slane %v399_v0, 4  ;;  %v418_v29 = vrot.slane %v416_v12, 5  ;;  %v426_v31 = vshll.u32 %v5054_v5, 16  ;;  %v5106_v11 = vld [vmem:[%s4918_s30 + $0x5c] sm:$0x1] }
  0x2d   : > { %v395_v7 = vsel %vm4965_vm4, %v390_v17, %v394_v55  ;;  %v422_v30 = vrot.slane %v420_v22, 4  ;;  %v431_v35 = vshrl.u32 %v5059_v13, 16  ;;  %v413_v37 = vor.u32 %v412_v27, %v409_v21  ;;  %v5110_v15 = vld [vmem:[%s4918_s30 + $0x60] sm:$0xf]  ;;  %v5115_v27 = vld [vmem:[%s4918_s30 + $0x64] sm:$0xf] }
  0x2e   : > { %6134 = vst [vmem:[#allocation4_spill] sm:$0xff] %v5068_v25  ;;  %4217 = vmatprep.mubr.msk.bf16.mxu0 %vm720_vm3, %v5068_v25  ;;  %4082 = vmatmul.mubr.msk.bf16.gmra.mrb[4].mxu1 %vm720_vm3, %v5068_v25  ;;  %v405_v36 = vsel %vm4965_vm4, %v400_v26, %v404_v60  ;;  %v434_v40 = vshll.u32 %v5059_v13, 16  ;;  %v440_v41 = vshll.u32 %v5066_v24, 16  ;;  %v428_v47 = vrot.slane %v426_v31, 5  ;;  %v5327_v25 = vld [vmem:[%s4918_s30 + $0xa8] sm:$0xf] }
  0x2f   : > { %v5090_v43 = vcombine.low %v395_v7, %v405_v36  ;;  %v423_v44 = vor.u32 %v422_v30, %v418_v29  ;;  %v433_v49 = vrot.slane %v431_v35, 4  ;;  %v414_v50 = vrot.slane %v413_v37, 4 }
  0x30   : > { %v436_v51 = vrot.slane %v434_v40, 5  ;;  %v442_v54 = vrot.slane %v440_v41, 5  ;;  %v444_v55 = vshrl.u32 %v5066_v24, 16  ;;  %v450_v58 = vshll.u32 %v5083_v8, 16 }
  0x31   : > { %6136 = vst [vmem:[#allocation6_spill] sm:$0xff] %v5090_v43  ;;  %4085 = vmatprep.mubr.msk.bf16.mxu1 %vm720_vm3, %v5090_v43  ;;  %v424_v56 = vrot.slane %v423_v44, 4  ;;  %v455_v59 = vshrl.u32 %v5088_v42, 16  ;;  %v458_v60 = vshll.u32 %v5088_v42, 16  ;;  %4218 = vmatmul.mubr.msk.bf16.gmra.mrb[4].mxu0 %vm720_vm3, %v5090_v43  ;;  %v419_v61 = vsel %vm4965_vm4, %v414_v50, %v418_v29 }
  0x32   : > { %v437_v63 = vor.u32 %v436_v51, %v433_v49  ;;  %v446_v0 = vrot.slane %v444_v55, 4  ;;  %v464_v12 = vshll.u32 %v5093_v6, 16  ;;  %v452_v21 = vrot.slane %v450_v58, 5 }
  0x33   : > { %v429_v17 = vsel %vm4965_vm4, %v424_v56, %v428_v47  ;;  %v457_v22 = vrot.slane %v455_v59, 4  ;;  %v460_v26 = vrot.slane %v458_v60, 5  ;;  %v468_v36 = vshrl.u32 %v5093_v6, 16  ;;  %v5129_v47 = vld [vmem:[%s4918_s30 + $0x68] sm:$0x1] }
  0x34   : > { %v5117_v7 = vcombine.low %v419_v61, %v429_v17  ;;  %v438_v29 = vrot.slane %v437_v63, 4  ;;  %v447_v30 = vor.u32 %v446_v0, %v442_v54  ;;  %v466_v31 = vrot.slane %v464_v12, 5 }
  0x35   : > { %v461_v35 = vor.u32 %v460_v26, %v457_v22  ;;  %v474_v37 = vshll.u32 %v5106_v11, 16  ;;  %v479_v40 = vshrl.u32 %v5110_v15, 16  ;;  %v482_v49 = vshll.u32 %v5110_v15, 16 }
  0x36   : > { %6137 = vst [vmem:[#allocation7_spill] sm:$0xff] %v5117_v7  ;;  %4221 = vmatprep.mubr.msk.bf16.mxu0 %vm720_vm3, %v5117_v7  ;;  %4086 = vmatmul.mubr.msk.bf16.gmra.mrb[8].mxu1 %vm720_vm3, %v5117_v7  ;;  %v443_v41 = vsel %vm4965_vm4, %v438_v29, %v442_v54  ;;  %v448_v44 = vrot.slane %v447_v30, 4  ;;  %v488_v50 = vshll.u32 %v5115_v27, 16  ;;  %v470_v55 = vrot.slane %v468_v36, 4  ;;  %v5137_v54 = vld [vmem:[%s4918_s30 + $0x6c] sm:$0xf] }
  0x37   : > { %v462_v51 = vrot.slane %v461_v35, 4  ;;  %v476_v56 = vrot.slane %v474_v37, 5  ;;  %v481_v58 = vrot.slane %v479_v40, 4  ;;  %v484_v60 = vrot.slane %v482_v49, 5  ;;  %v5153_v36 = vld [vmem:[%s4918_s30 + $0x70] sm:$0xf] }
  0x38   : > { %v453_v59 = vsel %vm4965_vm4, %v448_v44, %v452_v21  ;;  %v490_v61 = vrot.slane %v488_v50, 5  ;;  %v492_v63 = vshrl.u32 %v5115_v27, 16  ;;  %v471_v17 = vor.u32 %v470_v55, %v466_v31  ;;  %v5304_v7 = vld [vmem:[%s4918_s30 + $0xa0] sm:$0xf] }
  0x39   : > { %v5139_v0 = vcombine.low %v443_v41, %v453_v59  ;;  %v467_v12 = vsel %vm4965_vm4, %v462_v51, %v466_v31  ;;  %v498_v22 = vshll.u32 %v5129_v47, 16  ;;  %v485_v21 = vor.u32 %v484_v60, %v481_v58  ;;  %v5166_v51 = vld [vmem:[%s4918_s30 + $0x74] sm:$0x1] }
  0x3a   : > { %v494_v29 = vrot.slane %v492_v63, 4  ;;  %v3568_v30 = vrot.slane %v4943_v16, 9  ;;  %v1254_v35 = vrot.slane %v4946_v18, 5  ;;  %v472_v31 = vrot.slane %v471_v17, 4 }
  0x3b   : > { %6138 = vst [vmem:[#allocation8_spill] sm:$0xff] %v5139_v0  ;;  %4222 = vmatmul.mubr.msk.bf16.gmra.mrb[8].mxu0 %vm720_vm3, %v5139_v0  ;;  %4089 = vmatprep.mubr.msk.bf16.mxu1 %vm720_vm3, %v5139_v0  ;;  %v500_v37 = vrot.slane %v498_v22, 5  ;;  %v503_v40 = vshrl.u32 %v5137_v54, 16  ;;  %v506_v41 = vshll.u32 %v5137_v54, 16  ;;  %v486_v44 = vrot.slane %v485_v21, 4 }
  0x3c   : > { %v495_v49 = vor.u32 %v494_v29, %v490_v61  ;;  %v1255_v16 = vsel %vm5146_vm7, %v3568_v30, %v1254_v35  ;;  %v1256_v18 = vrot.slane %v1254_v35, 4  ;;  %v477_v50 = vsel %vm4965_vm4, %v472_v31, %v476_v56  ;;  %v5178_v56 = vld [vmem:[%s4918_s30 + $0x78] sm:$0xf]  ;;  %v5194_v31 = vld [vmem:[%s4918_s30 + $0x7c] sm:$0xf] }
  0x3d   : > { %v505_v55 = vrot.slane %v503_v40, 4  ;;  %v508_v58 = vrot.slane %v506_v41, 5  ;;  %v512_v59 = vshll.u32 %v5153_v36, 16  ;;  %v5169_v60 = vcombine.low %v467_v12, %v477_v50 }
  0x3e   : > { %v491_v63 = vsel %vm4965_vm4, %v486_v44, %v490_v61  ;;  %v496_v17 = vrot.slane %v495_v49, 4  ;;  %v1258_v22 = vsel %vm5146_vm7, %v1256_v18, %v1257_v45  ;;  %v516_v35 = vshrl.u32 %v5153_v36, 16  ;;  %v5199_v49 = vld [vmem:[%s4918_s30 + $0x80] sm:$0x1] }
  0x3f   : > { %6141 = vst [vmem:[#allocation9_spill] sm:$0xff] %v5169_v60  ;;  %v5180_v21 = vcombine.low %v1255_v16, %v1258_v22  ;;  %v509_v29 = vor.u32 %v508_v58, %v505_v55  ;;  %v514_v30 = vrot.slane %v512_v59, 5  ;;  %4225 = vmatprep.mubr.msk.bf16.mxu0 %vm720_vm3, %v5169_v60  ;;  %4090 = vmatmul.mubr.msk.bf16.gmra.mrb[12].mxu1 %vm720_vm3, %v5169_v60  ;;  %v522_v45 = vshll.u32 %v5166_v51, 16  ;;  %v5297_v60 = vld [vmem:[%s4918_s30 + $0x9c] sm:$0xf] }
  0x40   : > { %v501_v19 = vsel %vm4965_vm4, %v496_v17, %v500_v37  ;;  %v3569_v61 = vrot.slane %v4961_v33, 9  ;;  %v1263_v12 = vrot.slane %v1261_v1, 4  ;;  %v518_v44 = vrot.slane %v516_v35, 4 }
  0x41   : > { %6142 = vst [vmem:[#allocation10_spill] sm:$0xff] %v5180_v21  ;;  %v5196_v40 = vcombine.low %v491_v63, %v501_v19  ;;  %v510_v41 = vrot.slane %v509_v29, 4  ;;  %v527_v16 = vshrl.u32 %v5178_v56, 16  ;;  %v524_v18 = vrot.slane %v522_v45, 5  ;;  %v5225_v29 = vld [vmem:[%s4918_s30 + $0x84] sm:$0xf] }
  0x42   : > { %v1262_v37 = vsel %vm5146_vm7, %v3569_v61, %v1261_v1  ;;  %v1265_v50 = vsel %vm5146_vm7, %v1263_v12, %v1264_v2  ;;  %v530_v55 = vshll.u32 %v5178_v56, 16  ;;  %v519_v59 = vor.u32 %v518_v44, %v514_v30 }
  0x43   : > { %6143 = vst [vmem:[#allocation11_spill] sm:$0xff] %v5196_v40  ;;  %4226 = vmatmul.mubr.msk.bf16.gmra.mrb[12].mxu0 %vm720_vm3, %v5196_v40  ;;  %4093 = vmatprep.mubr.msk.bf16.mxu1 %vm720_vm3, %v5196_v40  ;;  %v515_v58 = vsel %vm4965_vm4, %v510_v41, %v514_v30  ;;  %v5217_v63 = vcombine.low %v1262_v37, %v1265_v50  ;;  %v529_v1 = vrot.slane %v527_v16, 4  ;;  %v536_v2 = vshll.u32 %v5194_v31, 16  ;;  %v5231_v16 = vld [vmem:[%s4918_s30 + $0x88] sm:$0xf] }
  0x44   : > { %4247 = vmatprep.mubr.msk.bf16.mxu0 %vm720_vm3, %v5180_v21  ;;  %v532_v46 = vrot.slane %v530_v55, 5  ;;  %v540_v17 = vshrl.u32 %v5194_v31, 16  ;;  %v546_v22 = vshll.u32 %v5199_v49, 16  ;;  %v520_v35 = vrot.slane %v519_v59, 4 }
  0x45   : > { %6144 = vst [vmem:[#allocation12_spill] sm:$0xff] %v5217_v63  ;;  %v3570_v30 = vrot.slane %v4988_v57, 9  ;;  %v1268_v19 = vrot.slane %v4993_v62, 5  ;;  %v1271_v45 = vrot.slane %v5001_v4, 5  ;;  %v538_v12 = vrot.slane %v536_v2, 5 }
  0x46   : > { %v533_v61 = vor.u32 %v532_v46, %v529_v1  ;;  %v542_v41 = vrot.slane %v540_v17, 4  ;;  %v548_v44 = vrot.slane %v546_v22, 5  ;;  %v525_v37 = vsel %vm4965_vm4, %v520_v35, %v524_v18  ;;  %v5241_v1 = vld [vmem:[%s4918_s30 + $0x8c] sm:$0x1] }
  0x47   : > { %v1269_v50 = vsel %vm5146_vm7, %v3570_v30, %v1268_v19  ;;  %v1270_v55 = vrot.slane %v1268_v19, 4  ;;  %v551_v59 = vshrl.u32 %v5225_v29, 16  ;;  %v5238_v3 = vcombine.low %v515_v58, %v525_v37 }
  0x48   : > { %v534_v40 = vrot.slane %v533_v61, 4  ;;  %v543_v4 = vor.u32 %v542_v41, %v538_v12  ;;  %v554_v46 = vshll.u32 %v5225_v29, 16  ;;  %v560_v18 = vshll.u32 %v5231_v16, 16  ;;  %v5255_v61 = vld [vmem:[%s4918_s30 + $0x90] sm:$0xf] }
  0x49   : > { %6145 = vst [vmem:[#allocation13_spill] sm:$0xff] %v5238_v3  ;;  %v1272_v2 = vsel %vm5146_vm7, %v1270_v55, %v1271_v45  ;;  %v553_v17 = vrot.slane %v551_v59, 4  ;;  %v564_v22 = vshrl.u32 %v5231_v16, 16  ;;  %4094 = vmatmul.mubr.msk.bf16.gmra.mrb[16].mxu1 %vm720_vm3, %v5238_v3  ;;  %v5260_v45 = vld [vmem:[%s6095_s1 + $0x1c] sm:$0xf]  ;;  %v1275_v59 = vrot.slane %v5019_v28, 5 }
  0x4a   : > { %v539_v58 = vsel %vm4965_vm4, %v534_v40, %v538_v12  ;;  %v544_v35 = vrot.slane %v543_v4, 4  ;;  %v5252_v30 = vcombine.low %v1269_v50, %v1272_v2  ;;  %v556_v19 = vrot.slane %v554_v46, 5  ;;  %6147 = vst [vmem:[#allocation15_spill] sm:$0xff] %v5260_v45  ;;  %v5274_v46 = vld [vmem:[%s4918_s30 + $0x94] sm:$0xf] }
  0x4b   : > { %4248 = vmatmul.mubr.msk.bf16.vlgmr.msra.gmra.mrb[0].mxu0 %vm720_vm3, %v5217_v63  ;;  %v562_v41 = vrot.slane %v560_v18, 5  ;;  %v566_v37 = vrot.slane %v564_v22, 4  ;;  %v570_v40 = vshll.u32 %v5241_v1, 16  ;;  %v3571_v12 = vrot.slane %v5007_v14, 9  ;;  %v5279_v3 = vld [vmem:[%s4918_s30 + $0x98] sm:$0x1] }
  0x4c   : > { %6146 = vst [vmem:[#allocation14_spill] sm:$0xff] %v5252_v30  ;;  %4280 = vmatpush3.bf16.msra.mxu0 %v4953_v20  ;;  %v549_v50 = vsel %vm4965_vm4, %v544_v35, %v548_v44  ;;  %4251 = vmatprep.mubr.msk.bf16.mxu0 %vm720_vm3, %v5252_v30  ;;  %v557_v55 = vor.u32 %v556_v19, %v553_v17  ;;  %v1278_v4 = vrot.slane %v5026_v32, 5  ;;  %v575_v20 = vshrl.u32 %v5255_v61, 16 }
  0x4d   : > { %v5276_v2 = vcombine.low %v539_v58, %v549_v50  ;;  %v567_v18 = vor.u32 %v566_v37, %v562_v41  ;;  %v572_v22 = vrot.slane %v570_v40, 5  ;;  %4647 = vmatprep.subr.msk.bf16.mxu0 %vm769_vm0, %v5260_v45  ;;  %v1276_v17 = vsel %vm5146_vm7, %v3571_v12, %v1275_v59 }
  0x4e   : > { %v558_v44 = vrot.slane %v557_v55, 4  ;;  %v1277_v35 = vrot.slane %v1275_v59, 4  ;;  %v578_v32 = vshll.u32 %v5255_v61, 16  ;;  %v577_v19 = vrot.slane %v575_v20, 4 }
  0x4f   : > { %6148 = vst [vmem:[#allocation16_spill] sm:$0xff] %v5276_v2  ;;  %4097 = vmatprep.mubr.msk.bf16.mxu1 %vm720_vm3, %v5276_v2  ;;  %v568_v58 = vrot.slane %v567_v18, 4  ;;  %v584_v37 = vshll.u32 %v5274_v46, 16  ;;  %v588_v40 = vshrl.u32 %v5274_v46, 16  ;;  %v594_v59 = vshll.u32 %v5279_v3, 16 }
  0x50   : > { %v563_v50 = vsel %vm4965_vm4, %v558_v44, %v562_v41  ;;  %v1279_v55 = vsel %vm5146_vm7, %v1277_v35, %v1278_v4  ;;  %v580_v12 = vrot.slane %v578_v32, 5  ;;  %v3572_v4 = vrot.slane %v5034_v48, 9 }
  0x51   : > { %v573_v2 = vsel %vm4965_vm4, %v568_v58, %v572_v22  ;;  %v5301_v18 = vcombine.low %v1276_v17, %v1279_v55  ;;  %v586_v20 = vrot.slane %v584_v37, 5  ;;  %v590_v0 = vrot.slane %v588_v40, 4  ;;  %v5317_v58 = vld [vmem:[%s4918_s30 + $0xa4] sm:$0x1] }
  0x52   : > { %v5306_v43 = vcombine.low %v563_v50, %v573_v2  ;;  %v581_v41 = vor.u32 %v580_v12, %v577_v19  ;;  %v596_v44 = vrot.slane %v594_v59, 5  ;;  %v1282_v32 = vrot.slane %v5042_v52, 5 }
  0x53   : > { %6149 = vst [vmem:[#allocation17_spill] sm:$0xff] %v5301_v18  ;;  %4252 = vmatmul.mubr.msk.bf16.gmra.mrb[4].mxu0 %vm720_vm3, %v5301_v18  ;;  %v591_v35 = vor.u32 %v590_v0, %v586_v20  ;;  %v1285_v22 = vrot.slane %v5054_v5, 5  ;;  %v599_v17 = vshrl.u32 %v5297_v60, 16  ;;  %v602_v19 = vshll.u32 %v5297_v60, 16 }
  0x54   : > { %6150 = vst [vmem:[#allocation18_spill] sm:$0xff] %v5306_v43  ;;  %4098 = vmatmul.mubr.msk.bf16.gmra.mrb[20].mxu1 %vm720_vm3, %v5306_v43  ;;  %v582_v2 = vrot.slane %v581_v41, 4  ;;  %v608_v37 = vshll.u32 %v5304_v7, 16  ;;  %v612_v0 = vshrl.u32 %v5304_v7, 16  ;;  %v1283_v5 = vsel %vm5146_vm7, %v3572_v4, %v1282_v32 }
  0x55   : > { %v592_v40 = vrot.slane %v591_v35, 4  ;;  %v1284_v50 = vrot.slane %v1282_v32, 4  ;;  %v601_v55 = vrot.slane %v599_v17, 4  ;;  %v604_v59 = vrot.slane %v602_v19, 5  ;;  %v5336_v32 = vld [vmem:[%s4918_s30 + $0xac] sm:$0xf] }
  0x56   : > { %v587_v12 = vsel %vm4965_vm4, %v582_v2, %v586_v20  ;;  %v610_v41 = vrot.slane %v608_v37, 5  ;;  %v614_v43 = vrot.slane %v612_v0, 4  ;;  %v618_v35 = vshll.u32 %v5317_v58, 16 }
  0x57   : > { %v597_v53 = vsel %vm4965_vm4, %v592_v40, %v596_v44  ;;  %v1286_v18 = vsel %vm5146_vm7, %v1284_v50, %v1285_v22  ;;  %v3573_v4 = vrot.slane %v5059_v13, 9  ;;  %v605_v2 = vor.u32 %v604_v59, %v601_v55 }
  0x58   : > { %v5338_v17 = vcombine.low %v587_v12, %v597_v53  ;;  %v5340_v20 = vcombine.low %v1283_v5, %v1286_v18  ;;  %v615_v19 = vor.u32 %v614_v43, %v610_v41  ;;  %v620_v37 = vrot.slane %v618_v35, 5  ;;  %v5350_v18 = vld [vmem:[%s4918_s30 + $0xb0] sm:$0x1] }
  0x59   : > { %v1289_v0 = vrot.slane %v5066_v24, 5  ;;  %v1292_v44 = vrot.slane %v5083_v8, 5  ;;  %v623_v22 = vshrl.u32 %v5327_v25, 16  ;;  %v606_v53 = vrot.slane %v605_v2, 4 }
  0x5a   : > { %6151 = vst [vmem:[#allocation19_spill] sm:$0xff] %v5338_v17  ;;  %6152 = vst [vmem:[#allocation20_spill] sm:$0xff] %v5340_v20  ;;  %4101 = vmatprep.mubr.msk.bf16.mxu1 %vm720_vm3, %v5338_v17  ;;  %4255 = vmatprep.mubr.msk.bf16.mxu0 %vm720_vm3, %v5340_v20  ;;  %v616_v40 = vrot.slane %v615_v19, 4  ;;  %v626_v43 = vshll.u32 %v5327_v25, 16  ;;  %v632_v5 = vshll.u32 %v5336_v32, 16  ;;  %v636_v12 = vshrl.u32 %v5336_v32, 16 }
  0x5b   : > { %v1290_v8 = vsel %vm5146_vm7, %v3573_v4, %v1289_v0  ;;  %v1291_v50 = vrot.slane %v1289_v0, 4  ;;  %v625_v55 = vrot.slane %v623_v22, 4  ;;  %v611_v59 = vsel %vm4965_vm4, %v606_v53, %v610_v41  ;;  %v5362_v17 = vld [vmem:[%s4918_s30 + $0xb4] sm:$0xf]  ;;  %v5374_v53 = vld [vmem:[%s4918_s30 + $0xb8] sm:$0xf] }
  0x5c   : > { %v621_v35 = vsel %vm4965_vm4, %v616_v40, %v620_v37  ;;  %v628_v2 = vrot.slane %v626_v43, 5  ;;  %v634_v19 = vrot.slane %v632_v5, 5  ;;  %v638_v0 = vrot.slane %v636_v12, 4 }
  0x5d   : > { %v5364_v20 = vcombine.low %v611_v59, %v621_v35  ;;  %v1293_v4 = vsel %vm5146_vm7, %v1291_v50, %v1292_v44  ;;  %v642_v22 = vshll.u32 %v5350_v18, 16  ;;  %v3574_v41 = vrot.slane %v5088_v42, 9  ;;  %v5380_v44 = vld [vmem:[%s4918_s30 + $0xbc] sm:$0x1] }
  0x5e   : > { %v5369_v30 = vcombine.low %v1290_v8, %v1293_v4  ;;  %v629_v63 = vor.u32 %v628_v2, %v625_v55  ;;  %v1296_v37 = vrot.slane %v5093_v6, 5  ;;  %v639_v40 = vor.u32 %v638_v0, %v634_v19 }
  0x5f   : > { %6153 = vst [vmem:[#allocation21_spill] sm:$0xff] %v5364_v20  ;;  %4102 = vmatmul.mubr.msk.bf16.gmra.mrb[24].mxu1 %vm720_vm3, %v5364_v20  ;;  %v644_v43 = vrot.slane %v642_v22, 5  ;;  %v1299_v5 = vrot.slane %v5106_v11, 5  ;;  %v647_v50 = vshrl.u32 %v5362_v17, 16  ;;  %v650_v59 = vshll.u32 %v5362_v17, 16 }
  0x60   : > { %6154 = vst [vmem:[#allocation22_spill] sm:$0xff] %v5369_v30  ;;  %4256 = vmatmul.mubr.msk.bf16.gmra.mrb[8].mxu0 %vm720_vm3, %v5369_v30  ;;  %v630_v8 = vrot.slane %v629_v63, 4  ;;  %v1297_v55 = vsel %vm5146_vm7, %v3574_v41, %v1296_v37  ;;  %v1298_v12 = vrot.slane %v1296_v37, 4  ;;  %v640_v35 = vrot.slane %v639_v40, 4 }
  0x61   : > { %v649_v2 = vrot.slane %v647_v50, 4  ;;  %v656_v4 = vshll.u32 %v5374_v53, 16  ;;  %v660_v11 = vshrl.u32 %v5374_v53, 16  ;;  %v652_v20 = vrot.slane %v650_v59, 5 }
  0x62   : > { %v635_v0 = vsel %vm4965_vm4, %v630_v8, %v634_v19  ;;  %v1300_v22 = vsel %vm5146_vm7, %v1298_v12, %v1299_v5  ;;  %v666_v63 = vshll.u32 %v5380_v44, 16  ;;  %v645_v41 = vsel %vm4965_vm4, %v640_v35, %v644_v43 }
  0x63   : > { %v5397_v37 = vcombine.low %v1297_v55, %v1300_v22  ;;  %v658_v40 = vrot.slane %v656_v4, 5  ;;  %v662_v50 = vrot.slane %v660_v11, 4  ;;  %v5399_v30 = vcombine.low %v635_v0, %v645_v41 }
  0x64   : > { %v653_v21 = vor.u32 %v652_v20, %v649_v2  ;;  %v668_v45 = vrot.slane %v666_v63, 5  ;;  %v3575_v42 = vrot.slane %v5110_v15, 9  ;;  %v1303_v5 = vrot.slane %v5115_v27, 5 }
  0x65   : > { %4259 = vmatprep.mubr.msk.bf16.mxu0 %vm720_vm3, %v5397_v37  ;;  %v663_v19 = vor.u32 %v662_v50, %v658_v40  ;;  %v1306_v8 = vrot.slane %v5129_v47, 5  ;;  %v3576_v43 = vrot.slane %v5137_v54, 9  ;;  %4105 = vmatprep.mubr.msk.bf16.mxu1 %vm720_vm3, %v5399_v30  ;;  %v3535_v20 = vcombine.low %v4932_v9, %v4935_v10 }
  0x66   : > { %v654_v55 = vrot.slane %v653_v21, 4  ;;  %v1310_v12 = vrot.slane %v5153_v36, 5  ;;  %v1313_v59 = vrot.slane %v5166_v51, 5  ;;  %v1304_v2 = vsel %vm5146_vm7, %v3575_v42, %v1303_v5 }
  0x67   : > { %v664_v35 = vrot.slane %v663_v19, 4  ;;  %v1305_v4 = vrot.slane %v1303_v5, 4  ;;  %v1317_v47 = vrot.slane %v5194_v31, 5  ;;  %v3577_v9 = vrot.slane %v5178_v56, 9 }
  0x68   : > { %v659_v11 = vsel %vm4965_vm4, %v654_v55, %v658_v40  ;;  %v1311_v21 = vsel %vm5146_vm7, %v3576_v43, %v1310_v12  ;;  %v1312_v0 = vrot.slane %v1310_v12, 4  ;;  %v1320_v42 = vrot.slane %v5199_v49, 5 }
  0x69   : > { %v669_v10 = vsel %vm4965_vm4, %v664_v35, %v668_v45  ;;  %v1307_v51 = vsel %vm5146_vm7, %v1305_v4, %v1306_v8  ;;  %v1319_v22 = vrot.slane %v1317_v47, 4  ;;  %v3578_v19 = vrot.slane %v5225_v29, 9 }
  0x6a   : > { %v5426_v63 = vcombine.low %v659_v11, %v669_v10  ;;  %v5428_v41 = vcombine.low %v1304_v2, %v1307_v51  ;;  %v1314_v40 = vsel %vm5146_vm7, %v1312_v0, %v1313_v59  ;;  %v1324_v5 = vrot.slane %v5231_v16, 5 }
  0x6b   : > { %v5432_v50 = vcombine.low %v1311_v21, %v1314_v40  ;;  %v1327_v49 = vrot.slane %v5241_v1, 5  ;;  %v1318_v45 = vsel %vm5146_vm7, %v3577_v9, %v1317_v47  ;;  %v1321_v8 = vsel %vm5146_vm7, %v1319_v22, %v1320_v42 }
  0x6c   : > { %4106 = vmatmul.mubr.msk.bf16.gmra.mrb[28].mxu1 %vm720_vm3, %v5426_v63  ;;  %4260 = vmatmul.mubr.msk.bf16.gmra.mrb[12].mxu0 %vm720_vm3, %v5428_v41  ;;  %v1326_v43 = vrot.slane %v1324_v5, 4  ;;  %v1331_v55 = vrot.slane %v5274_v46, 5  ;;  %v1338_v12 = vrot.slane %v5304_v7, 5  ;;  %v1325_v59 = vsel %vm5146_vm7, %v3578_v19, %v1324_v5 }
  0x6d   : > { %4111 = vmatprep.mubr.msk.bf16.mxu1 %vm720_vm3, %v3535_v20  ;;  %4263 = vmatprep.mubr.msk.bf16.mxu0 %vm720_vm3, %v5432_v50  ;;  %v5454_v20 = vcombine.low %v1318_v45, %v1321_v8  ;;  %v3579_v35 = vrot.slane %v5255_v61, 9  ;;  %v1334_v4 = vrot.slane %v5279_v3, 5  ;;  %v5460_v47 = vcombine.low %v4961_v33, %v4974_v39  ;;  %v5472_v3 = vld [vmem:[%s6095_s1 + $0xc] sm:$0xf] }
  0x6e   : > { %v1328_v1 = vsel %vm5146_vm7, %v1326_v43, %v1327_v49  ;;  %v1333_v2 = vrot.slane %v1331_v55, 4  ;;  %v3580_v11 = vrot.slane %v5297_v60, 9  ;;  %v1456_v21 = vsel %vm769_vm0, %v5014_v23, 0 }
  0x6f   : > { %v5465_v0 = vcombine.low %v1325_v59, %v1328_v1  ;;  %v1340_v9 = vrot.slane %v1338_v12, 4  ;;  %v1341_v10 = vrot.slane %v5317_v58, 5  ;;  %v1345_v51 = vrot.slane %v5336_v32, 5 }
  0x70   : > { %v1332_v33 = vsel %vm5146_vm7, %v3579_v35, %v1331_v55  ;;  %v1335_v39 = vsel %vm5146_vm7, %v1333_v2, %v1334_v4  ;;  %v5486_v23 = vcombine.low %v4988_v57, %v4993_v62  ;;  %v1339_v58 = vsel %vm5146_vm7, %v3580_v11, %v1338_v12 }
  0x71   : > { %v5492_v22 = vcombine.low %v5110_v15, %v5115_v27  ;;  %v1342_v42 = vsel %vm5146_vm7, %v1340_v9, %v1341_v10  ;;  %v3581_v40 = vrot.slane %v5327_v25, 9  ;;  %v1352_v19 = vrot.slane %v5374_v53, 5 }
  0x72   : > { %v5502_v57 = vcombine.low %v5137_v54, %v5153_v36  ;;  %v5506_v62 = vcombine.low %v1332_v33, %v1335_v39  ;;  %v1347_v15 = vrot.slane %v1345_v51, 4  ;;  %v1348_v27 = vrot.slane %v5350_v18, 5  ;;  %v278_v18 = vld [vmem:[%s4918_s30 + $0xc8] sm:$0x1] }
  0x73   : > { %v5511_v5 = vcombine.low %v5178_v56, %v5194_v31  ;;  %v5515_v49 = vcombine.low %v5225_v29, %v5231_v16  ;;  %v5519_v54 = vcombine.low %v5255_v61, %v5274_v46  ;;  %v5523_v36 = vcombine.low %v5297_v60, %v5304_v7  ;;  %v5542_v61 = vld [vmem:[%s4918_s30 + $0xc4] sm:$0xf] }
  0x74   : > { %4112 = vmatmul.mubr.msk.bf16.vlgmr.msra.gmra.mrb[0].mxu1 %vm720_vm3, %v4971_v38  ;;  %4264 = vmatmul.mubr.msk.bf16.gmra.mrb[16].mxu0 %vm720_vm3, %v5454_v20  ;;  %v5527_v45 = vcombine.low %v5327_v25, %v5336_v32  ;;  %v5531_v56 = vcombine.low %v5007_v14, %v5019_v28  ;;  %v5533_v31 = vcombine.low %v1339_v58, %v1342_v42  ;;  %v3582_v16 = vrot.slane %v5362_v17, 9  ;;  %v6155_v42 = vld [vmem:[#allocation5_spill] sm:$0xff] }
  0x75   : > { %4144 = vmatpush3.bf16.msra.mxu1 %v1456_v21  ;;  %4115 = vmatprep.mubr.msk.bf16.mxu1 %vm720_vm3, %v5460_v47  ;;  %v5537_v29 = vcombine.low %v5362_v17, %v5374_v53  ;;  %v1354_v7 = vrot.slane %v1352_v19, 4  ;;  %v1355_v60 = vrot.slane %v5380_v44, 5  ;;  %v1346_v14 = vsel %vm5146_vm7, %v3581_v40, %v1345_v51  ;;  %v5562_v17 = vld [vmem:[%s4918_s30 + $0xc0] sm:$0xf] }
  0x76   : > { %4267 = vmatprep.mubr.msk.bf16.mxu0 %vm720_vm3, %v5465_v0  ;;  %4642 = vmatprep.subr.msk.bf16.mxu1 %vm769_vm0, %v5472_v3  ;;  %v1349_v28 = vsel %vm5146_vm7, %v1347_v15, %v1348_v27  ;;  %v2088_v25 = vrot.slane %v5542_v61, 5  ;;  %v1353_v46 = vsel %vm5146_vm7, %v3582_v16, %v1352_v19  ;;  %v5567_v53 = vcombine.low %v5034_v48, %v5042_v52 }
  0x77   : > { %v1356_v32 = vsel %vm5146_vm7, %v1354_v7, %v1355_v60  ;;  %v5569_v44 = vcombine.low %v1346_v14, %v1349_v28  ;;  %v5573_v8 = vcombine.low %v5059_v13, %v5066_v24  ;;  %v1858_v43 = vshrl.u32 %v5562_v17, 16  ;;  %v3708_v60 = vld [vmem:[%s6095_s1 + $0x20] sm:$0xf]  ;;  %v4820_v14 = vld [vmem:[%s4918_s30 + $0x4] sm:$0xf] }
  0x78   : > { %v1861_v55 = vshll.u32 %v5562_v17, 16  ;;  %v1867_v12 = vshll.u32 %v5542_v61, 16  ;;  %v1871_v59 = vshrl.u32 %v5542_v61, 16  ;;  %v5579_v1 = vcombine.low %v1353_v46, %v1356_v32  ;;  %v4822_v32 = vld [vmem:[%s4918_s30] sm:$0xf] }
  0x79   : > { %v3652_v35 = vrot.slane %v5562_v17, 9  ;;  %v2090_v48 = vrot.slane %v2088_v25, 4  ;;  %v2091_v52 = vrot.slane %v278_v18, 5  ;;  %v1860_v2 = vrot.slane %v1858_v43, 4 }
  0x7a   : > { %v1863_v4 = vrot.slane %v1861_v55, 5  ;;  %v1869_v11 = vrot.slane %v1867_v12, 5  ;;  %v1873_v21 = vrot.slane %v1871_v59, 4  ;;  %v1877_v9 = vshll.u32 %v278_v18, 16 }
  0x7b   : > { %v2089_v10 = vsel %vm5146_vm7, %v3652_v35, %v2088_v25  ;;  %v2092_v51 = vsel %vm5146_vm7, %v2090_v48, %v2091_v52  ;;  %v5596_v40 = vcombine.low %v6155_v42, %v5093_v6  ;;  %v6156_v6 = vld [vmem:[#allocation15_spill] sm:$0xff]  ;;  %v1247_v28 = vrot.slane %v4820_v14, 5  ;;  %v6157_v48 = vld [vmem:[#allocation10_spill] sm:$0xff]  ;;  %v6158_v52 = vld [vmem:[#allocation12_spill] sm:$0xff] }
  0x7c   : > { %4116 = vmatmul.mubr.msk.bf16.gmra.mrb[4].mxu1 %vm720_vm3, %v5486_v23  ;;  %4268 = vmatmul.mubr.msk.bf16.gmra.mrb[20].mxu0 %vm720_vm3, %v5506_v62  ;;  %v1864_v13 = vor.u32 %v1863_v4, %v1860_v2  ;;  %v1874_v24 = vor.u32 %v1873_v21, %v1869_v11  ;;  %v1879_v58 = vrot.slane %v1877_v9, 5  ;;  %v5598_v19 = vcombine.low %v2089_v10, %v2092_v51  ;;  %v4821_v25 = vld [vmem:[%s4918_s30 + $0x8] sm:$0x1]  ;;  %v4823_v2 = vld [vmem:[%s6095_s1 + $0x10] sm:$0xf]  ;;  %v6160_v4 = vld [vmem:[#allocation17_spill] sm:$0xff] }
  0x7d   : > { %4119 = vmatprep.mubr.msk.bf16.mxu1 %vm720_vm3, %v5531_v56  ;;  %4271 = vmatprep.mubr.msk.bf16.mxu0 %vm720_vm3, %v5533_v31  ;;  %v2536_v7 = vsel %vm769_vm0, %v6156_v6, 0  ;;  %v1250_v46 = vrot.slane %v4821_v25, 5  ;;  %v3567_v18 = vrot.slane %v4822_v32, 9  ;;  %v1249_v43 = vrot.slane %v1247_v28, 4  ;;  %v6161_v21 = vld [vmem:[#allocation20_spill] sm:$0xff]  ;;  %v6168_v42 = vld [vmem:[#allocation9_spill] sm:$0xff] }
  0x7e   : > { %v1865_v33 = vrot.slane %v1864_v13, 4  ;;  %v1875_v39 = vrot.slane %v1874_v24, 4  ;;  %v1662_v35 = vsel %vm769_vm0, %v5472_v3, 0  ;;  %v6159_v3 = vld [vmem:[#allocation14_spill] sm:$0xff]  ;;  %v5693_v24 = vld [vmem:[%s4918_s30 + $0xcc] sm:$0xf] }
  0x7f   : > { %v1248_v55 = vsel %vm5146_vm7, %v3567_v18, %v1247_v28  ;;  %v1251_v12 = vsel %vm5146_vm7, %v1249_v43, %v1250_v46  ;;  %v6162_v13 = vld [vmem:[#allocation22_spill] sm:$0xff]  ;;  %v5696_v9 = vld [vmem:[%s4918_s30 + $0xd0] sm:$0xf]  ;;  %v2748_v10 = vsel %vm769_vm0, %v3708_v60, 0  ;;  %v2507_v14 = vshll.u32 %v5693_v24, 16  ;;  %v6174_v46 = vld [vmem:[#allocation19_spill] sm:$0xff] }
  0x80   : > { %v1870_v15 = vsel %vm4965_vm4, %v1865_v33, %v1869_v11  ;;  %v1880_v27 = vsel %vm4965_vm4, %v1875_v39, %v1879_v58  ;;  %v3584_v59 = vcombine.low %v1248_v55, %v1251_v12  ;;  %v5682_v11 = vcombine.low %v5562_v17, %v5542_v61  ;;  %v6163_v17 = vld [vmem:[#allocation3_spill] sm:$0xff]  ;;  %v6164_v51 = vld [vmem:[#allocation4_spill] sm:$0xff]  ;;  %v6165_v33 = vld [vmem:[#allocation6_spill] sm:$0xff] }
  0x81   : > { %v5604_v16 = vcombine.low %v1870_v15, %v1880_v27  ;;  %v3672_v61 = vcombine.low %v5693_v24, %v5696_v9  ;;  %v6166_v39 = vld [vmem:[#allocation7_spill] sm:$0xff]  ;;  %v6167_v58 = vld [vmem:[#allocation8_spill] sm:$0xff]  ;;  %v6170_v27 = vld [vmem:[#allocation13_spill] sm:$0xff]  ;;  %v2517_v28 = vshrl.u32 %v5696_v9, 16  ;;  %v2509_v32 = vrot.slane %v2507_v14, 5 }
  0x82   : > { %v6169_v15 = vld [vmem:[#allocation11_spill] sm:$0xff]  ;;  %v6171_v6 = vld [vmem:[#allocation16_spill] sm:$0xff]  ;;  %v6173_v25 = vld [vmem:[#allocation2_spill] sm:$0xff]  ;;  %v2734_v34 = vrot.slane %v5696_v9, 5 }
  0x83   : > { %v2519_v43 = vrot.slane %v2517_v28, 4  ;;  %v281_v55 = vld [vmem:[%s4918_s30 + $0xd4] sm:$0x1]  ;;  %v6175_v12 = vld [vmem:[#allocation21_spill] sm:$0xff] }
  0x84   : > { %4120 = vmatmul.mubr.msk.bf16.gmra.mrb[8].mxu1 %vm720_vm3, %v5567_v53  ;;  %4272 = vmatmul.mubr.msk.bf16.gmra.mrb[24].mxu0 %vm720_vm3, %v5569_v44 }
  0x85   : > { %4123 = vmatprep.mubr.msk.bf16.mxu1 %vm720_vm3, %v5573_v8  ;;  %4275 = vmatprep.mubr.msk.bf16.mxu0 %vm720_vm3, %v5579_v1 }
  0x8c   : > { %4124 = vmatmul.mubr.msk.bf16.gmra.mrb[12].mxu1 %vm720_vm3, %v5596_v40  ;;  %4276 = vmatmul.mubr.msk.bf16.gmra.mrb[28].mxu0 %vm720_vm3, %v5598_v19 }
  0x8d   : > { %4127 = vmatprep.mubr.msk.bf16.mxu1 %vm720_vm3, %v5492_v22  ;;  %4281 = vmatprep.mubr.msk.bf16.mxu0 %vm720_vm3, %v5460_v47 }
  0x94   : > { %4128 = vmatmul.mubr.msk.bf16.gmra.mrb[16].mxu1 %vm720_vm3, %v5502_v57  ;;  %4282 = vmatmul.mubr.msk.bf16.vlgmr.msra.gmra.mrb[0].mxu0 %vm720_vm3, %v5486_v23 }
  0x95   : > { %4314 = vmatpush3.bf16.msra.mxu0 %v2536_v7  ;;  %4131 = vmatprep.mubr.msk.bf16.mxu1 %vm720_vm3, %v5511_v5  ;;  %v6172_v7 = vld [vmem:[#allocation18_spill] sm:$0xff] }
  0x96   : > { %4285 = vmatprep.mubr.msk.bf16.mxu0 %vm720_vm3, %v5531_v56  ;;  %4648 = vmatprep.subr.msk.bf16.mxu0 %vm769_vm0, %v3708_v60  ;;  %v2504_v60 = vshrl.u32 %v5693_v24, 16 }
  0x9c   : > { %4132 = vmatmul.mubr.msk.bf16.gmra.mrb[20].mxu1 %vm720_vm3, %v5515_v49  ;;  %4286 = vmatmul.mubr.msk.bf16.gmra.mrb[4].mxu0 %vm720_vm3, %v5567_v53 }
  0x9d   : > { %4135 = vmatprep.mubr.msk.bf16.mxu1 %vm720_vm3, %v5519_v54  ;;  %4289 = vmatprep.mubr.msk.bf16.mxu0 %vm720_vm3, %v5573_v8 }
  0xa4   : > { %4136 = vmatmul.mubr.msk.bf16.gmra.mrb[24].mxu1 %vm720_vm3, %v5523_v36  ;;  %4290 = vmatmul.mubr.msk.bf16.gmra.mrb[8].mxu0 %vm720_vm3, %v5596_v40 }
  0xa5   : > { %4139 = vmatprep.mubr.msk.bf16.mxu1 %vm720_vm3, %v5527_v45  ;;  %4293 = vmatprep.mubr.msk.bf16.mxu0 %vm720_vm3, %v5492_v22 }
  0xac   : > { %4140 = vmatmul.mubr.msk.bf16.gmra.mrb[28].mxu1 %vm720_vm3, %v5537_v29  ;;  %4294 = vmatmul.mubr.msk.bf16.gmra.mrb[12].mxu0 %vm720_vm3, %v5502_v57 }
  0xad   : > { %4145 = vmatprep.mubr.msk.bf16.mxu1 %vm720_vm3, %v3584_v59  ;;  %4297 = vmatprep.mubr.msk.bf16.mxu0 %vm720_vm3, %v5511_v5 }
  0xb4   : > { %4146 = vmatmul.mubr.msk.bf16.vlgmr.msra.gmra.mrb[0].mxu1 %vm720_vm3, %v6157_v48  ;;  %4298 = vmatmul.mubr.msk.bf16.gmra.mrb[16].mxu0 %vm720_vm3, %v5515_v49 }
  0xb5   : > { %4178 = vmatpush3.bf16.msra.mxu1 %v1662_v35  ;;  %4149 = vmatprep.mubr.msk.bf16.mxu1 %vm720_vm3, %v6158_v52  ;;  %v2523_v35 = vshll.u32 %v281_v55, 16 }
  0xb6   : > { %4301 = vmatprep.mubr.msk.bf16.mxu0 %vm720_vm3, %v5519_v54  ;;  %4644 = vmatprep.subr.msk.bf16.mxu1 %vm769_vm0, %v4823_v2 }
  0xbc   : > { %4150 = vmatmul.mubr.msk.bf16.gmra.mrb[4].mxu1 %vm720_vm3, %v6159_v3  ;;  %4302 = vmatmul.mubr.msk.bf16.gmra.mrb[20].mxu0 %vm720_vm3, %v5523_v36 }
  0xbd   : > { %4153 = vmatprep.mubr.msk.bf16.mxu1 %vm720_vm3, %v6160_v4  ;;  %4305 = vmatprep.mubr.msk.bf16.mxu0 %vm720_vm3, %v5527_v45 }
  0xc4   : > { %4154 = vmatmul.mubr.msk.bf16.gmra.mrb[8].mxu1 %vm720_vm3, %v6161_v21  ;;  %4306 = vmatmul.mubr.msk.bf16.gmra.mrb[24].mxu0 %vm720_vm3, %v5537_v29 }
  0xc5   : > { %4157 = vmatprep.mubr.msk.bf16.mxu1 %vm720_vm3, %v6162_v13  ;;  %4309 = vmatprep.mubr.msk.bf16.mxu0 %vm720_vm3, %v5682_v11 }
  0xcc   : > { %4158 = vmatmul.mubr.msk.bf16.gmra.mrb[12].mxu1 %vm720_vm3, %v5397_v37  ;;  %4310 = vmatmul.mubr.msk.bf16.gmra.mrb[28].mxu0 %vm720_vm3, %v3672_v61  ;;  %v2525_v61 = vrot.slane %v2523_v35, 5 }
  0xcd   : > { %4161 = vmatprep.mubr.msk.bf16.mxu1 %vm720_vm3, %v5428_v41  ;;  %4315 = vmatprep.mubr.msk.bf16.mxu0 %vm720_vm3, %v6163_v17 }
  0xd4   : > { %4162 = vmatmul.mubr.msk.bf16.gmra.mrb[16].mxu1 %vm720_vm3, %v5432_v50  ;;  %4316 = vmatmul.mubr.msk.bf16.vlgmr.msra.gmra.mrb[0].mxu0 %vm720_vm3, %v6164_v51 }
  0xd5   : > { %4348 = vmatpush3.bf16.msra.mxu0 %v2748_v10  ;;  %4165 = vmatprep.mubr.msk.bf16.mxu1 %vm720_vm3, %v5454_v20 }
  0xd6   : > { %4319 = vmatprep.mubr.msk.bf16.mxu0 %vm720_vm3, %v6165_v33 }
  0xdc   : > { %4166 = vmatmul.mubr.msk.bf16.gmra.mrb[20].mxu1 %vm720_vm3, %v5465_v0  ;;  %4320 = vmatmul.mubr.msk.bf16.gmra.mrb[4].mxu0 %vm720_vm3, %v6166_v39 }
  0xdd   : > { %4169 = vmatprep.mubr.msk.bf16.mxu1 %vm720_vm3, %v5506_v62  ;;  %4323 = vmatprep.mubr.msk.bf16.mxu0 %vm720_vm3, %v6167_v58 }
  0xe4   : > { %4170 = vmatmul.mubr.msk.bf16.gmra.mrb[24].mxu1 %vm720_vm3, %v5533_v31  ;;  %4324 = vmatmul.mubr.msk.bf16.gmra.mrb[8].mxu0 %vm720_vm3, %v6168_v42 }
  0xe5   : > { %4173 = vmatprep.mubr.msk.bf16.mxu1 %vm720_vm3, %v5569_v44  ;;  %4327 = vmatprep.mubr.msk.bf16.mxu0 %vm720_vm3, %v6169_v15 }
  0xec   : > { %4174 = vmatmul.mubr.msk.bf16.gmra.mrb[28].mxu1 %vm720_vm3, %v5579_v1  ;;  %4328 = vmatmul.mubr.msk.bf16.gmra.mrb[12].mxu0 %vm720_vm3, %v6170_v27 }
  0xed   : > { %4179 = vmatprep.mubr.msk.bf16.mxu1 %vm720_vm3, %v4971_v38  ;;  %4331 = vmatprep.mubr.msk.bf16.mxu0 %vm720_vm3, %v6171_v6  ;;  %v2513_v38 = vshll.u32 %v5696_v9, 16 }
  0xef   : > { %v2515_v18 = vrot.slane %v2513_v38, 5 }
  0xf1   : > { %v2520_v59 = vor.u32 %v2519_v43, %v2515_v18 }
  0xf3   : > { %v2521_v2 = vrot.slane %v2520_v59, 4 }
  0xf4   : > { %4180 = vmatmul.mubr.msk.bf16.vlgmr.msra.gmra.mrb[0].mxu1 %vm720_vm3, %v5460_v47  ;;  %4332 = vmatmul.mubr.msk.bf16.gmra.mrb[16].mxu0 %vm720_vm3, %v6172_v7  ;;  %v2506_v47 = vrot.slane %v2504_v60, 4 }
  0xf5   : > { %4382 = vmatpush3.bf16.msra.mxu1 %v6173_v25  ;;  %4183 = vmatprep.mubr.msk.bf16.mxu1 %vm720_vm3, %v5486_v23 }
  0xf6   : > { %4335 = vmatprep.mubr.msk.bf16.mxu0 %vm720_vm3, %v6174_v46  ;;  %v2510_v23 = vor.u32 %v2509_v32, %v2506_v47 }
  0xf8   : > { %v2511_v48 = vrot.slane %v2510_v23, 4 }
  0xfc   : > { %4184 = vmatmul.mubr.msk.bf16.gmra.mrb[4].mxu1 %vm720_vm3, %v5531_v56  ;;  %4336 = vmatmul.mubr.msk.bf16.gmra.mrb[20].mxu0 %vm720_vm3, %v6175_v12  ;;  %v2516_v56 = vsel %vm4965_vm4, %v2511_v48, %v2515_v18 }
  0xfd   : > { %4187 = vmatprep.mubr.msk.bf16.mxu1 %vm720_vm3, %v5567_v53  ;;  %4339 = vmatprep.mubr.msk.bf16.mxu0 %vm720_vm3, %v5399_v30  ;;  %v2526_v53 = vsel %vm4965_vm4, %v2521_v2, %v2525_v61 }
  0xfe   : > { %v3690_v17 = vcombine.low %v2516_v56, %v2526_v53 }
 0x104   : > { %4188 = vmatmul.mubr.msk.bf16.gmra.mrb[8].mxu1 %vm720_vm3, %v5573_v8  ;;  %4340 = vmatmul.mubr.msk.bf16.gmra.mrb[24].mxu0 %vm720_vm3, %v5426_v63 }
 0x105   : > { %4191 = vmatprep.mubr.msk.bf16.mxu1 %vm720_vm3, %v5596_v40  ;;  %4343 = vmatprep.mubr.msk.bf16.mxu0 %vm720_vm3, %v5604_v16 }
 0x10c   : > { %4192 = vmatmul.mubr.msk.bf16.gmra.mrb[12].mxu1 %vm720_vm3, %v5492_v22  ;;  %4344 = vmatmul.mubr.msk.bf16.gmra.mrb[28].mxu0 %vm720_vm3, %v3690_v17 }
 0x10d   : > { %4195 = vmatprep.mubr.msk.bf16.mxu1 %vm720_vm3, %v5502_v57  ;;  %4349 = vmatprep.mubr.msk.bf16.mxu0 %vm720_vm3, %v6158_v52 }
 0x114   : > { %4196 = vmatmul.mubr.msk.bf16.gmra.mrb[16].mxu1 %vm720_vm3, %v5511_v5  ;;  %4350 = vmatmul.mubr.msk.bf16.vlgmr.msra.gmra.mrb[0].mxu0 %vm720_vm3, %v6159_v3 }
 0x115   : > { %4199 = vmatprep.mubr.msk.bf16.mxu1 %vm720_vm3, %v5515_v49  ;;  %4353 = vmatprep.mubr.msk.bf16.mxu0 %vm720_vm3, %v6160_v4  ;;  %v5864_v4 = vld [vmem:[%s6097_s3] ss:$0 sm:$0xff] }
 0x11c   : > { %4200 = vmatmul.mubr.msk.bf16.gmra.mrb[20].mxu1 %vm720_vm3, %v5519_v54  ;;  %4354 = vmatmul.mubr.msk.bf16.gmra.mrb[4].mxu0 %vm720_vm3, %v6161_v21 }
 0x11d   : > { %4203 = vmatprep.mubr.msk.bf16.mxu1 %vm720_vm3, %v5523_v36  ;;  %4357 = vmatprep.mubr.msk.bf16.mxu0 %vm720_vm3, %v6162_v13 }
 0x124   : > { %4204 = vmatmul.mubr.msk.bf16.gmra.mrb[24].mxu1 %vm720_vm3, %v5527_v45  ;;  %4358 = vmatmul.mubr.msk.bf16.gmra.mrb[8].mxu0 %vm720_vm3, %v5397_v37  ;;  %v3707_v37 = vrot.slane %v5693_v24, 9 }
 0x125   : > { %4207 = vmatprep.mubr.msk.bf16.mxu1 %vm720_vm3, %v5537_v29  ;;  %4361 = vmatprep.mubr.msk.bf16.mxu0 %vm720_vm3, %v5428_v41  ;;  %v2736_v41 = vrot.slane %v2734_v34, 4 }
 0x12c   : > { %4208 = vmatmul.mubr.msk.bf16.gmra.mrb[28].mxu1 %vm720_vm3, %v5682_v11  ;;  %4362 = vmatmul.mubr.msk.bf16.gmra.mrb[12].mxu0 %vm720_vm3, %v5432_v50  ;;  %v2737_v50 = vrot.slane %v281_v55, 5 }
 0x12d   : > { %4229 = vmatprep.mubr.msk.bf16.mxu1 %vm720_vm3, %v6170_v27  ;;  %4365 = vmatprep.mubr.msk.bf16.mxu0 %vm720_vm3, %v5454_v20  ;;  %v2735_v20 = vsel %vm5146_vm7, %v3707_v37, %v2734_v34 }
 0x134   : > { %4230 = vmatmul.mubr.msk.bf16.vlgmr.msra.gmra.mrb[16].mxu1 %vm720_vm3, %v6171_v6  ;;  %4366 = vmatmul.mubr.msk.bf16.gmra.mrb[16].mxu0 %vm720_vm3, %v5465_v0  ;;  %v2738_v0 = vsel %vm5146_vm7, %v2736_v41, %v2737_v50 }
 0x135   : > { %4233 = vmatprep.mubr.msk.bf16.mxu1 %vm720_vm3, %v6172_v7  ;;  %4369 = vmatprep.mubr.msk.bf16.mxu0 %vm720_vm3, %v5506_v62  ;;  %v3709_v22 = vcombine.low %v2735_v20, %v2738_v0 }
 0x13c   : > { %4234 = vmatmul.mubr.msk.bf16.gmra.mrb[20].mxu1 %vm720_vm3, %v6174_v46  ;;  %4370 = vmatmul.mubr.msk.bf16.gmra.mrb[20].mxu0 %vm720_vm3, %v5533_v31 }
 0x13d   : > { %4237 = vmatprep.mubr.msk.bf16.mxu1 %vm720_vm3, %v6175_v12  ;;  %4373 = vmatprep.mubr.msk.bf16.mxu0 %vm720_vm3, %v5569_v44 }
 0x144   : > { %4238 = vmatmul.mubr.msk.bf16.gmra.mrb[24].mxu1 %vm720_vm3, %v5399_v30  ;;  %4374 = vmatmul.mubr.msk.bf16.gmra.mrb[24].mxu0 %vm720_vm3, %v5579_v1 }
 0x145   : > { %4241 = vmatprep.mubr.msk.bf16.mxu1 %vm720_vm3, %v5426_v63  ;;  %4377 = vmatprep.mubr.msk.bf16.mxu0 %vm720_vm3, %v5598_v19 }
 0x14c   : > { %4242 = vmatmul.mubr.msk.bf16.gmra.mrb[28].mxu1 %vm720_vm3, %v5604_v16  ;;  %4378 = vmatmul.mubr.msk.bf16.gmra.mrb[28].mxu0 %vm720_vm3, %v3709_v22  ;;  %v5859_v16 = vld [vmem:[%s6096_s2] ss:$0 sm:$0xff] }
 0x1c7   : > { %v4181_v30 = vpop.f32.mrb[0].mxu1 }
 0x1c8   : > { %v1698_v57 = vpop.f32.mrb[1].mxu1 }
 0x1c9   : > { %v4182_v62 = vpop.f32.mrb[2].mxu1 }
 0x1ca   : > { %v1701_v5 = vpop.f32.mrb[3].mxu1 }
 0x1cf   : > { %v4185_v63 = vpop.f32.mrb[4].mxu1 }
 0x1d0   : > { %v1714_v49 = vpop.f32.mrb[5].mxu1 }
 0x1d1   : > { %v4186_v54 = vpop.f32.mrb[6].mxu1 }
 0x1d2   : > { %v1717_v36 = vpop.f32.mrb[7].mxu1 }
 0x1d7   : > { %v4189_v45 = vpop.f32.mrb[8].mxu1 }
 0x1d8   : > { %v1730_v31 = vpop.f32.mrb[9].mxu1 }
 0x1d9   : > { %v4190_v29 = vpop.f32.mrb[10].mxu1 }
 0x1da   : > { %v5846_v44 = vpop.f32.mrb[11].mxu1 }
 0x1df   : > { %v5848_v26 = vpop.f32.mrb[12].mxu1 }
 0x1e0   : > { %v5850_v8 = vpop.f32.mrb[13].mxu1 }
 0x1e1   : > { %v5852_v1 = vpop.f32.mrb[14].mxu1 }
 0x1e2   : > { %v5854_v40 = vpop.f32.mrb[15].mxu1 }
 0x1e7   : > { %v4351_v19 = vpop.f32.mrb[0].mxu0 }
 0x1e8   : > { %v4383_v52 = vadd.f32 %v4351_v19, %v4181_v30  ;;  %v2784_v3 = vpop.f32.mrb[1].mxu0 }
 0x1e9   : > { %v4384_v11 = vadd.f32 %v2784_v3, %v1698_v57  ;;  %v4352_v21 = vpop.f32.mrb[2].mxu0 }
 0x1ea   : > { %v2952_v13 = vmul.f32 %v4383_v52, %v5859_v16  ;;  %v4385_v24 = vadd.f32 %v4352_v21, %v4182_v62  ;;  %v2787_v9 = vpop.f32.mrb[3].mxu0 }
 0x1eb   : > { %v2950_v10 = vmul.f32 %v4384_v11, %v5859_v16  ;;  %v4386_v51 = vadd.f32 %v2787_v9, %v1701_v5 }
 0x1ec   : > { %v5869_v33 = vadd.f32 %v5864_v4, %v2952_v13  ;;  %v2953_v39 = vmul.f32 %v4385_v24, %v5859_v16 }
 0x1ed   : > { %v5873_v58 = vadd.f32 %v5864_v4, %v2950_v10  ;;  %v2951_v42 = vmul.f32 %v4386_v51, %v5859_v16 }
 0x1ee   : > { %v3730_v15 = vmul.f32 -1.442695, %v5869_v33  ;;  %v5878_v27 = vadd.f32 %v5864_v4, %v2953_v39 }
 0x1ef   : > { %v3728_v6 = vmul.f32 -1.442695, %v5873_v58  ;;  %v5882_v7 = vadd.f32 %v5864_v4, %v2951_v42  ;;  %v4355_v60 = vpop.f32.mrb[4].mxu0 }
 0x1f0   : > { %4692 = vpow2.f32 %v3730_v15  ;;  %v3731_v14 = vmul.f32 -1.442695, %v5878_v27  ;;  %v4387_v28 = vadd.f32 %v4355_v60, %v4185_v63  ;;  %v2800_v25 = vpop.f32.mrb[5].mxu0 }
 0x1f1   : > { %4694 = vpow2.f32 %v3728_v6  ;;  %v3729_v38 = vmul.f32 -1.442695, %v5882_v7  ;;  %v4388_v46 = vadd.f32 %v2800_v25, %v1714_v49  ;;  %v4356_v47 = vpop.f32.mrb[6].mxu0 }
 0x1f2   : > { %4696 = vpow2.f32 %v3731_v14  ;;  %v2956_v32 = vmul.f32 %v4387_v28, %v5859_v16  ;;  %v4389_v18 = vadd.f32 %v4356_v47, %v4186_v54  ;;  %v2803_v43 = vpop.f32.mrb[7].mxu0 }
 0x1f3   : > { %4698 = vpow2.f32 %v3729_v38  ;;  %v2954_v55 = vmul.f32 %v4388_v46, %v5859_v16  ;;  %v4390_v12 = vadd.f32 %v2803_v43, %v1717_v36 }
 0x1f4   : > { %v5889_v23 = vadd.f32 %v5864_v4, %v2956_v32  ;;  %v2957_v59 = vmul.f32 %v4389_v18, %v5859_v16 }
 0x1f5   : > { %v5893_v35 = vadd.f32 %v5864_v4, %v2954_v55  ;;  %v2955_v48 = vmul.f32 %v4390_v12, %v5859_v16 }
 0x1f6   : > { %v3734_v2 = vmul.f32 -1.442695, %v5889_v23  ;;  %v5898_v61 = vadd.f32 %v5864_v4, %v2957_v59 }
 0x1f7   : > { %v3732_v56 = vmul.f32 -1.442695, %v5893_v35  ;;  %v5902_v53 = vadd.f32 %v5864_v4, %v2955_v48  ;;  %v4359_v17 = vpop.f32.mrb[8].mxu0 }
 0x1f8   : > { %4700 = vpow2.f32 %v3734_v2  ;;  %v3735_v34 = vmul.f32 -1.442695, %v5898_v61  ;;  %v4391_v37 = vadd.f32 %v4359_v17, %v4189_v45  ;;  %v2816_v41 = vpop.f32.mrb[9].mxu0 }
 0x1f9   : > { %4702 = vpow2.f32 %v3732_v56  ;;  %v3733_v50 = vmul.f32 -1.442695, %v5902_v53  ;;  %v4392_v20 = vadd.f32 %v2816_v41, %v1730_v31  ;;  %v4360_v0 = vpop.f32.mrb[10].mxu0 }
 0x1fa   : > { %v4693_v22 = vpop.eup %4692  ;;  %4704 = vpow2.f32 %v3735_v34  ;;  %v2960_v30 = vmul.f32 %v4391_v37, %v5859_v16  ;;  %v4393_v57 = vadd.f32 %v4360_v0, %v4190_v29  ;;  %v2819_v62 = vpop.f32.mrb[11].mxu0 }
 0x1fb   : > { %v4695_v5 = vpop.eup %4694  ;;  %v3119_v63 = vadd.f32 1.0, %v4693_v22  ;;  %4706 = vpow2.f32 %v3733_v50  ;;  %v2958_v49 = vmul.f32 %v4392_v20, %v5859_v16  ;;  %v4394_v54 = vadd.f32 %v2819_v62, %v5846_v44 }
 0x1fc   : > { %v4697_v36 = vpop.eup %4696  ;;  %v3117_v45 = vadd.f32 1.0, %v4695_v5  ;;  %v5910_v19 = vadd.f32 %v5864_v4, %v2960_v30  ;;  %v2961_v31 = vmul.f32 %v4393_v57, %v5859_v16 }
 0x1fd   : > { %v4699_v52 = vpop.eup %4698  ;;  %4708 = vrcp.f32 %v3119_v63  ;;  %v3120_v3 = vadd.f32 1.0, %v4697_v36  ;;  %v5914_v29 = vadd.f32 %v5864_v4, %v2958_v49  ;;  %v2959_v11 = vmul.f32 %v4394_v54, %v5859_v16 }
 0x1fe   : > { %4710 = vrcp.f32 %v3117_v45  ;;  %v3118_v21 = vadd.f32 1.0, %v4699_v52  ;;  %v3738_v13 = vmul.f32 -1.442695, %v5910_v19  ;;  %v5919_v44 = vadd.f32 %v5864_v4, %v2961_v31 }
 0x1ff   : > { %4712 = vrcp.f32 %v3120_v3  ;;  %v3736_v24 = vmul.f32 -1.442695, %v5914_v29  ;;  %v5923_v9 = vadd.f32 %v5864_v4, %v2959_v11  ;;  %v4363_v10 = vpop.f32.mrb[12].mxu0 }
 0x200   : > { %4714 = vrcp.f32 %v3118_v21  ;;  %v3739_v51 = vmul.f32 -1.442695, %v5919_v44  ;;  %v4395_v39 = vadd.f32 %v4363_v10, %v5848_v26  ;;  %v2832_v42 = vpop.f32.mrb[13].mxu0 }
 0x201   : > { %4716 = vpow2.f32 %v3738_v13  ;;  %v3737_v15 = vmul.f32 -1.442695, %v5923_v9  ;;  %v4396_v6 = vadd.f32 %v2832_v42, %v5850_v8  ;;  %v4364_v60 = vpop.f32.mrb[14].mxu0 }
 0x202   : > { %v4701_v14 = vpop.eup %4700  ;;  %4718 = vpow2.f32 %v3736_v24  ;;  %v2964_v28 = vmul.f32 %v4395_v39, %v5859_v16  ;;  %v4397_v25 = vadd.f32 %v4364_v60, %v5852_v1  ;;  %v2835_v38 = vpop.f32.mrb[15].mxu0 }
 0x203   : > { %v4703_v46 = vpop.eup %4702  ;;  %v3123_v47 = vadd.f32 1.0, %v4701_v14  ;;  %4720 = vpow2.f32 %v3739_v51  ;;  %v2962_v32 = vmul.f32 %v4396_v6, %v5859_v16  ;;  %v4398_v26 = vadd.f32 %v2835_v38, %v5854_v40 }
 0x204   : > { %v4705_v18 = vpop.eup %4704  ;;  %v3121_v43 = vadd.f32 1.0, %v4703_v46  ;;  %4722 = vpow2.f32 %v3737_v15  ;;  %v5934_v8 = vadd.f32 %v5864_v4, %v2964_v28  ;;  %v2965_v55 = vmul.f32 %v4397_v25, %v5859_v16 }
 0x205   : > { %v4707_v12 = vpop.eup %4706  ;;  %4724 = vrcp.f32 %v3123_v47  ;;  %v3124_v1 = vadd.f32 1.0, %v4705_v18  ;;  %v5938_v59 = vadd.f32 %v5864_v4, %v2962_v32  ;;  %v2963_v48 = vmul.f32 %v4398_v26, %v5859_v16 }
 0x206   : > { %4726 = vrcp.f32 %v3121_v43  ;;  %v3122_v2 = vadd.f32 1.0, %v4707_v12  ;;  %v3742_v40 = vmul.f32 -1.442695, %v5934_v8  ;;  %v5943_v56 = vadd.f32 %v5864_v4, %v2965_v55 }
 0x207   : > { %v4709_v17 = vpop.eup %4708  ;;  %4728 = vrcp.f32 %v3124_v1  ;;  %v3740_v34 = vmul.f32 -1.442695, %v5938_v59  ;;  %v5947_v37 = vadd.f32 %v5864_v4, %v2963_v48  ;;  %v4231_v41 = vpop.f32.mrb[16].mxu1 }
 0x208   : > { %v4367_v50 = vpop.f32.mrb[16].mxu0  ;;  %v4711_v20 = vpop.eup %4710  ;;  %v3215_v0 = vmul.f32 %v4709_v17, %v5869_v33  ;;  %4730 = vrcp.f32 %v3122_v2  ;;  %v3743_v22 = vmul.f32 -1.442695, %v5943_v56 }
 0x209   : > { %v4399_v30 = vadd.f32 %v4367_v50, %v4231_v41  ;;  %v1990_v57 = vpop.f32.mrb[17].mxu1  ;;  %v2848_v62 = vpop.f32.mrb[17].mxu0  ;;  %v3213_v63 = vmul.f32 %v4711_v20, %v5873_v58  ;;  %4732 = vpow2.f32 %v3742_v40  ;;  %v3741_v49 = vmul.f32 -1.442695, %v5947_v37 }
 0x20a   : > { %v4713_v5 = vpop.eup %4712  ;;  %v4400_v54 = vadd.f32 %v2848_v62, %v1990_v57  ;;  %v4232_v36 = vpop.f32.mrb[18].mxu1  ;;  %4734 = vpow2.f32 %v3740_v34 }
 0x20b   : > { %v4368_v45 = vpop.f32.mrb[18].mxu0  ;;  %v4715_v31 = vpop.eup %4714  ;;  %v3216_v52 = vmul.f32 %v4713_v5, %v5878_v27  ;;  %v2968_v33 = vmul.f32 %v4399_v30, %v5859_v16  ;;  %4736 = vpow2.f32 %v3743_v22 }
 0x20c   : > { %v4401_v3 = vadd.f32 %v4368_v45, %v4232_v36  ;;  %v1993_v11 = vpop.f32.mrb[19].mxu1  ;;  %v2851_v21 = vpop.f32.mrb[19].mxu0  ;;  %v3214_v58 = vmul.f32 %v4715_v31, %v5882_v7  ;;  %v2966_v24 = vmul.f32 %v4400_v54, %v5859_v16  ;;  %4738 = vpow2.f32 %v3741_v49 }
 0x20d   : > { %v4717_v13 = vpop.eup %4716  ;;  %v4402_v10 = vadd.f32 %v2851_v21, %v1993_v11  ;;  %v3835_v51 = vpack.c.bf16 %v3216_v52, %v3215_v0  ;;  %v5964_v42 = vadd.f32 %v5864_v4, %v2968_v33 }
 0x20e   : > { %v4719_v27 = vpop.eup %4718  ;;  %v3127_v39 = vadd.f32 1.0, %v4717_v13  ;;  %v3830_v6 = vpack.c.bf16 %v3214_v58, %v3213_v63  ;;  %v5967_v14 = vadd.f32 %v5864_v4, %v2966_v24  ;;  %v2969_v7 = vmul.f32 %v4401_v3, %v5859_v16 }
 0x20f   : > { %v4721_v15 = vpop.eup %4720  ;;  %v3125_v60 = vadd.f32 1.0, %v4719_v27  ;;  %3907 = vst [vmem:[%s5959_s27 + $0x8] sm:$0xff] %v3835_v51   ;;  %v3746_v38 = vmul.f32 -1.442695, %v5964_v42  ;;  %v2967_v46 = vmul.f32 %v4402_v10, %v5859_v16  ;;  %v4235_v43 = vpop.f32.mrb[20].mxu1 }
 0x210   : > { %v4723_v28 = vpop.eup %4722  ;;  %4740 = vrcp.f32 %v3127_v39  ;;  %v3128_v25 = vadd.f32 1.0, %v4721_v15  ;;  %3831 = vst [vmem:[%s5959_s27] sm:$0xff] %v3830_v6   ;;  %v3744_v26 = vmul.f32 -1.442695, %v5967_v14  ;;  %v5976_v18 = vadd.f32 %v5864_v4, %v2969_v7  ;;  %v4371_v55 = vpop.f32.mrb[20].mxu0 }
 0x211   : > { %v4725_v47 = vpop.eup %4724  ;;  %4742 = vrcp.f32 %v3125_v60  ;;  %v3126_v32 = vadd.f32 1.0, %v4723_v28  ;;  %v5980_v48 = vadd.f32 %v5864_v4, %v2967_v46  ;;  %v4403_v2 = vadd.f32 %v4371_v55, %v4235_v43  ;;  %v2006_v40 = vpop.f32.mrb[21].mxu1 }
 0x212   : > { %v4727_v12 = vpop.eup %4726  ;;  %v3219_v1 = vmul.f32 %v4725_v47, %v5889_v23  ;;  %4744 = vrcp.f32 %v3128_v25  ;;  %v2864_v17 = vpop.f32.mrb[21].mxu0  ;;  %v3747_v50 = vmul.f32 -1.442695, %v5976_v18 }
 0x213   : > { %v4729_v34 = vpop.eup %4728  ;;  %v3217_v41 = vmul.f32 %v4727_v12, %v5893_v35  ;;  %4746 = vrcp.f32 %v3126_v32  ;;  %v4404_v20 = vadd.f32 %v2864_v17, %v2006_v40  ;;  %v4236_v0 = vpop.f32.mrb[22].mxu1  ;;  %v3745_v23 = vmul.f32 -1.442695, %v5980_v48 }
 0x214   : > { %v4372_v22 = vpop.f32.mrb[22].mxu0  ;;  %v4731_v30 = vpop.eup %4730  ;;  %v3220_v57 = vmul.f32 %v4729_v34, %v5898_v61  ;;  %4748 = vpow2.f32 %v3746_v38  ;;  %v2972_v62 = vmul.f32 %v4403_v2, %v5859_v16 }
 0x215   : > { %v2009_v5 = vpop.f32.mrb[23].mxu1  ;;  %v2867_v63 = vpop.f32.mrb[23].mxu0  ;;  %v3218_v35 = vmul.f32 %v4731_v30, %v5902_v53  ;;  %4750 = vpow2.f32 %v3744_v26  ;;  %v2970_v54 = vmul.f32 %v4404_v20, %v5859_v16  ;;  %v4405_v36 = vadd.f32 %v4372_v22, %v4236_v0 }
 0x216   : > { %v4733_v49 = vpop.eup %4732  ;;  %v3845_v31 = vpack.c.bf16 %v3220_v57, %v3219_v1  ;;  %4752 = vpow2.f32 %v3747_v50  ;;  %v5990_v61 = vadd.f32 %v5864_v4, %v2972_v62  ;;  %v4406_v51 = vadd.f32 %v2867_v63, %v2009_v5 }
 0x217   : > { %v4735_v45 = vpop.eup %4734  ;;  %v3131_v52 = vadd.f32 1.0, %v4733_v49  ;;  %v3840_v3 = vpack.c.bf16 %v3218_v35, %v3217_v41  ;;  %4754 = vpow2.f32 %v3745_v23  ;;  %v5993_v21 = vadd.f32 %v5864_v4, %v2970_v54  ;;  %v4239_v39 = vpop.f32.mrb[24].mxu1 }
 0x218   : > { %v4737_v33 = vpop.eup %4736  ;;  %v3129_v11 = vadd.f32 1.0, %v4735_v45  ;;  %3909 = vst [vmem:[%s5959_s27 + $0x18] sm:$0xff] %v3845_v31   ;;  %v3750_v58 = vmul.f32 -1.442695, %v5990_v61  ;;  %v2973_v24 = vmul.f32 %v4405_v36, %v5859_v16  ;;  %v4375_v15 = vpop.f32.mrb[24].mxu0  ;;  %v2971_v47 = vmul.f32 %v4406_v51, %v5859_v16 }
 0x219   : > { %v4739_v53 = vpop.eup %4738  ;;  %4756 = vrcp.f32 %v3131_v52  ;;  %v3132_v13 = vadd.f32 1.0, %v4737_v33  ;;  %3908 = vst [vmem:[%s5959_s27 + $0x10] sm:$0xff] %v3840_v3   ;;  %v3748_v27 = vmul.f32 -1.442695, %v5993_v21  ;;  %v4407_v7 = vadd.f32 %v4375_v15, %v4239_v39  ;;  %v2022_v28 = vpop.f32.mrb[25].mxu1 }
 0x21a   : > { %4758 = vrcp.f32 %v3129_v11  ;;  %v3130_v10 = vadd.f32 1.0, %v4739_v53  ;;  %v4741_v6 = vpop.eup %4740  ;;  %v6001_v60 = vadd.f32 %v5864_v4, %v2973_v24  ;;  %v2880_v25 = vpop.f32.mrb[25].mxu0 }
 0x21b   : > { %4760 = vrcp.f32 %v3132_v13  ;;  %v4743_v38 = vpop.eup %4742  ;;  %v3223_v46 = vmul.f32 %v4741_v6, %v5910_v19  ;;  %v4408_v32 = vadd.f32 %v2880_v25, %v2022_v28  ;;  %v4240_v26 = vpop.f32.mrb[26].mxu1  ;;  %v2976_v2 = vmul.f32 %v4407_v7, %v5859_v16 }
 0x21c   : > { %4762 = vrcp.f32 %v3130_v10  ;;  %v4376_v43 = vpop.f32.mrb[26].mxu0  ;;  %v4745_v55 = vpop.eup %4744  ;;  %v3221_v12 = vmul.f32 %v4743_v38, %v5914_v29  ;;  %v3751_v1 = vmul.f32 -1.442695, %v6001_v60  ;;  %v6010_v19 = vadd.f32 %v5864_v4, %v2971_v47 }
 0x21d   : > { %4764 = vpow2.f32 %v3750_v58  ;;  %v2025_v40 = vpop.f32.mrb[27].mxu1  ;;  %v2883_v17 = vpop.f32.mrb[27].mxu0  ;;  %v3224_v41 = vmul.f32 %v4745_v55, %v5919_v44  ;;  %v2974_v50 = vmul.f32 %v4408_v32, %v5859_v16  ;;  %v6015_v0 = vadd.f32 %v5864_v4, %v2976_v2 }
 0x21e   : > { %v4747_v34 = vpop.eup %4746  ;;  %4766 = vpow2.f32 %v3748_v27  ;;  %v4409_v22 = vadd.f32 %v4376_v43, %v4240_v26  ;;  %v3749_v44 = vmul.f32 -1.442695, %v6010_v19  ;;  %v4410_v31 = vadd.f32 %v2883_v17, %v2025_v40 }
 0x21f   : > { %v4749_v20 = vpop.eup %4748  ;;  %v3222_v29 = vmul.f32 %v4747_v34, %v5923_v9  ;;  %4768 = vpow2.f32 %v3751_v1  ;;  %v3855_v57 = vpack.c.bf16 %v3224_v41, %v3223_v46  ;;  %v6019_v62 = vadd.f32 %v5864_v4, %v2974_v50  ;;  %v4243_v52 = vpop.f32.mrb[28].mxu1 }
 0x220   : > { %v4751_v30 = vpop.eup %4750  ;;  %v3135_v23 = vadd.f32 1.0, %v4749_v20  ;;  %v3754_v35 = vmul.f32 -1.442695, %v6015_v0  ;;  %v2977_v9 = vmul.f32 %v4409_v22, %v5859_v16  ;;  %v4379_v33 = vpop.f32.mrb[28].mxu0  ;;  %v2975_v51 = vmul.f32 %v4410_v31, %v5859_v16 }
 0x221   : > { %v4753_v5 = vpop.eup %4752  ;;  %v3850_v63 = vpack.c.bf16 %v3222_v29, %v3221_v12  ;;  %v3133_v49 = vadd.f32 1.0, %v4751_v30  ;;  %3911 = vst [vmem:[%s5959_s27 + $0x28] sm:$0xff] %v3855_v57   ;;  %v3752_v45 = vmul.f32 -1.442695, %v6019_v62  ;;  %v4411_v13 = vadd.f32 %v4379_v33, %v4243_v52  ;;  %v2038_v58 = vpop.f32.mrb[29].mxu1 }
 0x222   : > { %v4755_v54 = vpop.eup %4754  ;;  %4770 = vrcp.f32 %v3135_v23  ;;  %v3136_v36 = vadd.f32 1.0, %v4753_v5  ;;  %v6027_v53 = vadd.f32 %v5864_v4, %v2977_v9  ;;  %v2896_v24 = vpop.f32.mrb[29].mxu0 }
 0x223   : > { %v4757_v3 = vpop.eup %4756  ;;  %3910 = vst [vmem:[%s5959_s27 + $0x20] sm:$0xff] %v3850_v63   ;;  %4772 = vrcp.f32 %v3133_v49  ;;  %v3134_v11 = vadd.f32 1.0, %v4755_v54  ;;  %v4412_v39 = vadd.f32 %v2896_v24, %v2038_v58  ;;  %v4244_v15 = vpop.f32.mrb[30].mxu1  ;;  %v2980_v38 = vmul.f32 %v4411_v13, %v5859_v16 }
 0x224   : > { %v4759_v10 = vpop.eup %4758  ;;  %v3227_v27 = vmul.f32 %v4757_v3, %v5934_v8  ;;  %4774 = vrcp.f32 %v3136_v36  ;;  %v4380_v6 = vpop.f32.mrb[30].mxu0  ;;  %v3755_v25 = vmul.f32 -1.442695, %v6027_v53  ;;  %v6036_v8 = vadd.f32 %v5864_v4, %v2975_v51 }
 0x225   : > { %v4761_v7 = vpop.eup %4760  ;;  %v3225_v28 = vmul.f32 %v4759_v10, %v5938_v59  ;;  %4776 = vrcp.f32 %v3134_v11  ;;  %v2041_v46 = vpop.f32.mrb[31].mxu1  ;;  %v2978_v43 = vmul.f32 %v4412_v39, %v5859_v16  ;;  %v6041_v12 = vadd.f32 %v5864_v4, %v2980_v38 }
 0x226   : > { %v2899_v47 = vpop.f32.mrb[31].mxu0  ;;  %v4763_v32 = vpop.eup %4762  ;;  %v3228_v26 = vmul.f32 %v4761_v7, %v5943_v56  ;;  %4778 = vpow2.f32 %v3749_v44  ;;  %v4413_v1 = vadd.f32 %v4380_v6, %v4244_v15  ;;  %v3753_v41 = vmul.f32 -1.442695, %v6036_v8 }
 0x227   : > { %v4765_v55 = vpop.eup %4764  ;;  %v3226_v59 = vmul.f32 %v4763_v32, %v5947_v37  ;;  %4780 = vpow2.f32 %v3754_v35  ;;  %v3758_v50 = vmul.f32 -1.442695, %v6041_v12  ;;  %v6047_v20 = vadd.f32 %v5864_v4, %v2978_v43 }
 0x228   : > { %v4767_v2 = vpop.eup %4766  ;;  %v3865_v40 = vpack.c.bf16 %v3228_v26, %v3227_v27  ;;  %v3139_v17 = vadd.f32 1.0, %v4765_v55  ;;  %4782 = vpow2.f32 %v3752_v45  ;;  %v2981_v29 = vmul.f32 %v4413_v1, %v5859_v16 }
 0x229   : > { %v4769_v56 = vpop.eup %4768  ;;  %v3860_v34 = vpack.c.bf16 %v3226_v59, %v3225_v28  ;;  %4784 = vpow2.f32 %v3755_v25  ;;  %v3137_v22 = vadd.f32 1.0, %v4767_v2  ;;  %v4414_v30 = vadd.f32 %v2899_v47, %v2041_v46 }
 0x22a   : > { %3913 = vst [vmem:[%s5959_s27 + $0x38] sm:$0xff] %v3865_v40   ;;  %4786 = vrcp.f32 %v3139_v17  ;;  %v3140_v37 = vadd.f32 1.0, %v4769_v56  ;;  %v6052_v23 = vadd.f32 %v5864_v4, %v2981_v29  ;;  %v3756_v5 = vmul.f32 -1.442695, %v6047_v20 }
 0x22b   : > { %3912 = vst [vmem:[%s5959_s27 + $0x30] sm:$0xff] %v3860_v34   ;;  %v2979_v63 = vmul.f32 %v4414_v30, %v5859_v16 }
 0x22c   : > { %v4771_v57 = vpop.eup %4770  ;;  %4788 = vrcp.f32 %v3140_v37  ;;  %v3759_v35 = vmul.f32 -1.442695, %v6052_v23 }
 0x22d   : > { %v4773_v44 = vpop.eup %4772  ;;  %4790 = vpow2.f32 %v3753_v41  ;;  %v3231_v54 = vmul.f32 %v4771_v57, %v5964_v42  ;;  %v6060_v45 = vadd.f32 %v5864_v4, %v2979_v63 }
 0x22e   : > { %v4775_v49 = vpop.eup %4774  ;;  %4792 = vpow2.f32 %v3758_v50  ;;  %v3229_v52 = vmul.f32 %v4773_v44, %v5967_v14 }
 0x22f   : > { %v4777_v9 = vpop.eup %4776  ;;  %v3232_v36 = vmul.f32 %v4775_v49, %v5976_v18  ;;  %4794 = vrcp.f32 %v3137_v22  ;;  %v3757_v4 = vmul.f32 -1.442695, %v6060_v45 }
 0x230   : > { %v4779_v31 = vpop.eup %4778  ;;  %v3230_v16 = vmul.f32 %v4777_v9, %v5980_v48  ;;  %4796 = vpow2.f32 %v3759_v35 }
 0x231   : > { %v4781_v33 = vpop.eup %4780  ;;  %v3875_v3 = vpack.c.bf16 %v3232_v36, %v3231_v54  ;;  %v3138_v11 = vadd.f32 1.0, %v4779_v31  ;;  %4798 = vpow2.f32 %v3756_v5 }
 0x232   : > { %v4783_v13 = vpop.eup %4782  ;;  %v3870_v42 = vpack.c.bf16 %v3230_v16, %v3229_v52  ;;  %v3143_v58 = vadd.f32 1.0, %v4781_v33 }
 0x233   : > { %v4785_v24 = vpop.eup %4784  ;;  %3915 = vst [vmem:[%s5959_s27 + $0x48] sm:$0xff] %v3875_v3   ;;  %4800 = vrcp.f32 %v3138_v11  ;;  %v3141_v10 = vadd.f32 1.0, %v4783_v13 }
 0x234   : > { %v4787_v18 = vpop.eup %4786  ;;  %3914 = vst [vmem:[%s5959_s27 + $0x40] sm:$0xff] %v3870_v42   ;;  %4802 = vrcp.f32 %v3143_v58  ;;  %v3144_v14 = vadd.f32 1.0, %v4785_v24 }
 0x235   : > { %v3235_v51 = vmul.f32 %v4787_v18, %v5990_v61 }
 0x236   : > { %v4789_v48 = vpop.eup %4788  ;;  %4804 = vrcp.f32 %v3144_v14 }
 0x237   : > { %v4791_v27 = vpop.eup %4790  ;;  %v3236_v39 = vmul.f32 %v4789_v48, %v6001_v60  ;;  %4806 = vpow2.f32 %v3757_v4 }
 0x238   : > { %v4793_v15 = vpop.eup %4792  ;;  %4808 = vrcp.f32 %v3141_v10  ;;  %v3142_v6 = vadd.f32 1.0, %v4791_v27 }
 0x239   : > { %v4795_v7 = vpop.eup %4794  ;;  %v3885_v28 = vpack.c.bf16 %v3236_v39, %v3235_v51  ;;  %v3147_v25 = vadd.f32 1.0, %v4793_v15 }
 0x23a   : > { %v4797_v38 = vpop.eup %4796  ;;  %4810 = vrcp.f32 %v3142_v6  ;;  %v3233_v61 = vmul.f32 %v4795_v7, %v5993_v21 }
 0x23b   : > { %v4799_v46 = vpop.eup %4798  ;;  %3917 = vst [vmem:[%s5959_s27 + $0x58] sm:$0xff] %v3885_v28   ;;  %4812 = vrcp.f32 %v3147_v25  ;;  %v3148_v47 = vadd.f32 1.0, %v4797_v38 }
 0x23c   : > { %v3145_v43 = vadd.f32 1.0, %v4799_v46 }
 0x23d   : > { %v4801_v32 = vpop.eup %4800  ;;  %4814 = vrcp.f32 %v3148_v47 }
 0x23e   : > { %v4803_v26 = vpop.eup %4802  ;;  %v3234_v60 = vmul.f32 %v4801_v32, %v6010_v19  ;;  %4816 = vrcp.f32 %v3145_v43 }
 0x23f   : > { %v3239_v2 = vmul.f32 %v4803_v26, %v6015_v0 }
 0x240   : > { %v4805_v55 = vpop.eup %4804  ;;  %v3880_v59 = vpack.c.bf16 %v3234_v60, %v3233_v61 }
 0x241   : > { %v4807_v1 = vpop.eup %4806  ;;  %v3240_v40 = vmul.f32 %v4805_v55, %v6027_v53 }
 0x242   : > { %v4809_v17 = vpop.eup %4808  ;;  %3916 = vst [vmem:[%s5959_s27 + $0x50] sm:$0xff] %v3880_v59   ;;  %v3146_v56 = vadd.f32 1.0, %v4807_v1 }
 0x243   : > { %v3895_v34 = vpack.c.bf16 %v3240_v40, %v3239_v2  ;;  %v3237_v19 = vmul.f32 %v4809_v17, %v6019_v62 }
 0x244   : > { %v4811_v41 = vpop.eup %4810  ;;  %4818 = vrcp.f32 %v3146_v56 }
 0x245   : > { %v4813_v21 = vpop.eup %4812  ;;  %3919 = vst [vmem:[%s5959_s27 + $0x68] sm:$0xff] %v3895_v34   ;;  %v3238_v50 = vmul.f32 %v4811_v41, %v6036_v8 }
 0x246   : > { %v3243_v53 = vmul.f32 %v4813_v21, %v6041_v12 }
 0x247   : > { %v4815_v37 = vpop.eup %4814  ;;  %v3890_v0 = vpack.c.bf16 %v3238_v50, %v3237_v19 }
 0x248   : > { %v3244_v29 = vmul.f32 %v4815_v37, %v6052_v23  ;;  %v4817_v30 = vpop.eup %4816 }
 0x249   : > { %3918 = vst [vmem:[%s5959_s27 + $0x60] sm:$0xff] %v3890_v0   ;;  %v3241_v44 = vmul.f32 %v4817_v30, %v6047_v20 }
 0x24a   : > { %v3905_v22 = vpack.c.bf16 %v3244_v29, %v3243_v53 }
 0x24c   : > { %3921 = vst [vmem:[%s5959_s27 + $0x78] sm:$0xff] %v3905_v22  }
 0x24e   : > { %v4819_v57 = vpop.eup %4818 }
 0x24f   : > { %v3242_v5 = vmul.f32 %v4819_v57, %v6060_v45 }
 0x251   : > { %v3900_v63 = vpack.c.bf16 %v3242_v5, %v3241_v44 }
 0x253   : > { %3920 = vst [vmem:[%s5959_s27 + $0x70] sm:$0xff] %v3900_v63  }
 0x254 PF: > { %s14_s17 = sadd.s32 1, %s4846_s17   ;;  %s6176_s15 = smov %s4842_s16 }
 0x255   : > { %p11_p5 = scmp.ge.s32.totalorder %s14_s17, 4   ;;  %s6177_s16 = smov %s6179_s18 }
 0x257   :  { %13 = sbr.rel (!%p11_p5) target bundleno = 2 (0x2), region = 75 }

// kernel: bottleneck_forward.3
= control target key start
LH: loop header
LB: loop body
LE: loop exit
PB: predicated region body
PF: predicated region fallthrough
CT: control target
= control target key end

     0   :  { %s5501_s18 = smov 0   ;;  %s5503_s19 = smov 0   ;;  %s6806_s0 = inlined_call_operand.vmem [shape: bf16[2,18,18,128], index: 0, kind: input, shape index: {}]   ;;  %s6807_s1 = inlined_call_operand.vmem [shape: bf16[9,128,128], index: 1, kind: input, shape index: {}]   ;;  %s6808_s2 = inlined_call_operand.vmem [shape: f32[1,128], index: 2, kind: input, shape index: {}]   ;;  %s6809_s3 = inlined_call_operand.vmem [shape: f32[1,128], index: 3, kind: input, shape index: {}]   ;;  %s6810_s4 = inlined_call_operand.vmem [shape: f32[2,16,16,128], index: 4, kind: input, shape index: {}]   ;;  %s6811_s5 = inlined_call_operand.vmem [shape: f32[2,16,16,128], index: 5, kind: output, shape index: {}]  }
   0x1   :  { %s5505_s20 = smov 0  }
   0x2 LB: > { %s27_s21 = sadd.s32 1, %s5465_s19  ;;  %p3951_p0 = scmp.ge.s32.totalorder %s5469_s20, 1  ;;  %s5469_s20 = sphi %s5505_s20, %s15_s20   ;;  %s5465_s19 = sphi %s5503_s19, %s6856_s19   ;;  %s5461_s18 = sphi %s5501_s18, %s6855_s18  }
   0x3   : > { %p29_p1 = scmp.ge.s32.totalorder %s27_s21, 2  ;;  %p219_p2 = scmp.lt.s32.totalorder %s5469_s20, 3 }
   0x5   : > { %s6858_s21 = smov (%p29_p1, %s27_s21), 0  ;;  %p220_p3 = pnand %p3951_p0, %p219_p2 }
   0x7   : > { %223 = sbr.rel (%p220_p3) target bundleno = 599 (0x257), region = 40 }
   0xe   : > { %v5212_v0 = vld [vmem:[%s6807_s1 + $0x40] sm:$0xff]   ;;  %p262_p4 = scmp.lt.s32.totalorder %s5461_s18, 1  ;;  %v5214_v2 = vld [vmem:[%s6807_s1 + $0x48] sm:$0xff]   ;;  %v5216_v4 = vld [vmem:[%s6807_s1 + $0x50] sm:$0xff]   ;;  %vm364_vm0 = vsmask.f32 3328 }
   0xf   : > { %v5213_v1 = vld [vmem:[%s6807_s1 + $0x100] sm:$0xff]   ;;  %4483 = vmatprep.subr.bf16.mxu1 %v5212_v0  ;;  %v5215_v3 = vld [vmem:[%s6807_s1 + $0x108] sm:$0xff]   ;;  %v5217_v5 = vld [vmem:[%s6807_s1 + $0x110] sm:$0xff]   ;;  %vm365_vm1 = vsmask.f32 7440  ;;  %vm1362_vm3 = vcmask 1042432  }
  0x10   : > { %4675 = vmatprep.subr.bf16.mxu0 %v5213_v1  ;;  %4484 = vmatpush3.bf16.msra.mxu1 %v5212_v0  ;;  %s6860_s18 = smov (!%p262_p4, %s5461_s18), 1  ;;  %v5218_v6 = vld [vmem:[%s6807_s1 + $0x58] sm:$0xff]   ;;  %v5220_v8 = vld [vmem:[%s6807_s1 + $0x60] sm:$0xff]   ;;  %v5222_v10 = vld [vmem:[%s6807_s1 + $0x68] sm:$0xff]   ;;  %vm1363_vm4 = vcmask 1046532  }
  0x11   : > { %4676 = vmatpush3.bf16.msra.mxu0 %v5213_v1  ;;  %4485 = vmatprep.subr.bf16.mxu1 %v5214_v2  ;;  %v5219_v7 = vld [vmem:[%s6807_s1 + $0x118] sm:$0xff]   ;;  %s5187_s13 = smul.u32 216, %s6860_s18  ;;  %v5221_v9 = vld [vmem:[%s6807_s1 + $0x120] sm:$0xff]   ;;  %v5223_v11 = vld [vmem:[%s6807_s1 + $0x128] sm:$0xff]   ;;  %s4265_s28 = sshll.u32 %s6860_s18, 8 }
  0x12   : > { %4677 = vmatprep.subr.bf16.mxu0 %v5215_v3  ;;  %v5224_v17 = vld [vmem:[%s6807_s1 + $0x70] sm:$0xff]   ;;  %v5226_v36 = vld [vmem:[%s6807_s1 + $0x78] sm:$0xff]   ;;  %vm5600_vm2 = vmor %vm364_vm0, %vm365_vm1  ;;  %s6594_s6 = scalar_lea.vmem %s6810_s4, %s4265_s28  ;;  %s6621_s9 = scalar_lea.vmem %s6811_s5, %s4265_s28 }
  0x13   : > { %s5555_s24 = scalar_lea.vmem %s6806_s0, %s5187_s13  ;;  %v5225_v31 = vld [vmem:[%s6807_s1 + $0x130] sm:$0xff]   ;;  %v5227_v53 = vld [vmem:[%s6807_s1 + $0x138] sm:$0xff]   ;;  %v5228_v1 = vld [vmem:[%s6807_s1] sm:$0xff]  }
  0x14   : > { %4486 = vmatpush3.bf16.msra.mxu1 %v5214_v2  ;;  %v5564_v12 = vld [vmem:[%s5555_s24] sm:$0xf]  ;;  %v5567_v13 = vld [vmem:[%s5555_s24 + $0x4] sm:$0xf]  ;;  %v296_v14 = vld [vmem:[%s5555_s24 + $0x8] sm:$0x1] }
  0x15   : > { %4678 = vmatpush3.bf16.msra.mxu0 %v5215_v3  ;;  %4487 = vmatprep.subr.bf16.mxu1 %v5216_v4  ;;  %v368_v15 = vshrl.u32 %v5564_v12, 16  ;;  %v371_v16 = vshll.u32 %v5564_v12, 16  ;;  %v377_v18 = vshll.u32 %v5567_v13, 16  ;;  %v381_v19 = vshrl.u32 %v5567_v13, 16  ;;  %v5578_v21 = vld [vmem:[%s5555_s24 + $0xc] sm:$0xf]  ;;  %vm5807_vm5 = vmor %vm1362_vm3, %vm1363_vm4 }
  0x16   : > { %4679 = vmatprep.subr.bf16.mxu0 %v5217_v5  ;;  %v387_v20 = vshll.u32 %v296_v14, 16  ;;  %v5581_v24 = vld [vmem:[%s5555_s24 + $0x10] sm:$0xf]  ;;  %v5584_v25 = vld [vmem:[%s5555_s24 + $0x14] sm:$0x1]  ;;  %v392_v30 = vshrl.u32 %v5578_v21, 16 }
  0x17   : > { %v370_v22 = vrot.slane %v368_v15, 4  ;;  %v373_v23 = vrot.slane %v371_v16, 5  ;;  %v379_v27 = vrot.slane %v377_v18, 5  ;;  %v383_v28 = vrot.slane %v381_v19, 4  ;;  %v5606_v41 = vld [vmem:[%s5555_s24 + $0x18] sm:$0xf] }
  0x18   : > { %4488 = vmatpush3.bf16.msra.mxu1 %v5216_v4  ;;  %v389_v29 = vrot.slane %v387_v20, 5  ;;  %v395_v33 = vshll.u32 %v5578_v21, 16  ;;  %v401_v34 = vshll.u32 %v5581_v24, 16  ;;  %v405_v35 = vshrl.u32 %v5581_v24, 16  ;;  %v5609_v42 = vld [vmem:[%s5555_s24 + $0x1c] sm:$0xf] }
  0x19   : > { %4680 = vmatpush3.bf16.msra.mxu0 %v5217_v5  ;;  %4489 = vmatprep.subr.bf16.mxu1 %v5218_v6  ;;  %v374_v32 = vor.u32 %v373_v23, %v370_v22  ;;  %v384_v38 = vor.u32 %v383_v28, %v379_v27  ;;  %v394_v39 = vrot.slane %v392_v30, 4  ;;  %v411_v40 = vshll.u32 %v5584_v25, 16  ;;  %v5616_v48 = vld [vmem:[%s5555_s24 + $0x20] sm:$0x1]  ;;  %v5633_v3 = vld [vmem:[%s5555_s24 + $0x24] sm:$0xf] }
  0x1a   : > { %4681 = vmatprep.subr.bf16.mxu0 %v5219_v7  ;;  %v5613_v43 = vcombine.low %v5578_v21, %v5581_v24  ;;  %v397_v45 = vrot.slane %v395_v33, 5  ;;  %v403_v46 = vrot.slane %v401_v34, 5  ;;  %v407_v47 = vrot.slane %v405_v35, 4  ;;  %v5648_v14 = vld [vmem:[%s5555_s24 + $0x2c] sm:$0x1]  ;;  %v5446_v37 = vld [vmem:[%s6807_s1 + $0x138] sm:$0xff]  }
  0x1b   : > { %v375_v44 = vrot.slane %v374_v32, 4  ;;  %v385_v49 = vrot.slane %v384_v38, 4  ;;  %v413_v50 = vrot.slane %v411_v40, 5  ;;  %v416_v51 = vshrl.u32 %v5606_v41, 16  ;;  %v5653_v22 = vld [vmem:[%s5555_s24 + $0x30] sm:$0xf] }
  0x1c   : > { %4490 = vmatpush3.bf16.msra.mxu1 %v5218_v6  ;;  %v419_v52 = vshll.u32 %v5606_v41, 16  ;;  %v398_v55 = vor.u32 %v397_v45, %v394_v39  ;;  %v408_v56 = vor.u32 %v407_v47, %v403_v46  ;;  %v425_v57 = vshll.u32 %v5609_v42, 16  ;;  %v5658_v30 = vld [vmem:[%s5555_s24 + $0x34] sm:$0xf]  ;;  %v5231_v34 = vld [vmem:[%s6807_s1 + $0x8] sm:$0xff]  }
  0x1d   : > { %4682 = vmatpush3.bf16.msra.mxu0 %v5219_v7  ;;  %4491 = vmatprep.subr.bf16.mxu1 %v5220_v8  ;;  %v380_v54 = vsel %vm5600_vm2, %v375_v44, %v379_v27  ;;  %v390_v58 = vsel %vm5600_vm2, %v385_v49, %v389_v29  ;;  %v418_v59 = vrot.slane %v416_v51, 4  ;;  %v429_v61 = vshrl.u32 %v5609_v42, 16  ;;  %v5667_v35 = vld [vmem:[%s5555_s24 + $0x38] sm:$0x1] }
  0x1e   : > { %4683 = vmatprep.subr.bf16.mxu0 %v5221_v9  ;;  %v421_v60 = vrot.slane %v419_v52, 5  ;;  %v3973_v62 = vcombine.low %v380_v54, %v390_v58  ;;  %v399_v63 = vrot.slane %v398_v55, 4  ;;  %v409_v0 = vrot.slane %v408_v56, 4  ;;  %v5682_v58 = vld [vmem:[%s5555_s24 + $0x3c] sm:$0xf] }
  0x1f   : > { %v427_v2 = vrot.slane %v425_v57, 5  ;;  %v431_v5 = vrot.slane %v429_v61, 4  ;;  %v435_v6 = vshll.u32 %v5616_v48, 16  ;;  %v1384_v7 = vrot.slane %v5616_v48, 5 }
  0x20   : > { %4492 = vmatpush3.bf16.msra.mxu1 %v5220_v8  ;;  %v422_v4 = vor.u32 %v421_v60, %v418_v59  ;;  %v5229_v8 = vld [vmem:[%s6807_s1 + $0x140] sm:$0xff]   ;;  %4499 = vmatprep.mubr.bf16.mxu1 %v3973_v62  ;;  %v440_v15 = vshrl.u32 %v5633_v3, 16  ;;  %v443_v16 = vshll.u32 %v5633_v3, 16  ;;  %v459_v33 = vshll.u32 %v5648_v14, 16  ;;  %v5234_v59 = vld [vmem:[%s6807_s1 + $0x10] sm:$0xff]  }
  0x21   : > { %4684 = vmatpush3.bf16.msra.mxu0 %v5221_v9  ;;  %4493 = vmatprep.subr.bf16.mxu1 %v5222_v10  ;;  %v5641_v9 = vld [vmem:[%s5555_s24 + $0x28] sm:$0xf]  ;;  %v432_v19 = vor.u32 %v431_v5, %v427_v2  ;;  %v437_v20 = vrot.slane %v435_v6, 5  ;;  %v467_v44 = vshll.u32 %v5653_v22, 16  ;;  %v477_v56 = vshrl.u32 %v5658_v30, 16 }
  0x22   : > { %4685 = vmatprep.subr.bf16.mxu0 %v5223_v11  ;;  %v423_v18 = vrot.slane %v422_v4, 4  ;;  %v442_v23 = vrot.slane %v440_v15, 4  ;;  %v445_v27 = vrot.slane %v443_v16, 5  ;;  %v449_v28 = vshll.u32 %v5641_v9, 16  ;;  %v5232_v16 = vld [vmem:[%s6807_s1 + $0x150] sm:$0xff]  }
  0x23   : > { %v453_v29 = vshrl.u32 %v5641_v9, 16  ;;  %v433_v32 = vrot.slane %v432_v19, 4  ;;  %v461_v47 = vrot.slane %v459_v33, 5  ;;  %v469_v54 = vrot.slane %v467_v44, 5  ;;  %v5722_v33 = vld [vmem:[%s5555_s24 + $0x50] sm:$0x1] }
  0x24   : > { %4494 = vmatpush3.bf16.msra.mxu1 %v5222_v10  ;;  %v404_v10 = vsel %vm5600_vm2, %v399_v63, %v403_v46  ;;  %v446_v38 = vor.u32 %v445_v27, %v442_v23  ;;  %v451_v39 = vrot.slane %v449_v28, 5  ;;  %v5230_v46 = vld [vmem:[%s6807_s1 + $0x148] sm:$0xff]   ;;  %v483_v57 = vshll.u32 %v5667_v35, 16 }
  0x25   : > { %4686 = vmatpush3.bf16.msra.mxu0 %v5223_v11  ;;  %4495 = vmatprep.subr.bf16.mxu1 %v5224_v17  ;;  %v414_v11 = vsel %vm5600_vm2, %v409_v0, %v413_v50  ;;  %v455_v40 = vrot.slane %v453_v29, 4  ;;  %v438_v45 = vsel %vm5600_vm2, %v433_v32, %v437_v20  ;;  %v473_v50 = vshll.u32 %v5658_v30, 16  ;;  %v5696_v0 = vld [vmem:[%s5555_s24 + $0x40] sm:$0xf]  ;;  %v5713_v27 = vld [vmem:[%s5555_s24 + $0x48] sm:$0xf] }
  0x26   : > { %4687 = vmatprep.subr.bf16.mxu0 %v5225_v31  ;;  %v447_v52 = vrot.slane %v446_v38, 4  ;;  %v5689_v60 = vcombine.low %v5606_v41, %v5609_v42  ;;  %v479_v4 = vrot.slane %v477_v56, 4  ;;  %v485_v5 = vrot.slane %v483_v57, 5  ;;  %v5716_v28 = vld [vmem:[%s5555_s24 + $0x4c] sm:$0xf] }
  0x27   : > { %v475_v55 = vrot.slane %v473_v50, 5  ;;  %v491_v6 = vshll.u32 %v5682_v58, 16  ;;  %v521_v44 = vshll.u32 %v5716_v28, 16  ;;  %v525_v50 = vshrl.u32 %v5716_v28, 16 }
  0x28   : > { %4496 = vmatpush3.bf16.msra.mxu1 %v5224_v17  ;;  %v3974_v17 = vcombine.low %v404_v10, %v414_v11  ;;  %v452_v61 = vsel %vm5600_vm2, %v447_v52, %v451_v39  ;;  %v497_v10 = vshll.u32 %v5696_v0, 16 }
  0x29   : > { %4688 = vmatpush3.bf16.msra.mxu0 %v5225_v31  ;;  %4497 = vmatprep.subr.bf16.mxu1 %v5226_v36  ;;  %v428_v31 = vsel %vm5600_vm2, %v423_v18, %v427_v2  ;;  %v488_v2 = vshrl.u32 %v5682_v58, 16  ;;  %v480_v19 = vor.u32 %v479_v4, %v475_v55  ;;  %v493_v20 = vrot.slane %v491_v6, 5  ;;  %v5753_v6 = vld [vmem:[%s5555_s24 + $0x58] sm:$0xf] }
  0x2a   : > { %4689 = vmatprep.subr.bf16.mxu0 %v5227_v53  ;;  %4691 = vmatprep.mubr.bf16.mxu0 %v3974_v17  ;;  %v5677_v51 = vcombine.low %v428_v31, %v438_v45  ;;  %v499_v23 = vrot.slane %v497_v10, 5  ;;  %v5233_v45 = vld [vmem:[%s6807_s1 + $0x158] sm:$0xff]  }
  0x2b   : > { %v481_v38 = vrot.slane %v480_v19, 4  ;;  %v5756_v10 = vld [vmem:[%s5555_s24 + $0x5c] sm:$0x1] }
  0x2c   : > { %4498 = vmatpush3.bf16.msra.mxu1 %v5226_v36  ;;  %v464_v36 = vshrl.u32 %v5653_v22, 16 }
  0x2d   : > { %4690 = vmatpush3.bf16.msra.mxu0 %v5227_v53  ;;  %4531 = vmatprep.subr.bf16.mxu1 %v5228_v1  ;;  %v456_v53 = vor.u32 %v455_v40, %v451_v39  ;;  %v515_v40 = vshll.u32 %v5713_v27, 16  ;;  %v486_v52 = vsel %vm5600_vm2, %v481_v38, %v485_v5  ;;  %v5750_v5 = vld [vmem:[%s5555_s24 + $0x54] sm:$0xf] }
  0x2e   : > { %4723 = vmatprep.subr.bf16.mxu0 %v5229_v8  ;;  %v466_v49 = vrot.slane %v464_v36, 4  ;;  %v5237_v36 = vld [vmem:[%s6807_s1 + $0x18] sm:$0xff]   ;;  %v536_v19 = vshrl.u32 %v5750_v5, 16 }
  0x2f   : > { %4500 = vmatmul.mubr.bf16.vlgmr.msra.gmra.mrb[0].mxu1 %v3974_v17  ;;  %v457_v62 = vrot.slane %v456_v53, 4  ;;  %v501_v17 = vshrl.u32 %v5696_v0, 16 }
  0x30   : > { %4532 = vmatpush3.bf16.msra.mxu1 %v5228_v1  ;;  %4692 = vmatmul.mubr.bf16.vlgmr.msra.gmra.mrb[0].mxu0 %v5677_v51  ;;  %v470_v63 = vor.u32 %v469_v54, %v466_v49  ;;  %v5699_v1 = vld [vmem:[%s5555_s24 + $0x44] sm:$0x1]  ;;  %v517_v54 = vrot.slane %v515_v40, 5  ;;  %v549_v40 = vshrl.u32 %v5753_v6, 16 }
  0x31   : > { %4533 = vmatprep.subr.bf16.mxu1 %v5231_v34  ;;  %4503 = vmatprep.mubr.bf16.mxu1 %v5677_v51  ;;  %v462_v11 = vsel %vm5600_vm2, %v457_v62, %v461_v47  ;;  %v503_v31 = vrot.slane %v501_v17, 4  ;;  %v507_v32 = vshll.u32 %v5699_v1, 16  ;;  %v531_v62 = vshll.u32 %v5722_v33, 16 }
  0x32   : > { %4724 = vmatpush3.bf16.msra.mxu0 %v5229_v8  ;;  %v471_v15 = vrot.slane %v470_v63, 4  ;;  %v490_v8 = vrot.slane %v488_v2, 4  ;;  %v5710_v18 = vcombine.low %v452_v61, %v462_v11  ;;  %v527_v61 = vrot.slane %v525_v50, 4  ;;  %v5235_v63 = vld [vmem:[%s6807_s1 + $0x160] sm:$0xff]   ;;  %v5790_v50 = vld [vmem:[%s5555_s24 + $0x68] sm:$0x1] }
  0x33   : > { %4725 = vmatprep.subr.bf16.mxu0 %v5230_v46  ;;  %v504_v47 = vor.u32 %v503_v31, %v499_v23  ;;  %v509_v49 = vrot.slane %v507_v32, 5  ;;  %v5240_v2 = vld [vmem:[%s6807_s1 + $0x20] sm:$0xff]   ;;  %v5760_v11 = vcombine.low %v5633_v3, %v5641_v9  ;;  %v533_v17 = vrot.slane %v531_v62, 5 }
  0x34   : > { %4534 = vmatpush3.bf16.msra.mxu1 %v5231_v34  ;;  %6830 = vst [vmem:[#allocation2_spill] sm:$0xff] %v5710_v18  ;;  %v476_v29 = vsel %vm5600_vm2, %v471_v15, %v475_v55  ;;  %v512_v34 = vshrl.u32 %v5713_v27, 16  ;;  %4695 = vmatprep.mubr.bf16.mxu0 %v5710_v18  ;;  %v494_v39 = vor.u32 %v493_v20, %v490_v8  ;;  %v523_v55 = vrot.slane %v521_v44, 5  ;;  %v5776_v32 = vld [vmem:[%s5555_s24 + $0x60] sm:$0xf] }
  0x35   : > { %4535 = vmatprep.subr.bf16.mxu1 %v5234_v59  ;;  %v5738_v56 = vcombine.low %v476_v29, %v486_v52  ;;  %v505_v57 = vrot.slane %v504_v47, 4  ;;  %v5764_v15 = vcombine.low %v5653_v22, %v5658_v30  ;;  %v539_v29 = vshll.u32 %v5750_v5, 16  ;;  %v5784_v47 = vld [vmem:[%s5555_s24 + $0x64] sm:$0xf] }
  0x36   : > { %4726 = vmatpush3.bf16.msra.mxu0 %v5230_v46  ;;  %v514_v46 = vrot.slane %v512_v34, 4  ;;  %v495_v53 = vrot.slane %v494_v39, 4  ;;  %v528_v8 = vor.u32 %v527_v61, %v523_v55  ;;  %v545_v31 = vshll.u32 %v5753_v6, 16  ;;  %v5242_v34 = vld [vmem:[%s6807_s1 + $0x28] sm:$0xff]  }
  0x37   : > { %4504 = vmatmul.mubr.bf16.gmra.mrb[4].mxu1 %v5710_v18  ;;  %4727 = vmatprep.subr.bf16.mxu0 %v5232_v16  ;;  %6831 = vst [vmem:[#allocation3_spill] sm:$0xff] %v5738_v56  ;;  %v538_v39 = vrot.slane %v536_v19, 4  ;;  %v555_v44 = vshll.u32 %v5756_v10, 16  ;;  %v560_v52 = vshrl.u32 %v5776_v32, 16  ;;  %v579_v19 = vshll.u32 %v5790_v50, 16 }
  0x38   : > { %4536 = vmatpush3.bf16.msra.mxu1 %v5234_v59  ;;  %v500_v4 = vsel %vm5600_vm2, %v495_v53, %v499_v23  ;;  %v518_v59 = vor.u32 %v517_v54, %v514_v46  ;;  %4696 = vmatmul.mubr.bf16.gmra.mrb[4].mxu0 %v5738_v56  ;;  %v529_v38 = vrot.slane %v528_v8, 4  ;;  %v547_v46 = vrot.slane %v545_v31, 5 }
  0x39   : > { %4537 = vmatprep.subr.bf16.mxu1 %v5237_v36  ;;  %4507 = vmatprep.mubr.bf16.mxu1 %v5738_v56  ;;  %v551_v54 = vrot.slane %v549_v40, 4  ;;  %v5818_v40 = vld [vmem:[%s5555_s24 + $0x6c] sm:$0xf] }
  0x3a   : > { %4728 = vmatpush3.bf16.msra.mxu0 %v5232_v16  ;;  %v510_v16 = vsel %vm5600_vm2, %v505_v57, %v509_v49  ;;  %v519_v23 = vrot.slane %v518_v59, 4  ;;  %v534_v53 = vsel %vm5600_vm2, %v529_v38, %v533_v17  ;;  %v557_v57 = vrot.slane %v555_v44, 5 }
  0x3b   : > { %4729 = vmatprep.subr.bf16.mxu0 %v5233_v45  ;;  %v5771_v20 = vcombine.low %v500_v4, %v510_v16  ;;  %v562_v4 = vrot.slane %v560_v52, 4  ;;  %v569_v59 = vshll.u32 %v5784_v47, 16  ;;  %v552_v16 = vor.u32 %v551_v54, %v547_v46 }
  0x3c   : > { %4538 = vmatpush3.bf16.msra.mxu1 %v5237_v36  ;;  %v524_v49 = vsel %vm5600_vm2, %v519_v23, %v523_v55  ;;  %v541_v36 = vrot.slane %v539_v29, 5  ;;  %v563_v55 = vshll.u32 %v5776_v32, 16  ;;  %v573_v17 = vshrl.u32 %v5784_v47, 16  ;;  %v5244_v29 = vld [vmem:[%s6807_s1 + $0x30] sm:$0xff]  }
  0x3d   : > { %6832 = vst [vmem:[#allocation4_spill] sm:$0xff] %v5771_v20  ;;  %4539 = vmatprep.subr.bf16.mxu1 %v5240_v2  ;;  %4699 = vmatprep.mubr.bf16.mxu0 %v5771_v20  ;;  %v5800_v61 = vcombine.low %v524_v49, %v534_v53  ;;  %v571_v31 = vrot.slane %v569_v59, 5  ;;  %v4022_v38 = vrot.slane %v5578_v21, 9  ;;  %v553_v44 = vrot.slane %v552_v16, 4  ;;  %v5825_v53 = vld [vmem:[%s5555_s24 + $0x70] sm:$0xf] }
  0x3e   : > { %4730 = vmatpush3.bf16.msra.mxu0 %v5233_v45  ;;  %v5236_v45 = vld [vmem:[%s6807_s1 + $0x168] sm:$0xff]   ;;  %v542_v62 = vor.u32 %v541_v36, %v538_v39  ;;  %v565_v8 = vrot.slane %v563_v55, 5  ;;  %v1374_v39 = vrot.slane %v5581_v24, 5  ;;  %v575_v36 = vrot.slane %v573_v17, 4 }
  0x3f   : > { %4508 = vmatmul.mubr.bf16.gmra.mrb[8].mxu1 %v5771_v20  ;;  %4731 = vmatprep.subr.bf16.mxu0 %v5235_v63  ;;  %6833 = vst [vmem:[#allocation5_spill] sm:$0xff] %v5800_v61  ;;  %v581_v52 = vrot.slane %v579_v19, 5  ;;  %v1377_v55 = vrot.slane %v5584_v25, 5  ;;  %v558_v59 = vsel %vm5600_vm2, %v553_v44, %v557_v57  ;;  %v593_v19 = vshll.u32 %v5825_v53, 16 }
  0x40   : > { %4540 = vmatpush3.bf16.msra.mxu1 %v5240_v2  ;;  %4511 = vmatprep.mubr.bf16.mxu1 %v5800_v61  ;;  %v543_v2 = vrot.slane %v542_v62, 4  ;;  %v566_v49 = vor.u32 %v565_v8, %v562_v4  ;;  %v1375_v24 = vsel %vm5807_vm5, %v4022_v38, %v1374_v39  ;;  %v1376_v54 = vrot.slane %v1374_v39, 4  ;;  %v5833_v62 = vld [vmem:[%s5555_s24 + $0x74] sm:$0x1]  ;;  %v5246_v4 = vld [vmem:[%s6807_s1 + $0x38] sm:$0xff]  }
  0x41   : > { %4541 = vmatprep.subr.bf16.mxu1 %v5242_v34  ;;  %4700 = vmatmul.mubr.bf16.gmra.mrb[8].mxu0 %v5800_v61  ;;  %v576_v8 = vor.u32 %v575_v36, %v571_v31  ;;  %v595_v36 = vrot.slane %v593_v19, 5  ;;  %v1395_v20 = vrot.slane %v5658_v30, 5 }
  0x42   : > { %4732 = vmatpush3.bf16.msra.mxu0 %v5235_v63  ;;  %v5238_v63 = vld [vmem:[%s6807_s1 + $0x170] sm:$0xff]   ;;  %v548_v21 = vsel %vm5600_vm2, %v543_v2, %v547_v46  ;;  %v567_v16 = vrot.slane %v566_v49, 4  ;;  %v584_v46 = vshrl.u32 %v5818_v40, 16  ;;  %v1378_v25 = vsel %vm5807_vm5, %v1376_v54, %v1377_v55  ;;  %v5848_v2 = vld [vmem:[%s5555_s24 + $0x78] sm:$0xf] }
  0x43   : > { %4733 = vmatprep.subr.bf16.mxu0 %v5236_v45  ;;  %v5841_v17 = vcombine.low %v548_v21, %v558_v59  ;;  %v577_v38 = vrot.slane %v576_v8, 4  ;;  %v5855_v39 = vcombine.low %v1375_v24, %v1378_v25  ;;  %v597_v21 = vshrl.u32 %v5825_v53, 16  ;;  %v5862_v54 = vld [vmem:[%s5555_s24 + $0x7c] sm:$0xf] }
  0x44   : > { %4542 = vmatpush3.bf16.msra.mxu1 %v5242_v34  ;;  %v587_v34 = vshll.u32 %v5818_v40, 16  ;;  %v572_v57 = vsel %vm5600_vm2, %v567_v16, %v571_v31  ;;  %v586_v44 = vrot.slane %v584_v46, 4  ;;  %v603_v31 = vshll.u32 %v5833_v62, 16  ;;  %v5869_v16 = vld [vmem:[%s5555_s24 + $0x80] sm:$0x1] }
  0x45   : > { %4543 = vmatprep.subr.bf16.mxu1 %v5244_v29  ;;  %6836 = vst [vmem:[#allocation6_spill] sm:$0xff] %v5841_v17  ;;  %4703 = vmatprep.mubr.bf16.mxu0 %v5841_v17  ;;  %v582_v55 = vsel %vm5600_vm2, %v577_v38, %v581_v52  ;;  %v4023_v59 = vrot.slane %v5606_v41, 9  ;;  %v1381_v24 = vrot.slane %v5609_v42, 5  ;;  %v608_v8 = vshrl.u32 %v5848_v2, 16  ;;  %v5877_v52 = vld [vmem:[%s6807_s1 + $0x80] sm:$0xff]  }
  0x46   : > { %4734 = vmatpush3.bf16.msra.mxu0 %v5236_v45  ;;  %v5239_v45 = vld [vmem:[%s6807_s1 + $0x178] sm:$0xff]   ;;  %v589_v49 = vrot.slane %v587_v34, 5  ;;  %v5872_v46 = vcombine.low %v572_v57, %v582_v55  ;;  %v599_v34 = vrot.slane %v597_v21, 4  ;;  %v605_v19 = vrot.slane %v603_v31, 5  ;;  %v5886_v38 = vld [vmem:[%s5555_s24 + $0x84] sm:$0xf] }
  0x47   : > { %4735 = vmatprep.subr.bf16.mxu0 %v5238_v63  ;;  %4512 = vmatmul.mubr.bf16.gmra.mrb[12].mxu1 %v5841_v17  ;;  %v1382_v41 = vsel %vm5807_vm5, %v4023_v59, %v1381_v24  ;;  %v1383_v42 = vrot.slane %v1381_v24, 4  ;;  %v610_v57 = vrot.slane %v608_v8, 4  ;;  %v617_v21 = vshll.u32 %v5862_v54, 16 }
  0x48   : > { %4544 = vmatpush3.bf16.msra.mxu1 %v5244_v29  ;;  %6837 = vst [vmem:[#allocation7_spill] sm:$0xff] %v5872_v46  ;;  %v590_v25 = vor.u32 %v589_v49, %v586_v44  ;;  %v5241_v29 = vld [vmem:[%s6807_s1 + $0x180] sm:$0xff]   ;;  %4515 = vmatprep.mubr.bf16.mxu1 %v5872_v46  ;;  %v600_v49 = vor.u32 %v599_v34, %v595_v36  ;;  %v621_v31 = vshrl.u32 %v5862_v54, 16  ;;  %v627_v24 = vshll.u32 %v5869_v16, 16 }
  0x49   : > { %4545 = vmatprep.subr.bf16.mxu1 %v5246_v4  ;;  %4704 = vmatmul.mubr.bf16.gmra.mrb[12].mxu0 %v5872_v46  ;;  %v1385_v55 = vsel %vm5807_vm5, %v1383_v42, %v1384_v7  ;;  %v4024_v8 = vrot.slane %v5633_v3, 9  ;;  %v619_v46 = vrot.slane %v617_v21, 5  ;;  %v5906_v3 = vld [vmem:[%s5555_s24 + $0x88] sm:$0xf] }
  0x4a   : > { %4736 = vmatpush3.bf16.msra.mxu0 %v5238_v63  ;;  %v611_v63 = vshll.u32 %v5848_v2, 16  ;;  %v591_v44 = vrot.slane %v590_v25, 4  ;;  %4739 = vmatprep.mubr.bf16.mxu0 %v5855_v39  ;;  %v601_v34 = vrot.slane %v600_v49, 4  ;;  %v5901_v26 = vcombine.low %v1382_v41, %v1385_v55 }
  0x4b   : > { %4737 = vmatprep.subr.bf16.mxu0 %v5239_v45  ;;  %v623_v7 = vrot.slane %v621_v31, 4  ;;  %v629_v42 = vrot.slane %v627_v24, 5  ;;  %v632_v41 = vshrl.u32 %v5886_v38, 16  ;;  %v5243_v31 = vld [vmem:[%s6807_s1 + $0x188] sm:$0xff]   ;;  %v5925_v24 = vld [vmem:[%s5555_s24 + $0x90] sm:$0xf] }
  0x4c   : > { %v613_v59 = vrot.slane %v611_v63, 5  ;;  %4546 = vmatpush3.bf16.msra.mxu1 %v5246_v4  ;;  %v596_v25 = vsel %vm5600_vm2, %v591_v44, %v595_v36  ;;  %v1388_v63 = vrot.slane %v5641_v9, 5  ;;  %v606_v4 = vsel %vm5600_vm2, %v601_v34, %v605_v19  ;;  %v5912_v36 = vld [vmem:[%s5555_s24 + $0x8c] sm:$0x1]  ;;  %v5928_v34 = vld [vmem:[%s5555_s24 + $0x94] sm:$0xf] }
  0x4d   : > { %4579 = vmatprep.subr.bf16.mxu1 %v5877_v52  ;;  %v635_v44 = vshll.u32 %v5886_v38, 16  ;;  %v624_v21 = vor.u32 %v623_v7, %v619_v46  ;;  %v634_v55 = vrot.slane %v632_v41, 4  ;;  %v651_v7 = vshll.u32 %v5912_v36, 16 }
  0x4e   : > { %4738 = vmatpush3.bf16.msra.mxu0 %v5239_v45  ;;  %v614_v48 = vor.u32 %v613_v59, %v610_v57  ;;  %v1391_v45 = vrot.slane %v5648_v14, 5  ;;  %v5916_v57 = vcombine.low %v596_v25, %v606_v4  ;;  %v1389_v9 = vsel %vm5807_vm5, %v4024_v8, %v1388_v63 }
  0x4f   : > { %4771 = vmatprep.subr.bf16.mxu0 %v5241_v29  ;;  %v1390_v19 = vrot.slane %v1388_v63, 4  ;;  %v637_v14 = vrot.slane %v635_v44, 5  ;;  %v641_v59 = vshll.u32 %v5906_v3, 16  ;;  %v645_v8 = vshrl.u32 %v5906_v3, 16 }
  0x50   : > { %6838 = vst [vmem:[#allocation8_spill] sm:$0xff] %v5916_v57  ;;  %v615_v49 = vrot.slane %v614_v48, 4  ;;  %4516 = vmatmul.mubr.bf16.gmra.mrb[16].mxu1 %v5916_v57  ;;  %v625_v48 = vrot.slane %v624_v21, 4  ;;  %v4025_v44 = vrot.slane %v5653_v22, 9  ;;  %v653_v21 = vrot.slane %v651_v7, 5  ;;  %v5245_v22 = vld [vmem:[%s6807_s1 + $0x190] sm:$0xff]  }
  0x51   : > { %4740 = vmatmul.mubr.bf16.vlgmr.msra.gmra.mrb[0].mxu0 %v5901_v26  ;;  %v1392_v63 = vsel %vm5807_vm5, %v1390_v19, %v1391_v45  ;;  %v638_v4 = vor.u32 %v637_v14, %v634_v55  ;;  %v643_v41 = vrot.slane %v641_v59, 5  ;;  %v1398_v45 = vrot.slane %v5667_v35, 5  ;;  %v5964_v59 = vld [vmem:[%s5555_s24 + $0x9c] sm:$0xf] }
  0x52   : > { %v620_v25 = vsel %vm5600_vm2, %v615_v49, %v619_v46  ;;  %4772 = vmatpush3.bf16.msra.mxu0 %v5241_v29  ;;  %v630_v57 = vsel %vm5600_vm2, %v625_v48, %v629_v42  ;;  %v5941_v46 = vcombine.low %v1389_v9, %v1392_v63  ;;  %v647_v49 = vrot.slane %v645_v8, 4  ;;  %v5952_v42 = vld [vmem:[%s5555_s24 + $0x98] sm:$0x1]  ;;  %v5967_v63 = vld [vmem:[%s5555_s24 + $0xa0] sm:$0xf] }
  0x53   : > { %v5943_v17 = vcombine.low %v620_v25, %v630_v57  ;;  %v639_v61 = vrot.slane %v638_v4, 4  ;;  %4773 = vmatprep.subr.bf16.mxu0 %v5243_v31  ;;  %v656_v57 = vshrl.u32 %v5925_v24, 16  ;;  %v659_v9 = vshll.u32 %v5925_v24, 16 }
  0x54   : > { %4743 = vmatprep.mubr.bf16.mxu0 %v5941_v46  ;;  %v648_v29 = vor.u32 %v647_v49, %v643_v41  ;;  %v665_v19 = vshll.u32 %v5928_v34, 16  ;;  %v1396_v35 = vsel %vm5807_vm5, %v4025_v44, %v1395_v20  ;;  %v1397_v55 = vrot.slane %v1395_v20, 4  ;;  %v5974_v20 = vld [vmem:[%s5555_s24 + $0xa4] sm:$0x1] }
  0x55   : > { %6839 = vst [vmem:[#allocation9_spill] sm:$0xff] %v5943_v17  ;;  %4519 = vmatprep.mubr.bf16.mxu1 %v5943_v17  ;;  %v644_v30 = vsel %vm5600_vm2, %v639_v61, %v643_v41  ;;  %v669_v14 = vshrl.u32 %v5928_v34, 16  ;;  %v658_v48 = vrot.slane %v656_v57, 4  ;;  %v661_v8 = vrot.slane %v659_v9, 5 }
  0x56   : > { %v649_v25 = vrot.slane %v648_v29, 4  ;;  %4774 = vmatpush3.bf16.msra.mxu0 %v5243_v31  ;;  %v667_v7 = vrot.slane %v665_v19, 5  ;;  %v1399_v4 = vsel %vm5807_vm5, %v1397_v55, %v1398_v45  ;;  %v675_v61 = vshll.u32 %v5952_v42, 16  ;;  %v5247_v45 = vld [vmem:[%s6807_s1 + $0x198] sm:$0xff]  }
  0x57   : > { %v671_v49 = vrot.slane %v669_v14, 4  ;;  %v4026_v41 = vrot.slane %v5682_v58, 9  ;;  %4775 = vmatprep.subr.bf16.mxu0 %v5245_v22  ;;  %v5978_v44 = vcombine.low %v1396_v35, %v1399_v4  ;;  %v662_v29 = vor.u32 %v661_v8, %v658_v48 }
  0x58   : > { %v654_v31 = vsel %vm5600_vm2, %v649_v25, %v653_v21  ;;  %v1402_v57 = vrot.slane %v5696_v0, 5  ;;  %v677_v58 = vrot.slane %v675_v61, 5  ;;  %v1405_v55 = vrot.slane %v5699_v1, 5  ;;  %v5992_v25 = vld [vmem:[%s5555_s24 + $0xa8] sm:$0xf] }
  0x59   : > { %v5984_v9 = vcombine.low %v644_v30, %v654_v31  ;;  %v672_v19 = vor.u32 %v671_v49, %v667_v7  ;;  %4744 = vmatmul.mubr.bf16.gmra.mrb[4].mxu0 %v5978_v44  ;;  %v663_v14 = vrot.slane %v662_v29, 4  ;;  %v680_v0 = vshrl.u32 %v5964_v59, 16  ;;  %v5251_v30 = vld [vmem:[%s6807_s1 + $0x1a0] sm:$0xff]   ;;  %v6002_v49 = vld [vmem:[%s5555_s24 + $0xac] sm:$0xf] }
  0x5a   : > { %v1403_v21 = vsel %vm5807_vm5, %v4026_v41, %v1402_v57  ;;  %v1404_v35 = vrot.slane %v1402_v57, 4  ;;  %v683_v1 = vshll.u32 %v5964_v59, 16  ;;  %v689_v8 = vshll.u32 %v5967_v63, 16  ;;  %4776 = vmatpush3.bf16.msra.mxu0 %v5245_v22 }
  0x5b   : > { %6840 = vst [vmem:[#allocation10_spill] sm:$0xff] %v5984_v9  ;;  %4520 = vmatmul.mubr.bf16.gmra.mrb[20].mxu1 %v5984_v9  ;;  %v673_v48 = vrot.slane %v672_v19, 4  ;;  %v693_v4 = vshrl.u32 %v5967_v63, 16  ;;  %v668_v61 = vsel %vm5600_vm2, %v663_v14, %v667_v7  ;;  %v682_v31 = vrot.slane %v680_v0, 4  ;;  %4777 = vmatprep.subr.bf16.mxu0 %v5247_v45  ;;  %v6017_v14 = vld [vmem:[%s5555_s24 + $0xb0] sm:$0x1] }
  0x5c   : > { %v1406_v41 = vsel %vm5807_vm5, %v1404_v35, %v1405_v55  ;;  %v699_v29 = vshll.u32 %v5974_v20, 16  ;;  %v685_v9 = vrot.slane %v683_v1, 5  ;;  %v691_v17 = vrot.slane %v689_v8, 5 }
  0x5d   : > { %v678_v57 = vsel %vm5600_vm2, %v673_v48, %v677_v58  ;;  %v6011_v19 = vcombine.low %v1403_v21, %v1406_v41  ;;  %v695_v56 = vrot.slane %v693_v4, 4  ;;  %v4027_v7 = vrot.slane %v5713_v27, 9 }
  0x5e   : > { %v6013_v22 = vcombine.low %v668_v61, %v678_v57  ;;  %v701_v18 = vrot.slane %v699_v29, 5  ;;  %v686_v55 = vor.u32 %v685_v9, %v682_v31  ;;  %v1409_v35 = vrot.slane %v5716_v28, 5  ;;  %4778 = vmatpush3.bf16.msra.mxu0 %v5247_v45  ;;  %v5255_v28 = vld [vmem:[%s6807_s1 + $0x1a8] sm:$0xff]  }
  0x5f   : > { %4747 = vmatprep.mubr.bf16.mxu0 %v6011_v19  ;;  %v1412_v0 = vrot.slane %v5722_v33, 5  ;;  %v704_v58 = vshrl.u32 %v5992_v25, 16  ;;  %v696_v21 = vor.u32 %v695_v56, %v691_v17  ;;  %v707_v48 = vshll.u32 %v5992_v25, 16  ;;  %4779 = vmatprep.subr.bf16.mxu0 %v5251_v30 }
  0x60   : > { %6841 = vst [vmem:[#allocation11_spill] sm:$0xff] %v6013_v22  ;;  %4523 = vmatprep.mubr.bf16.mxu1 %v6013_v22  ;;  %v713_v1 = vshll.u32 %v6002_v49, 16  ;;  %v717_v27 = vshrl.u32 %v6002_v49, 16  ;;  %v687_v9 = vrot.slane %v686_v55, 4  ;;  %v1410_v33 = vsel %vm5807_vm5, %v4027_v7, %v1409_v35  ;;  %v6039_v22 = vld [vmem:[%s5555_s24 + $0xb4] sm:$0xf] }
  0x61   : > { %v1411_v45 = vrot.slane %v1409_v35, 4  ;;  %v706_v8 = vrot.slane %v704_v58, 4  ;;  %v697_v56 = vrot.slane %v696_v21, 4  ;;  %v709_v4 = vrot.slane %v707_v48, 5  ;;  %v6046_v48 = vld [vmem:[%s5555_s24 + $0xb8] sm:$0xf] }
  0x62   : > { %v715_v61 = vrot.slane %v713_v1, 5  ;;  %v719_v41 = vrot.slane %v717_v27, 4  ;;  %v692_v31 = vsel %vm5600_vm2, %v687_v9, %v691_v17  ;;  %v723_v57 = vshll.u32 %v6017_v14, 16  ;;  %4780 = vmatpush3.bf16.msra.mxu0 %v5251_v30  ;;  %v5259_v17 = vld [vmem:[%s6807_s1 + $0x1b0] sm:$0xff]   ;;  %v6056_v27 = vld [vmem:[%s5555_s24 + $0xbc] sm:$0x1] }
  0x63   : > { %v1413_v29 = vsel %vm5807_vm5, %v1411_v45, %v1412_v0  ;;  %v4028_v55 = vrot.slane %v5750_v5, 9  ;;  %v702_v7 = vsel %vm5600_vm2, %v697_v56, %v701_v18  ;;  %v710_v58 = vor.u32 %v709_v4, %v706_v8  ;;  %4781 = vmatprep.subr.bf16.mxu0 %v5255_v28  ;;  %v5263_v4 = vld [vmem:[%s6807_s1 + $0x1b8] sm:$0xff]  }
  0x64   : > { %v6043_v35 = vcombine.low %v1410_v33, %v1413_v29  ;;  %v720_v21 = vor.u32 %v719_v41, %v715_v61  ;;  %v6051_v0 = vcombine.low %v692_v31, %v702_v7  ;;  %v725_v5 = vrot.slane %v723_v57, 5 }
  0x65   : > { %v1416_v1 = vrot.slane %v5753_v6, 5  ;;  %v1419_v30 = vrot.slane %v5756_v10, 5  ;;  %v711_v18 = vrot.slane %v710_v58, 4  ;;  %v728_v33 = vshrl.u32 %v6039_v22, 16 }
  0x66   : > { %6842 = vst [vmem:[#allocation12_spill] sm:$0xff] %v6051_v0  ;;  %4748 = vmatmul.mubr.bf16.gmra.mrb[8].mxu0 %v6043_v35  ;;  %v721_v9 = vrot.slane %v720_v21, 4  ;;  %v731_v45 = vshll.u32 %v6039_v22, 16  ;;  %4524 = vmatmul.mubr.bf16.gmra.mrb[24].mxu1 %v6051_v0  ;;  %v737_v6 = vshll.u32 %v6046_v48, 16  ;;  %v741_v10 = vshrl.u32 %v6046_v48, 16 }
  0x67   : > { %v1417_v8 = vsel %vm5807_vm5, %v4028_v55, %v1416_v1  ;;  %v1418_v56 = vrot.slane %v1416_v1, 4  ;;  %4782 = vmatpush3.bf16.msra.mxu0 %v5255_v28  ;;  %v716_v41 = vsel %vm5600_vm2, %v711_v18, %v715_v61  ;;  %v730_v29 = vrot.slane %v728_v33, 4 }
  0x68   : > { %v726_v31 = vsel %vm5600_vm2, %v721_v9, %v725_v5  ;;  %v733_v57 = vrot.slane %v731_v45, 5  ;;  %4783 = vmatprep.subr.bf16.mxu0 %v5259_v17  ;;  %v739_v58 = vrot.slane %v737_v6, 5  ;;  %v743_v28 = vrot.slane %v741_v10, 4 }
  0x69   : > { %v6073_v55 = vcombine.low %v716_v41, %v726_v31  ;;  %v1420_v7 = vsel %vm5807_vm5, %v1418_v56, %v1419_v30  ;;  %v747_v0 = vshll.u32 %v6056_v27, 16  ;;  %v4029_v61 = vrot.slane %v5776_v32, 9  ;;  %v6088_v30 = vld [vmem:[%s6807_s1 + $0x1c0] sm:$0xff]  }
  0x6a   : > { %v6077_v21 = vcombine.low %v1417_v8, %v1420_v7  ;;  %v734_v1 = vor.u32 %v733_v57, %v730_v29  ;;  %v744_v5 = vor.u32 %v743_v28, %v739_v58  ;;  %v1423_v18 = vrot.slane %v5784_v47, 5 }
  0x6b   : > { %4527 = vmatprep.mubr.bf16.mxu1 %v6073_v55  ;;  %v1426_v9 = vrot.slane %v5790_v50, 5  ;;  %v4030_v33 = vrot.slane %v5818_v40, 9  ;;  %4784 = vmatpush3.bf16.msra.mxu0 %v5259_v17  ;;  %v749_v8 = vrot.slane %v747_v0, 5  ;;  %v1430_v56 = vrot.slane %v5825_v53, 5 }
  0x6c   : > { %4751 = vmatprep.mubr.bf16.mxu0 %v6077_v21  ;;  %v735_v45 = vrot.slane %v734_v1, 4  ;;  %v1433_v6 = vrot.slane %v5833_v62, 5  ;;  %4785 = vmatprep.subr.bf16.mxu0 %v5263_v4  ;;  %v745_v10 = vrot.slane %v744_v5, 4  ;;  %v1424_v50 = vsel %vm5807_vm5, %v4029_v61, %v1423_v18 }
  0x6d   : > { %v1425_v41 = vrot.slane %v1423_v18, 4  ;;  %v4031_v17 = vrot.slane %v5848_v2, 9  ;;  %v1431_v29 = vsel %vm5807_vm5, %v4030_v33, %v1430_v56  ;;  %v1432_v57 = vrot.slane %v1430_v56, 4 }
  0x6e   : > { %v740_v31 = vsel %vm5600_vm2, %v735_v45, %v739_v58  ;;  %v1437_v0 = vrot.slane %v5862_v54, 5  ;;  %v750_v62 = vsel %vm5600_vm2, %v745_v10, %v749_v8  ;;  %v1440_v28 = vrot.slane %v5869_v16, 5 }
  0x6f   : > { %v1427_v7 = vsel %vm5807_vm5, %v1425_v41, %v1426_v9  ;;  %v4032_v1 = vrot.slane %v5886_v38, 9  ;;  %4786 = vmatpush3.bf16.msra.mxu0 %v5263_v4  ;;  %v6107_v61 = vcombine.low %v740_v31, %v750_v62  ;;  %v1434_v5 = vsel %vm5807_vm5, %v1432_v57, %v1433_v6  ;;  %v5254_v57 = vld [vmem:[%s6807_s1 + $0x88] sm:$0xff]  }
  0x70   : > { %v6109_v58 = vcombine.low %v1424_v50, %v1427_v7  ;;  %4819 = vmatprep.subr.bf16.mxu0 %v6088_v30  ;;  %v6114_v18 = vcombine.low %v1431_v29, %v1434_v5  ;;  %v1439_v33 = vrot.slane %v1437_v0, 4  ;;  %v1444_v45 = vrot.slane %v5906_v3, 5 }
  0x71   : > { %v1447_v9 = vrot.slane %v5912_v36, 5  ;;  %4528 = vmatmul.mubr.bf16.gmra.mrb[28].mxu1 %v6107_v61  ;;  %v6843_v16 = vcombine.low %v5564_v12, %v5567_v13  ;;  %v1438_v4 = vsel %vm5807_vm5, %v4031_v17, %v1437_v0  ;;  %v1451_v6 = vrot.slane %v5928_v34, 5 }
  0x72   : > { %4752 = vmatmul.mubr.bf16.gmra.mrb[12].mxu0 %v6109_v58  ;;  %v1441_v8 = vsel %vm5807_vm5, %v1439_v33, %v1440_v28  ;;  %v1446_v56 = vrot.slane %v1444_v45, 4  ;;  %v1458_v36 = vrot.slane %v5967_v63, 5  ;;  %v1445_v10 = vsel %vm5807_vm5, %v4032_v1, %v1444_v45 }
  0x73   : > { %4547 = vmatprep.mubr.bf16.mxu1 %v6843_v16  ;;  %4755 = vmatprep.mubr.bf16.mxu0 %v6114_v18  ;;  %v6134_v13 = vcombine.low %v1438_v4, %v1441_v8  ;;  %v4033_v50 = vrot.slane %v5925_v24, 9  ;;  %v1454_v41 = vrot.slane %v5952_v42, 5  ;;  %v1453_v17 = vrot.slane %v1451_v6, 4 }
  0x74   : > { %v1448_v12 = vsel %vm5807_vm5, %v1446_v56, %v1447_v9  ;;  %v4034_v31 = vrot.slane %v5964_v59, 9  ;;  %v1460_v0 = vrot.slane %v1458_v36, 4  ;;  %v1461_v62 = vrot.slane %v5974_v20, 5 }
  0x75   : > { %v6139_v29 = vcombine.low %v1445_v10, %v1448_v12  ;;  %v1452_v7 = vsel %vm5807_vm5, %v4033_v50, %v1451_v6  ;;  %v1465_v42 = vrot.slane %v6002_v49, 5  ;;  %v6152_v28 = vcombine.low %v5776_v32, %v5784_v47  ;;  %v5258_v47 = vld [vmem:[%s6807_s1 + $0x90] sm:$0xff]   ;;  %v344_v6 = vld [vmem:[%s5555_s24 + $0xc8] sm:$0x1]  ;;  %v5431_v10 = vld [vmem:[%s5555_s24 + $0x40] sm:$0xf] }
  0x76   : > { %v1455_v20 = vsel %vm5807_vm5, %v1453_v17, %v1454_v41  ;;  %v1459_v1 = vsel %vm5807_vm5, %v4034_v31, %v1458_v36  ;;  %v4035_v5 = vrot.slane %v5992_v25, 9  ;;  %v6163_v33 = vcombine.low %v5818_v40, %v5825_v53  ;;  %v5430_v36 = vld [vmem:[%s5555_s24 + $0x3c] sm:$0xf]  ;;  %v5432_v41 = vld [vmem:[%s5555_s24 + $0x48] sm:$0xf] }
  0x77   : > { %v1462_v32 = vsel %vm5807_vm5, %v1460_v0, %v1461_v62  ;;  %v6174_v45 = vcombine.low %v5848_v2, %v5862_v54  ;;  %v6178_v40 = vcombine.low %v5886_v38, %v5906_v3  ;;  %v6182_v53 = vcombine.low %v5925_v24, %v5928_v34  ;;  %v6202_v24 = vld [vmem:[%s5555_s24 + $0xc4] sm:$0xf]  ;;  %v5433_v17 = vld [vmem:[%s5555_s24 + $0x4c] sm:$0xf] }
  0x78   : > { %v6186_v9 = vcombine.low %v5964_v59, %v5967_v63  ;;  %v6190_v16 = vcombine.low %v5992_v25, %v6002_v49  ;;  %v6192_v4 = vcombine.low %v1452_v7, %v1455_v20  ;;  %v1467_v2 = vrot.slane %v1465_v42, 4  ;;  %v5262_v25 = vld [vmem:[%s6807_s1 + $0x98] sm:$0xff]  }
  0x79   : > { %4548 = vmatmul.mubr.bf16.vlgmr.msra.gmra.mrb[0].mxu1 %v5613_v43  ;;  %v1468_v54 = vrot.slane %v6017_v14, 5  ;;  %v6197_v38 = vcombine.low %v6039_v22, %v6046_v48  ;;  %v6199_v3 = vcombine.low %v1459_v1, %v1462_v32  ;;  %v4036_v34 = vrot.slane %v6039_v22, 9  ;;  %v6216_v14 = vld [vmem:[%s5555_s24 + $0xc0] sm:$0xf] }
  0x7a   : > { %4756 = vmatmul.mubr.bf16.gmra.mrb[16].mxu0 %v6134_v13  ;;  %4580 = vmatpush3.bf16.msra.mxu1 %v5877_v52  ;;  %v1472_v52 = vrot.slane %v6046_v48, 5  ;;  %v1475_v63 = vrot.slane %v6056_v27, 5  ;;  %v1466_v49 = vsel %vm5807_vm5, %v4035_v5, %v1465_v42  ;;  %v2352_v48 = vrot.slane %v6202_v24, 5  ;;  %v5266_v27 = vld [vmem:[%s6807_s1 + $0xa0] sm:$0xff]  }
  0x7b   : > { %4551 = vmatprep.mubr.bf16.mxu1 %v5689_v60  ;;  %4759 = vmatprep.mubr.bf16.mxu0 %v6139_v29  ;;  %v1469_v22 = vsel %vm5807_vm5, %v1467_v2, %v1468_v54  ;;  %v6231_v12 = vcombine.low %v5430_v36, %v5431_v10  ;;  %v6237_v31 = vcombine.low %v5432_v41, %v5433_v17  ;;  %v2067_v0 = vshll.u32 %v6216_v14, 16  ;;  %v5270_v54 = vld [vmem:[%s6807_s1 + $0xa8] sm:$0xff]   ;;  %v5274_v36 = vld [vmem:[%s6807_s1 + $0xb0] sm:$0xff]   ;;  %v5435_v10 = vld [vmem:[%s5555_s24 + $0x58] sm:$0xf] }
  0x7c   : > { %4581 = vmatprep.subr.bf16.mxu1 %v5254_v57  ;;  %v1474_v59 = vrot.slane %v1472_v52, 4  ;;  %v1473_v8 = vsel %vm5807_vm5, %v4036_v34, %v1472_v52  ;;  %v6233_v50 = vcombine.low %v1466_v49, %v1469_v22  ;;  %v2073_v62 = vshll.u32 %v6202_v24, 16 }
  0x7d   : > { %v2077_v7 = vshrl.u32 %v6202_v24, 16  ;;  %v4127_v20 = vrot.slane %v6216_v14, 9  ;;  %v2354_v1 = vrot.slane %v2352_v48, 4  ;;  %v2355_v5 = vrot.slane %v344_v6, 5 }
  0x7e   : > { %4582 = vmatpush3.bf16.msra.mxu1 %v5254_v57  ;;  %v1476_v56 = vsel %vm5807_vm5, %v1474_v59, %v1475_v63  ;;  %v2064_v57 = vshrl.u32 %v6216_v14, 16  ;;  %v2075_v52 = vrot.slane %v2073_v62, 5  ;;  %v2083_v63 = vshll.u32 %v344_v6, 16  ;;  %v5434_v6 = vld [vmem:[%s5555_s24 + $0x54] sm:$0xf]  ;;  %v5280_v62 = vld [vmem:[%s6807_s1 + $0xc0] sm:$0xff]  }
  0x7f   : > { %4583 = vmatprep.subr.bf16.mxu1 %v5258_v47  ;;  %v6243_v42 = vcombine.low %v1473_v8, %v1476_v56  ;;  %v2079_v2 = vrot.slane %v2077_v7, 4  ;;  %v2356_v49 = vsel %vm5807_vm5, %v2354_v1, %v2355_v5  ;;  %v6262_v41 = vcombine.low %v5434_v6, %v5435_v10  ;;  %v5271_v7 = vld [vmem:[%s6807_s1 + $0x1c8] sm:$0xff]   ;;  %v5279_v1 = vld [vmem:[%s6807_s1 + $0x1d8] sm:$0xff]   ;;  %v5284_v6 = vld [vmem:[%s6807_s1 + $0xd0] sm:$0xff]  }
  0x80   : > { %v2066_v32 = vrot.slane %v2064_v57, 4  ;;  %v2085_v56 = vrot.slane %v2083_v63, 5  ;;  %v5287_v10 = vld [vmem:[%s6807_s1 + $0xd8] sm:$0xff]  }
  0x81   : > { %4552 = vmatmul.mubr.bf16.gmra.mrb[4].mxu1 %v5760_v11  ;;  %v2080_v59 = vor.u32 %v2079_v2, %v2075_v52  ;;  %v5438_v2 = vld [vmem:[%s5555_s24] sm:$0xf] }
  0x82   : > { %4760 = vmatmul.mubr.bf16.gmra.mrb[20].mxu0 %v6192_v4  ;;  %4555 = vmatprep.mubr.bf16.mxu1 %v5764_v15 }
  0x83   : > { %4763 = vmatprep.mubr.bf16.mxu0 %v6199_v3  ;;  %4584 = vmatpush3.bf16.msra.mxu1 %v5258_v47  ;;  %v2069_v47 = vrot.slane %v2067_v0, 5  ;;  %v2081_v8 = vrot.slane %v2080_v59, 4  ;;  %v5278_v0 = vld [vmem:[%s6807_s1 + $0xb8] sm:$0xff]   ;;  %v5283_v59 = vld [vmem:[%s6807_s1 + $0x1e8] sm:$0xff]  }
  0x84   : > { %4585 = vmatprep.subr.bf16.mxu1 %v5262_v25 }
  0x85   : > { %v2070_v34 = vor.u32 %v2069_v47, %v2066_v32  ;;  %v5281_v32 = vld [vmem:[%s6807_s1 + $0x1e0] sm:$0xff]   ;;  %v5437_v47 = vld [vmem:[%s5555_s24 + $0x8] sm:$0x1] }
  0x87   : > { %4586 = vmatpush3.bf16.msra.mxu1 %v5262_v25  ;;  %v2353_v25 = vsel %vm5807_vm5, %v4127_v20, %v2352_v48  ;;  %v2071_v22 = vrot.slane %v2070_v34, 4  ;;  %v5275_v20 = vld [vmem:[%s6807_s1 + $0x1d0] sm:$0xff]  }
  0x88   : > { %4587 = vmatprep.subr.bf16.mxu1 %v5266_v27  ;;  %v6264_v17 = vcombine.low %v2353_v25, %v2356_v49  ;;  %v5285_v49 = vld [vmem:[%s6807_s1 + $0x1f0] sm:$0xff]  }
  0x89   : > { %4556 = vmatmul.mubr.bf16.gmra.mrb[8].mxu1 %v6231_v12  ;;  %v2076_v48 = vsel %vm5600_vm2, %v2071_v22, %v2075_v52  ;;  %v1370_v52 = vrot.slane %v5437_v47, 5  ;;  %v6846_v47 = vld [vmem:[#allocation4_spill] sm:$0xff] }
  0x8a   : > { %4764 = vmatmul.mubr.bf16.gmra.mrb[24].mxu0 %v6233_v50  ;;  %4559 = vmatprep.mubr.bf16.mxu1 %v6237_v31 }
  0x8b   : > { %4767 = vmatprep.mubr.bf16.mxu0 %v6243_v42  ;;  %4588 = vmatpush3.bf16.msra.mxu1 %v5266_v27  ;;  %v2086_v27 = vsel %vm5600_vm2, %v2081_v8, %v2085_v56  ;;  %v5289_v8 = vld [vmem:[%s6807_s1 + $0x1f8] sm:$0xff]   ;;  %v5291_v56 = vld [vmem:[%s6807_s1 + $0x200] sm:$0xff]  }
  0x8c   : > { %4589 = vmatprep.subr.bf16.mxu1 %v5270_v54  ;;  %v6270_v57 = vcombine.low %v2076_v48, %v2086_v27  ;;  %v6351_v48 = vcombine.low %v6216_v14, %v6202_v24  ;;  %v5292_v27 = vld [vmem:[%s6807_s1 + $0xe8] sm:$0xff]   ;;  %v5294_v24 = vld [vmem:[%s6807_s1 + $0xf0] sm:$0xff]  }
  0x8f   : > { %4590 = vmatpush3.bf16.msra.mxu1 %v5270_v54  ;;  %v4021_v54 = vrot.slane %v5438_v2, 9  ;;  %v5298_v2 = vld [vmem:[%s6807_s1 + $0x220] sm:$0xff]  }
  0x90   : > { %4591 = vmatprep.subr.bf16.mxu1 %v5274_v36 }
  0x91   : > { %4560 = vmatmul.mubr.bf16.gmra.mrb[12].mxu1 %v6262_v41 }
  0x92   : > { %4768 = vmatmul.mubr.bf16.gmra.mrb[28].mxu0 %v6264_v17  ;;  %4563 = vmatprep.mubr.bf16.mxu1 %v6152_v28 }
  0x93   : > { %4787 = vmatprep.mubr.bf16.mxu0 %v5689_v60  ;;  %4592 = vmatpush3.bf16.msra.mxu1 %v5274_v36  ;;  %v5282_v36 = vld [vmem:[%s6807_s1 + $0xc8] sm:$0xff]  }
  0x94   : > { %4593 = vmatprep.subr.bf16.mxu1 %v5278_v0 }
  0x97   : > { %4594 = vmatpush3.bf16.msra.mxu1 %v5278_v0  ;;  %v6361_v0 = vld [vmem:[%s5555_s24 + $0xcc] sm:$0xf] }
  0x98   : > { %4627 = vmatprep.subr.bf16.mxu1 %v5280_v62 }
  0x99   : > { %4564 = vmatmul.mubr.bf16.gmra.mrb[16].mxu1 %v6163_v33 }
  0x9a   : > { %4788 = vmatmul.mubr.bf16.vlgmr.msra.gmra.mrb[0].mxu0 %v5760_v11  ;;  %4567 = vmatprep.mubr.bf16.mxu1 %v6174_v45 }
  0x9b   : > { %4820 = vmatpush3.bf16.msra.mxu0 %v6088_v30  ;;  %4791 = vmatprep.mubr.bf16.mxu0 %v5764_v15  ;;  %v5436_v30 = vld [vmem:[%s5555_s24 + $0x4] sm:$0xf] }
  0x9c   : > { %4821 = vmatprep.subr.bf16.mxu0 %v5271_v7  ;;  %v1367_v5 = vrot.slane %v5436_v30, 5  ;;  %v6844_v30 = vld [vmem:[#allocation2_spill] sm:$0xff] }
  0x9e   : > { %v1369_v34 = vrot.slane %v1367_v5, 4  ;;  %v1368_v63 = vsel %vm5807_vm5, %v4021_v54, %v1367_v5  ;;  %v5295_v5 = vld [vmem:[%s6807_s1 + $0x210] sm:$0xff]   ;;  %v5299_v54 = vld [vmem:[%s6807_s1 + $0x228] sm:$0xff]  }
  0x9f   : > { %4822 = vmatpush3.bf16.msra.mxu0 %v5271_v7  ;;  %v5296_v7 = vld [vmem:[%s6807_s1 + $0xf8] sm:$0xff]  }
  0xa0   : > { %4823 = vmatprep.subr.bf16.mxu0 %v5275_v20  ;;  %v1371_v25 = vsel %vm5807_vm5, %v1369_v34, %v1370_v52  ;;  %v6847_v52 = vld [vmem:[#allocation5_spill] sm:$0xff]  ;;  %v6848_v34 = vld [vmem:[#allocation6_spill] sm:$0xff] }
  0xa1   : > { %4568 = vmatmul.mubr.bf16.gmra.mrb[20].mxu1 %v6178_v40  ;;  %v4053_v22 = vcombine.low %v1368_v63, %v1371_v25  ;;  %v5300_v63 = vld [vmem:[%s6807_s1 + $0x230] sm:$0xff]   ;;  %v5301_v25 = vld [vmem:[%s6807_s1 + $0x238] sm:$0xff]  }
  0xa2   : > { %4792 = vmatmul.mubr.bf16.gmra.mrb[4].mxu0 %v6231_v12  ;;  %4571 = vmatprep.mubr.bf16.mxu1 %v6182_v53 }
  0xa3   : > { %4795 = vmatprep.mubr.bf16.mxu0 %v6237_v31  ;;  %4824 = vmatpush3.bf16.msra.mxu0 %v5275_v20  ;;  %v5293_v20 = vld [vmem:[%s6807_s1 + $0x208] sm:$0xff]  }
  0xa4   : > { %4825 = vmatprep.subr.bf16.mxu0 %v5279_v1 }
  0xa7   : > { %4826 = vmatpush3.bf16.msra.mxu0 %v5279_v1  ;;  %v5439_v1 = vld [vmem:[%s6807_s1 + $0x100] sm:$0xff]  }
  0xa8   : > { %4827 = vmatprep.subr.bf16.mxu0 %v5281_v32 }
  0xa9   : > { %4572 = vmatmul.mubr.bf16.gmra.mrb[24].mxu1 %v6186_v9 }
  0xaa   : > { %4796 = vmatmul.mubr.bf16.gmra.mrb[8].mxu0 %v6262_v41  ;;  %4575 = vmatprep.mubr.bf16.mxu1 %v6190_v16 }
  0xab   : > { %4799 = vmatprep.mubr.bf16.mxu0 %v6152_v28  ;;  %4828 = vmatpush3.bf16.msra.mxu0 %v5281_v32  ;;  %v5297_v32 = vld [vmem:[%s6807_s1 + $0x218] sm:$0xff]  }
  0xac   : > { %4829 = vmatprep.subr.bf16.mxu0 %v5283_v59 }
  0xaf   : > { %4830 = vmatpush3.bf16.msra.mxu0 %v5283_v59  ;;  %v6849_v59 = vld [vmem:[#allocation7_spill] sm:$0xff] }
  0xb0   : > { %4831 = vmatprep.subr.bf16.mxu0 %v5285_v49 }
  0xb1   : > { %4576 = vmatmul.mubr.bf16.gmra.mrb[28].mxu1 %v6197_v38 }
  0xb2   : > { %4800 = vmatmul.mubr.bf16.gmra.mrb[12].mxu0 %v6163_v33  ;;  %4595 = vmatprep.mubr.bf16.mxu1 %v4053_v22  ;;  %v6851_v22 = vld [vmem:[#allocation9_spill] sm:$0xff] }
  0xb3   : > { %4803 = vmatprep.mubr.bf16.mxu0 %v6174_v45  ;;  %4832 = vmatpush3.bf16.msra.mxu0 %v5285_v49  ;;  %v6850_v49 = vld [vmem:[#allocation8_spill] sm:$0xff] }
  0xb4   : > { %4833 = vmatprep.subr.bf16.mxu0 %v5289_v8 }
  0xb7   : > { %4834 = vmatpush3.bf16.msra.mxu0 %v5289_v8  ;;  %v6852_v8 = vld [vmem:[#allocation10_spill] sm:$0xff] }
  0xb8   : > { %4867 = vmatprep.subr.bf16.mxu0 %v5291_v56 }
  0xb9   : > { %4596 = vmatmul.mubr.bf16.vlgmr.msra.gmra.mrb[0].mxu1 %v5855_v39  ;;  %v5290_v39 = vld [vmem:[%s6807_s1 + $0xe0] sm:$0xff]  }
  0xba   : > { %4804 = vmatmul.mubr.bf16.gmra.mrb[16].mxu0 %v6178_v40  ;;  %4628 = vmatpush3.bf16.msra.mxu1 %v5280_v62  ;;  %v6364_v62 = vld [vmem:[%s5555_s24 + $0xd0] sm:$0xf] }
  0xbb   : > { %4599 = vmatprep.mubr.bf16.mxu1 %v5901_v26  ;;  %4807 = vmatprep.mubr.bf16.mxu0 %v6182_v53  ;;  %v4169_v14 = vcombine.low %v6361_v0, %v6364_v62 }
  0xbc   : > { %4629 = vmatprep.subr.bf16.mxu1 %v5282_v36 }
  0xbe   : > { %4630 = vmatpush3.bf16.msra.mxu1 %v5282_v36  ;;  %v2887_v36 = vshll.u32 %v6361_v0, 16 }
  0xbf   : > { %4631 = vmatprep.subr.bf16.mxu1 %v5284_v6 }
  0xc1   : > { %4600 = vmatmul.mubr.bf16.gmra.mrb[4].mxu1 %v5941_v46 }
  0xc2   : > { %4808 = vmatmul.mubr.bf16.gmra.mrb[20].mxu0 %v6186_v9  ;;  %4603 = vmatprep.mubr.bf16.mxu1 %v5978_v44 }
  0xc3   : > { %4811 = vmatprep.mubr.bf16.mxu0 %v6190_v16  ;;  %4632 = vmatpush3.bf16.msra.mxu1 %v5284_v6  ;;  %v2897_v6 = vshrl.u32 %v6364_v62, 16 }
  0xc4   : > { %4633 = vmatprep.subr.bf16.mxu1 %v5287_v10 }
  0xc7   : > { %4634 = vmatpush3.bf16.msra.mxu1 %v5287_v10  ;;  %v6853_v10 = vld [vmem:[#allocation11_spill] sm:$0xff] }
  0xc8   : > { %4635 = vmatprep.subr.bf16.mxu1 %v5290_v39 }
  0xc9   : > { %4604 = vmatmul.mubr.bf16.gmra.mrb[8].mxu1 %v6011_v19 }
  0xca   : > { %4812 = vmatmul.mubr.bf16.gmra.mrb[24].mxu0 %v6197_v38  ;;  %4607 = vmatprep.mubr.bf16.mxu1 %v6043_v35 }
  0xcb   : > { %4815 = vmatprep.mubr.bf16.mxu0 %v6351_v48  ;;  %4636 = vmatpush3.bf16.msra.mxu1 %v5290_v39 }
  0xcc   : > { %4637 = vmatprep.subr.bf16.mxu1 %v5292_v27 }
  0xcf   : > { %4638 = vmatpush3.bf16.msra.mxu1 %v5292_v27  ;;  %v2889_v27 = vrot.slane %v2887_v36, 5 }
  0xd0   : > { %4639 = vmatprep.subr.bf16.mxu1 %v5294_v24 }
  0xd1   : > { %4608 = vmatmul.mubr.bf16.gmra.mrb[12].mxu1 %v6077_v21 }
  0xd2   : > { %4816 = vmatmul.mubr.bf16.gmra.mrb[28].mxu0 %v4169_v14  ;;  %4611 = vmatprep.mubr.bf16.mxu1 %v6109_v58  ;;  %v2899_v14 = vrot.slane %v2897_v6, 4 }
  0xd3   : > { %4835 = vmatprep.mubr.bf16.mxu0 %v5677_v51  ;;  %4640 = vmatpush3.bf16.msra.mxu1 %v5294_v24  ;;  %v6845_v51 = vld [vmem:[#allocation3_spill] sm:$0xff] }
  0xd4   : > { %4641 = vmatprep.subr.bf16.mxu1 %v5296_v7 }
  0xd7   : > { %4642 = vmatpush3.bf16.msra.mxu1 %v5296_v7  ;;  %v5441_v7 = vld [vmem:[%s6807_s1 + $0x110] sm:$0xff]  }
  0xd8   : > { %4915 = vmatprep.subr.bf16.mxu1 %v5439_v1 }
  0xd9   : > { %4612 = vmatmul.mubr.bf16.gmra.mrb[16].mxu1 %v6114_v18 }
  0xda   : > { %4836 = vmatmul.mubr.bf16.vlgmr.msra.gmra.mrb[0].mxu0 %v6844_v30  ;;  %4615 = vmatprep.mubr.bf16.mxu1 %v6134_v13 }
  0xdb   : > { %4868 = vmatpush3.bf16.msra.mxu0 %v5291_v56  ;;  %4839 = vmatprep.mubr.bf16.mxu0 %v6845_v51  ;;  %v2884_v56 = vshrl.u32 %v6361_v0, 16 }
  0xdc   : > { %4869 = vmatprep.subr.bf16.mxu0 %v5293_v20 }
  0xdd   : > { %v2886_v39 = vrot.slane %v2884_v56, 4 }
  0xdf   : > { %4870 = vmatpush3.bf16.msra.mxu0 %v5293_v20  ;;  %v6854_v20 = vld [vmem:[#allocation12_spill] sm:$0xff] }
  0xe0   : > { %4871 = vmatprep.subr.bf16.mxu0 %v5295_v5 }
  0xe1   : > { %4616 = vmatmul.mubr.bf16.gmra.mrb[20].mxu1 %v6139_v29 }
  0xe2   : > { %4840 = vmatmul.mubr.bf16.gmra.mrb[4].mxu0 %v6846_v47  ;;  %4619 = vmatprep.mubr.bf16.mxu1 %v6192_v4 }
  0xe3   : > { %4843 = vmatprep.mubr.bf16.mxu0 %v6847_v52  ;;  %4872 = vmatpush3.bf16.msra.mxu0 %v5295_v5  ;;  %v5442_v5 = vld [vmem:[%s6807_s1 + $0x118] sm:$0xff]  }
  0xe4   : > { %4873 = vmatprep.subr.bf16.mxu0 %v5297_v32 }
  0xe7   : > { %4874 = vmatpush3.bf16.msra.mxu0 %v5297_v32 }
  0xe8   : > { %4875 = vmatprep.subr.bf16.mxu0 %v5298_v2 }
  0xe9   : > { %4620 = vmatmul.mubr.bf16.gmra.mrb[24].mxu1 %v6199_v3 }
  0xea   : > { %4844 = vmatmul.mubr.bf16.gmra.mrb[8].mxu0 %v6848_v34  ;;  %4623 = vmatprep.mubr.bf16.mxu1 %v6233_v50 }
  0xeb   : > { %4847 = vmatprep.mubr.bf16.mxu0 %v6849_v59  ;;  %4876 = vmatpush3.bf16.msra.mxu0 %v5298_v2 }
  0xec   : > { %4877 = vmatprep.subr.bf16.mxu0 %v5299_v54 }
  0xef   : > { %4878 = vmatpush3.bf16.msra.mxu0 %v5299_v54  ;;  %v5444_v54 = vld [vmem:[%s6807_s1 + $0x128] sm:$0xff]  }
  0xf0   : > { %4879 = vmatprep.subr.bf16.mxu0 %v5300_v63 }
  0xf1   : > { %4624 = vmatmul.mubr.bf16.gmra.mrb[28].mxu1 %v6243_v42 }
  0xf2   : > { %4848 = vmatmul.mubr.bf16.gmra.mrb[12].mxu0 %v6850_v49  ;;  %4643 = vmatprep.mubr.bf16.mxu1 %v5613_v43  ;;  %v2893_v43 = vshll.u32 %v6364_v62, 16 }
  0xf3   : > { %4851 = vmatprep.mubr.bf16.mxu0 %v6851_v22  ;;  %4880 = vmatpush3.bf16.msra.mxu0 %v5300_v63 }
  0xf4   : > { %4881 = vmatprep.subr.bf16.mxu0 %v5301_v25  ;;  %v2895_v24 = vrot.slane %v2893_v43, 5 }
  0xf6   : > { %v2900_v30 = vor.u32 %v2899_v14, %v2895_v24 }
  0xf7   : > { %4882 = vmatpush3.bf16.msra.mxu0 %v5301_v25 }
  0xf8   : > { %v2901_v47 = vrot.slane %v2900_v30, 4 }
  0xf9   : > { %4644 = vmatmul.mubr.bf16.vlgmr.msra.gmra.mrb[0].mxu1 %v5689_v60  ;;  %v5440_v60 = vld [vmem:[%s6807_s1 + $0x108] sm:$0xff]  }
  0xfa   : > { %4852 = vmatmul.mubr.bf16.gmra.mrb[16].mxu0 %v6852_v8  ;;  %4923 = vmatpush3.bf16.msra.mxu1 %v5439_v1  ;;  %v2890_v1 = vor.u32 %v2889_v27, %v2886_v39 }
  0xfb   : > { %4647 = vmatprep.mubr.bf16.mxu1 %v5760_v11  ;;  %4855 = vmatprep.mubr.bf16.mxu0 %v6853_v10  ;;  %v6432_v11 = vld [vmem:[%s5555_s24 + $0xd4] sm:$0x1] }
  0xfc   : > { %4916 = vmatprep.subr.bf16.mxu1 %v5440_v60  ;;  %v2903_v51 = vshll.u32 %v6432_v11, 16  ;;  %v2891_v32 = vrot.slane %v2890_v1, 4 }
  0xfe   : > { %4924 = vmatpush3.bf16.msra.mxu1 %v5440_v60  ;;  %v2905_v52 = vrot.slane %v2903_v51, 5 }
  0xff   : > { %4917 = vmatprep.subr.bf16.mxu1 %v5441_v7 }
 0x100   : > { %v2906_v2 = vsel %vm5600_vm2, %v2901_v47, %v2905_v52 }
 0x101   : > { %4648 = vmatmul.mubr.bf16.gmra.mrb[4].mxu1 %v5764_v15  ;;  %v5443_v15 = vld [vmem:[%s6807_s1 + $0x120] sm:$0xff]  }
 0x102   : > { %4856 = vmatmul.mubr.bf16.gmra.mrb[20].mxu0 %v6854_v20  ;;  %4651 = vmatprep.mubr.bf16.mxu1 %v6231_v12  ;;  %v2896_v12 = vsel %vm5600_vm2, %v2891_v32, %v2895_v24 }
 0x103   : > { %4859 = vmatprep.mubr.bf16.mxu0 %v6073_v55  ;;  %4925 = vmatpush3.bf16.msra.mxu1 %v5441_v7  ;;  %v4194_v34 = vcombine.low %v2896_v12, %v2906_v2 }
 0x104   : > { %4918 = vmatprep.subr.bf16.mxu1 %v5442_v5 }
 0x107   : > { %4926 = vmatpush3.bf16.msra.mxu1 %v5442_v5 }
 0x108   : > { %4919 = vmatprep.subr.bf16.mxu1 %v5443_v15 }
 0x109   : > { %4652 = vmatmul.mubr.bf16.gmra.mrb[8].mxu1 %v6237_v31  ;;  %v5445_v31 = vld [vmem:[%s6807_s1 + $0x130] sm:$0xff]  }
 0x10a   : > { %4860 = vmatmul.mubr.bf16.gmra.mrb[24].mxu0 %v6107_v61  ;;  %4655 = vmatprep.mubr.bf16.mxu1 %v6262_v41 }
 0x10b   : > { %4863 = vmatprep.mubr.bf16.mxu0 %v6270_v57  ;;  %4927 = vmatpush3.bf16.msra.mxu1 %v5443_v15 }
 0x10c   : > { %4920 = vmatprep.subr.bf16.mxu1 %v5444_v54 }
 0x10f   : > { %4928 = vmatpush3.bf16.msra.mxu1 %v5444_v54 }
 0x110   : > { %4921 = vmatprep.subr.bf16.mxu1 %v5445_v31 }
 0x111   : > { %4656 = vmatmul.mubr.bf16.gmra.mrb[12].mxu1 %v6152_v28 }
 0x112   : > { %4864 = vmatmul.mubr.bf16.gmra.mrb[28].mxu0 %v4194_v34  ;;  %4659 = vmatprep.mubr.bf16.mxu1 %v6163_v33 }
 0x113   : > { %4883 = vmatprep.mubr.bf16.mxu0 %v5901_v26  ;;  %4929 = vmatpush3.bf16.msra.mxu1 %v5445_v31  ;;  %v3172_v26 = vrot.slane %v6364_v62, 5 }
 0x114   : > { %4922 = vmatprep.subr.bf16.mxu1 %v5446_v37 }
 0x117   : > { %4930 = vmatpush3.bf16.msra.mxu1 %v5446_v37 }
 0x119   : > { %4660 = vmatmul.mubr.bf16.gmra.mrb[16].mxu1 %v6174_v45 }
 0x11a   : > { %4884 = vmatmul.mubr.bf16.vlgmr.msra.gmra.mrb[0].mxu0 %v5941_v46  ;;  %4663 = vmatprep.mubr.bf16.mxu1 %v6178_v40  ;;  %v4203_v46 = vrot.slane %v6361_v0, 9 }
 0x11b   : > { %4887 = vmatprep.mubr.bf16.mxu0 %v5978_v44  ;;  %v3174_v44 = vrot.slane %v3172_v26, 4 }
 0x121   : > { %4664 = vmatmul.mubr.bf16.gmra.mrb[20].mxu1 %v6182_v53 }
 0x122   : > { %4888 = vmatmul.mubr.bf16.gmra.mrb[4].mxu0 %v6011_v19  ;;  %4667 = vmatprep.mubr.bf16.mxu1 %v6186_v9  ;;  %v3175_v19 = vrot.slane %v6432_v11, 5 }
 0x123   : > { %4891 = vmatprep.mubr.bf16.mxu0 %v6043_v35  ;;  %v3173_v35 = vsel %vm5807_vm5, %v4203_v46, %v3172_v26 }
 0x129   : > { %4668 = vmatmul.mubr.bf16.gmra.mrb[24].mxu1 %v6190_v16 }
 0x12a   : > { %4892 = vmatmul.mubr.bf16.gmra.mrb[8].mxu0 %v6077_v21  ;;  %4671 = vmatprep.mubr.bf16.mxu1 %v6197_v38  ;;  %v3176_v21 = vsel %vm5807_vm5, %v3174_v44, %v3175_v19 }
 0x12b   : > { %4895 = vmatprep.mubr.bf16.mxu0 %v6109_v58  ;;  %v4220_v58 = vcombine.low %v3173_v35, %v3176_v21 }
 0x131   : > { %4672 = vmatmul.mubr.bf16.gmra.mrb[28].mxu1 %v6351_v48 }
 0x132   : > { %4896 = vmatmul.mubr.bf16.gmra.mrb[12].mxu0 %v6114_v18  ;;  %4707 = vmatprep.mubr.bf16.mxu1 %v6850_v49 }
 0x133   : > { %4899 = vmatprep.mubr.bf16.mxu0 %v6134_v13 }
 0x139   : > { %4708 = vmatmul.mubr.bf16.vlgmr.msra.gmra.mrb[16].mxu1 %v6851_v22 }
 0x13a   : > { %4900 = vmatmul.mubr.bf16.gmra.mrb[16].mxu0 %v6139_v29  ;;  %4711 = vmatprep.mubr.bf16.mxu1 %v6852_v8 }
 0x13b   : > { %4903 = vmatprep.mubr.bf16.mxu0 %v6192_v4 }
 0x141   : > { %4712 = vmatmul.mubr.bf16.gmra.mrb[20].mxu1 %v6853_v10 }
 0x142   : > { %4904 = vmatmul.mubr.bf16.gmra.mrb[20].mxu0 %v6199_v3  ;;  %4715 = vmatprep.mubr.bf16.mxu1 %v6854_v20 }
 0x143   : > { %4907 = vmatprep.mubr.bf16.mxu0 %v6233_v50 }
 0x149   : > { %4716 = vmatmul.mubr.bf16.gmra.mrb[24].mxu1 %v6073_v55 }
 0x14a   : > { %4908 = vmatmul.mubr.bf16.gmra.mrb[24].mxu0 %v6243_v42  ;;  %4719 = vmatprep.mubr.bf16.mxu1 %v6107_v61  ;;  %v6514_v42 = vld [vmem:[%s6808_s2] ss:$0 sm:$0xff] }
 0x14b   : > { %4911 = vmatprep.mubr.bf16.mxu0 %v6264_v17 }
 0x151   : > { %4720 = vmatmul.mubr.bf16.gmra.mrb[28].mxu1 %v6270_v57  ;;  %v6519_v57 = vld [vmem:[%s6809_s3] ss:$0 sm:$0xff] }
 0x152   : > { %4912 = vmatmul.mubr.bf16.gmra.mrb[28].mxu0 %v4220_v58 }
 0x1cc   : > { %v4645_v18 = vpop.f32.mrb[0].mxu1 }
 0x1cd   : > { %v1904_v13 = vpop.f32.mrb[1].mxu1 }
 0x1ce   : > { %v4646_v29 = vpop.f32.mrb[2].mxu1 }
 0x1cf   : > { %v1907_v55 = vpop.f32.mrb[3].mxu1 }
 0x1d4   : > { %v4649_v28 = vpop.f32.mrb[4].mxu1 }
 0x1d5   : > { %v1920_v33 = vpop.f32.mrb[5].mxu1 }
 0x1d6   : > { %v4650_v45 = vpop.f32.mrb[6].mxu1 }
 0x1d7   : > { %v1923_v61 = vpop.f32.mrb[7].mxu1 }
 0x1dc   : > { %v4653_v40 = vpop.f32.mrb[8].mxu1 }
 0x1dd   : > { %v1936_v53 = vpop.f32.mrb[9].mxu1 }
 0x1de   : > { %v4654_v9 = vpop.f32.mrb[10].mxu1 }
 0x1df   : > { %v6501_v16 = vpop.f32.mrb[11].mxu1 }
 0x1e4   : > { %v6503_v4 = vpop.f32.mrb[12].mxu1 }
 0x1e5   : > { %v6505_v23 = vpop.f32.mrb[13].mxu1 }
 0x1e6   : > { %v6507_v38 = vpop.f32.mrb[14].mxu1 }
 0x1e7   : > { %v6509_v3 = vpop.f32.mrb[15].mxu1 }
 0x1ed   : > { %v4885_v50 = vpop.f32.mrb[0].mxu0 }
 0x1ee   : > { %v4931_v41 = vadd.f32 %v4885_v50, %v4645_v18  ;;  %v3280_v17 = vpop.f32.mrb[1].mxu0 }
 0x1ef   : > { %v4932_v48 = vadd.f32 %v3280_v17, %v1904_v13  ;;  %v4886_v0 = vpop.f32.mrb[2].mxu0 }
 0x1f0   : > { %v3448_v62 = vmul.f32 %v4931_v41, %v6514_v42  ;;  %v4933_v59 = vadd.f32 %v4886_v0, %v4646_v29  ;;  %v3283_v63 = vpop.f32.mrb[3].mxu0 }
 0x1f1   : > { %v3446_v25 = vmul.f32 %v4932_v48, %v6514_v42  ;;  %v4934_v49 = vadd.f32 %v3283_v63, %v1907_v55 }
 0x1f2   : > { %v6524_v22 = vadd.f32 %v6519_v57, %v3448_v62  ;;  %v3449_v8 = vmul.f32 %v4933_v59, %v6514_v42 }
 0x1f3   : > { %v6528_v56 = vadd.f32 %v6519_v57, %v3446_v25  ;;  %v3447_v36 = vmul.f32 %v4934_v49, %v6514_v42 }
 0x1f4   : > { %v4233_v6 = vmul.f32 -1.442695, %v6524_v22  ;;  %v6533_v43 = vadd.f32 %v6519_v57, %v3449_v8 }
 0x1f5   : > { %v4231_v10 = vmul.f32 -1.442695, %v6528_v56  ;;  %v6537_v60 = vadd.f32 %v6519_v57, %v3447_v36  ;;  %v4889_v39 = vpop.f32.mrb[4].mxu0 }
 0x1f6   : > { %5302 = vpow2.f32 %v4233_v6  ;;  %v4234_v27 = vmul.f32 -1.442695, %v6533_v43  ;;  %v4935_v24 = vadd.f32 %v4889_v39, %v4649_v28  ;;  %v3296_v14 = vpop.f32.mrb[5].mxu0 }
 0x1f7   : > { %5304 = vpow2.f32 %v4231_v10  ;;  %v4232_v7 = vmul.f32 -1.442695, %v6537_v60  ;;  %v4936_v11 = vadd.f32 %v3296_v14, %v1920_v33  ;;  %v4890_v20 = vpop.f32.mrb[6].mxu0 }
 0x1f8   : > { %5306 = vpow2.f32 %v4234_v27  ;;  %v3452_v1 = vmul.f32 %v4935_v24, %v6514_v42  ;;  %v4937_v30 = vadd.f32 %v4890_v20, %v4650_v45  ;;  %v3299_v51 = vpop.f32.mrb[7].mxu0 }
 0x1f9   : > { %5308 = vpow2.f32 %v4232_v7  ;;  %v3450_v5 = vmul.f32 %v4936_v11, %v6514_v42  ;;  %v4938_v32 = vadd.f32 %v3299_v51, %v1923_v61 }
 0x1fa   : > { %v6544_v47 = vadd.f32 %v6519_v57, %v3452_v1  ;;  %v3453_v52 = vmul.f32 %v4937_v30, %v6514_v42 }
 0x1fb   : > { %v6548_v15 = vadd.f32 %v6519_v57, %v3450_v5  ;;  %v3451_v12 = vmul.f32 %v4938_v32, %v6514_v42 }
 0x1fc   : > { %v4237_v2 = vmul.f32 -1.442695, %v6544_v47  ;;  %v6553_v54 = vadd.f32 %v6519_v57, %v3453_v52 }
 0x1fd   : > { %v4235_v34 = vmul.f32 -1.442695, %v6548_v15  ;;  %v6557_v31 = vadd.f32 %v6519_v57, %v3451_v12  ;;  %v4893_v37 = vpop.f32.mrb[8].mxu0 }
 0x1fe   : > { %5310 = vpow2.f32 %v4237_v2  ;;  %v4238_v26 = vmul.f32 -1.442695, %v6553_v54  ;;  %v4939_v46 = vadd.f32 %v4893_v37, %v4653_v40  ;;  %v3312_v44 = vpop.f32.mrb[9].mxu0 }
 0x1ff   : > { %5312 = vpow2.f32 %v4235_v34  ;;  %v4236_v19 = vmul.f32 -1.442695, %v6557_v31  ;;  %v4940_v35 = vadd.f32 %v3312_v44, %v1936_v53  ;;  %v4894_v21 = vpop.f32.mrb[10].mxu0 }
 0x200   : > { %v5303_v58 = vpop.eup %5302  ;;  %5314 = vpow2.f32 %v4238_v26  ;;  %v3456_v18 = vmul.f32 %v4939_v46, %v6514_v42  ;;  %v4941_v13 = vadd.f32 %v4894_v21, %v4654_v9  ;;  %v3315_v29 = vpop.f32.mrb[11].mxu0  ;;  %v3743_v26 = vld [vmem:[%s6594_s6 + $0x10] sm:$0xff] }
 0x201   : > { %v5305_v55 = vpop.eup %5304  ;;  %v3615_v28 = vadd.f32 1.0, %v5303_v58  ;;  %5316 = vpow2.f32 %v4236_v19  ;;  %v3454_v33 = vmul.f32 %v4940_v35, %v6514_v42  ;;  %v4942_v45 = vadd.f32 %v3315_v29, %v6501_v16 }
 0x202   : > { %v5307_v61 = vpop.eup %5306  ;;  %v3613_v40 = vadd.f32 1.0, %v5305_v55  ;;  %v6565_v50 = vadd.f32 %v6519_v57, %v3456_v18  ;;  %v3457_v53 = vmul.f32 %v4941_v13, %v6514_v42  ;;  %v3741_v18 = vld [vmem:[%s6594_s6] sm:$0xff] }
 0x203   : > { %v5309_v41 = vpop.eup %5308  ;;  %5318 = vrcp.f32 %v3615_v28  ;;  %v3616_v17 = vadd.f32 1.0, %v5307_v61  ;;  %v6569_v9 = vadd.f32 %v6519_v57, %v3454_v33  ;;  %v3455_v48 = vmul.f32 %v4942_v45, %v6514_v42  ;;  %v3744_v61 = vld [vmem:[%s6594_s6 + $0x18] sm:$0xff] }
 0x204   : > { %5320 = vrcp.f32 %v3613_v40  ;;  %v3614_v0 = vadd.f32 1.0, %v5309_v41  ;;  %v4241_v16 = vmul.f32 -1.442695, %v6565_v50  ;;  %v6574_v62 = vadd.f32 %v6519_v57, %v3457_v53 }
 0x205   : > { %5322 = vrcp.f32 %v3616_v17  ;;  %v4239_v59 = vmul.f32 -1.442695, %v6569_v9  ;;  %v6578_v63 = vadd.f32 %v6519_v57, %v3455_v48  ;;  %v4897_v25 = vpop.f32.mrb[12].mxu0 }
 0x206   : > { %5324 = vrcp.f32 %v3614_v0  ;;  %v4242_v49 = vmul.f32 -1.442695, %v6574_v62  ;;  %v4943_v8 = vadd.f32 %v4897_v25, %v6503_v4  ;;  %v3328_v36 = vpop.f32.mrb[13].mxu0 }
 0x207   : > { %5326 = vpow2.f32 %v4241_v16  ;;  %v4240_v6 = vmul.f32 -1.442695, %v6578_v63  ;;  %v4944_v10 = vadd.f32 %v3328_v36, %v6505_v23  ;;  %v4898_v39 = vpop.f32.mrb[14].mxu0  ;;  %v3742_v16 = vld [vmem:[%s6594_s6 + $0x8] sm:$0xff] }
 0x208   : > { %v5311_v27 = vpop.eup %5310  ;;  %5328 = vpow2.f32 %v4239_v59  ;;  %v3460_v24 = vmul.f32 %v4943_v8, %v6514_v42  ;;  %v4945_v14 = vadd.f32 %v4898_v39, %v6507_v38  ;;  %v3331_v7 = vpop.f32.mrb[15].mxu0 }
 0x209   : > { %v5313_v11 = vpop.eup %5312  ;;  %v3619_v20 = vadd.f32 1.0, %v5311_v27  ;;  %5330 = vpow2.f32 %v4242_v49  ;;  %v3458_v4 = vmul.f32 %v4944_v10, %v6514_v42  ;;  %v4946_v1 = vadd.f32 %v3331_v7, %v6509_v3 }
 0x20a   : > { %v5315_v30 = vpop.eup %5314  ;;  %v3617_v23 = vadd.f32 1.0, %v5313_v11  ;;  %5332 = vpow2.f32 %v4240_v6  ;;  %v6597_v38 = vadd.f32 %v6519_v57, %v3460_v24  ;;  %v3461_v51 = vmul.f32 %v4945_v14, %v6514_v42 }
 0x20b   : > { %v5317_v5 = vpop.eup %5316  ;;  %5334 = vrcp.f32 %v3619_v20  ;;  %v3620_v32 = vadd.f32 1.0, %v5315_v30  ;;  %v6601_v3 = vadd.f32 %v6519_v57, %v3458_v4  ;;  %v3459_v52 = vmul.f32 %v4946_v1, %v6514_v42 }
 0x20c   : > { %5336 = vrcp.f32 %v3617_v23  ;;  %v3618_v12 = vadd.f32 1.0, %v5317_v5  ;;  %v4245_v2 = vmul.f32 -1.442695, %v6597_v38  ;;  %v6606_v34 = vadd.f32 %v6519_v57, %v3461_v51  ;;  %v4709_v19 = vpop.f32.mrb[16].mxu1  ;;  %v3747_v51 = vld [vmem:[%s6594_s6 + $0x30] sm:$0xff] }
 0x20d   : > { %v5319_v37 = vpop.eup %5318  ;;  %5338 = vrcp.f32 %v3620_v32  ;;  %v4243_v46 = vmul.f32 -1.442695, %v6601_v3  ;;  %v6611_v44 = vadd.f32 %v6519_v57, %v3459_v52  ;;  %v4901_v35 = vpop.f32.mrb[16].mxu0 }
 0x20e   : > { %v5321_v21 = vpop.eup %5320  ;;  %v3711_v58 = vmul.f32 %v5319_v37, %v6524_v22  ;;  %5340 = vrcp.f32 %v3618_v12  ;;  %v4246_v13 = vmul.f32 -1.442695, %v6606_v34  ;;  %v4947_v29 = vadd.f32 %v4901_v35, %v4709_v19  ;;  %v2254_v55 = vpop.f32.mrb[17].mxu1 }
 0x20f   : > { %v3344_v28 = vpop.f32.mrb[17].mxu0  ;;  %v5323_v33 = vpop.eup %5322  ;;  %v3709_v45 = vmul.f32 %v5321_v21, %v6528_v56  ;;  %5342 = vpow2.f32 %v4245_v2  ;;  %v4244_v22 = vmul.f32 -1.442695, %v6611_v44 }
 0x210   : > { %v4948_v40 = vadd.f32 %v3344_v28, %v2254_v55  ;;  %v4710_v53 = vpop.f32.mrb[18].mxu1  ;;  %v4902_v41 = vpop.f32.mrb[18].mxu0  ;;  %v3775_v48 = vadd.f32 %v3743_v26, %v3711_v58  ;;  %v3712_v0 = vmul.f32 %v5323_v33, %v6533_v43  ;;  %5344 = vpow2.f32 %v4243_v46  ;;  %v3745_v46 = vld [vmem:[%s6594_s6 + $0x20] sm:$0xff] }
 0x211   : > { %v5325_v17 = vpop.eup %5324  ;;  %v3464_v59 = vmul.f32 %v4947_v29, %v6514_v42  ;;  %v2257_v25 = vpop.f32.mrb[19].mxu1  ;;  %v3773_v8 = vadd.f32 %v3741_v18, %v3709_v45  ;;  %5346 = vpow2.f32 %v4246_v13  ;;  %v4949_v11 = vadd.f32 %v4902_v41, %v4710_v53  ;;  %v3748_v29 = vld [vmem:[%s6594_s6 + $0x38] sm:$0xff] }
 0x212   : > { %v3347_v49 = vpop.f32.mrb[19].mxu0  ;;  %v5327_v56 = vpop.eup %5326  ;;  %v3710_v36 = vmul.f32 %v5325_v17, %v6537_v60  ;;  %v3462_v6 = vmul.f32 %v4948_v40, %v6514_v42  ;;  %3807 = vst [vmem:[%s6621_s9 + $0x10] sm:$0xff] %v3775_v48  ;;  %v3776_v39 = vadd.f32 %v3744_v61, %v3712_v0  ;;  %5348 = vpow2.f32 %v4244_v22  ;;  %v3746_v40 = vld [vmem:[%s6594_s6 + $0x28] sm:$0xff] }
 0x213   : > { %v5329_v10 = vpop.eup %5328  ;;  %v3623_v27 = vadd.f32 1.0, %v5327_v56  ;;  %v6633_v43 = vadd.f32 %v6519_v57, %v3464_v59  ;;  %3805 = vst [vmem:[%s6621_s9] sm:$0xff] %v3773_v8  ;;  %v4950_v30 = vadd.f32 %v3347_v49, %v2257_v25  ;;  %v3465_v52 = vmul.f32 %v4949_v11, %v6514_v42 }
 0x214   : > { %v5331_v24 = vpop.eup %5330  ;;  %v3774_v14 = vadd.f32 %v3742_v16, %v3710_v36  ;;  %v3621_v7 = vadd.f32 1.0, %v5329_v10  ;;  %v6637_v60 = vadd.f32 %v6519_v57, %v3462_v6  ;;  %3808 = vst [vmem:[%s6621_s9 + $0x18] sm:$0xff] %v3776_v39  ;;  %v4713_v12 = vpop.f32.mrb[20].mxu1 }
 0x215   : > { %v5333_v20 = vpop.eup %5332  ;;  %5350 = vrcp.f32 %v3623_v27  ;;  %v3624_v4 = vadd.f32 1.0, %v5331_v24  ;;  %v4249_v1 = vmul.f32 -1.442695, %v6633_v43  ;;  %v4905_v2 = vpop.f32.mrb[20].mxu0  ;;  %v3463_v19 = vmul.f32 %v4950_v30, %v6514_v42  ;;  %v3751_v30 = vld [vmem:[%s6594_s6 + $0x50] sm:$0xff] }
 0x216   : > { %v5335_v23 = vpop.eup %5334  ;;  %3806 = vst [vmem:[%s6621_s9 + $0x8] sm:$0xff] %v3774_v14  ;;  %5352 = vrcp.f32 %v3621_v7  ;;  %v3622_v5 = vadd.f32 1.0, %v5333_v20  ;;  %v4247_v32 = vmul.f32 -1.442695, %v6637_v60  ;;  %v4951_v35 = vadd.f32 %v4905_v2, %v4713_v12  ;;  %v2270_v21 = vpop.f32.mrb[21].mxu1 }
 0x217   : > { %v5337_v37 = vpop.eup %5336  ;;  %v3715_v26 = vmul.f32 %v5335_v23, %v6544_v47  ;;  %5354 = vrcp.f32 %v3624_v4  ;;  %v3360_v58 = vpop.f32.mrb[21].mxu0  ;;  %v6651_v55 = vadd.f32 %v6519_v57, %v3465_v52  ;;  %v6656_v53 = vadd.f32 %v6519_v57, %v3463_v19 }
 0x218   : > { %v5339_v18 = vpop.eup %5338  ;;  %v3713_v13 = vmul.f32 %v5337_v37, %v6548_v15  ;;  %5356 = vrcp.f32 %v3622_v5  ;;  %v4952_v28 = vadd.f32 %v3360_v58, %v2270_v21  ;;  %v4714_v33 = vpop.f32.mrb[22].mxu1  ;;  %v3468_v56 = vmul.f32 %v4951_v35, %v6514_v42  ;;  %v3749_v37 = vld [vmem:[%s6594_s6 + $0x40] sm:$0xff] }
 0x219   : > { %v4906_v47 = vpop.f32.mrb[22].mxu0  ;;  %v5341_v45 = vpop.eup %5340  ;;  %v3779_v61 = vadd.f32 %v3747_v51, %v3715_v26  ;;  %v3716_v22 = vmul.f32 %v5339_v18, %v6553_v54  ;;  %5358 = vpow2.f32 %v4249_v1  ;;  %v4250_v16 = vmul.f32 -1.442695, %v6651_v55  ;;  %v3752_v18 = vld [vmem:[%s6594_s6 + $0x58] sm:$0xff] }
 0x21a   : > { %v2273_v15 = vpop.f32.mrb[23].mxu1  ;;  %v3363_v41 = vpop.f32.mrb[23].mxu0  ;;  %v3777_v48 = vadd.f32 %v3745_v46, %v3713_v13  ;;  %v3714_v0 = vmul.f32 %v5341_v45, %v6557_v31  ;;  %5360 = vpow2.f32 %v4247_v32  ;;  %v4248_v49 = vmul.f32 -1.442695, %v6656_v53 }
 0x21b   : > { %v5343_v17 = vpop.eup %5342  ;;  %3811 = vst [vmem:[%s6621_s9 + $0x30] sm:$0xff] %v3779_v61  ;;  %v3780_v25 = vadd.f32 %v3748_v29, %v3716_v22  ;;  %5362 = vpow2.f32 %v4250_v16  ;;  %v3466_v31 = vmul.f32 %v4952_v28, %v6514_v42  ;;  %v6667_v27 = vadd.f32 %v6519_v57, %v3468_v56  ;;  %v3750_v61 = vld [vmem:[%s6594_s6 + $0x48] sm:$0xff] }
 0x21c   : > { %v5345_v59 = vpop.eup %5344  ;;  %v3627_v54 = vadd.f32 1.0, %v5343_v17  ;;  %3809 = vst [vmem:[%s6621_s9 + $0x20] sm:$0xff] %v3777_v48  ;;  %v3778_v36 = vadd.f32 %v3746_v40, %v3714_v0  ;;  %v4953_v24 = vadd.f32 %v4906_v47, %v4714_v33  ;;  %v4954_v11 = vadd.f32 %v3363_v41, %v2273_v15  ;;  %v4717_v20 = vpop.f32.mrb[24].mxu1 }
 0x21d   : > { %v5347_v8 = vpop.eup %5346  ;;  %v3625_v6 = vadd.f32 1.0, %v5345_v59  ;;  %3812 = vst [vmem:[%s6621_s9 + $0x38] sm:$0xff] %v3780_v25  ;;  %v6671_v7 = vadd.f32 %v6519_v57, %v3466_v31  ;;  %v4909_v4 = vpop.f32.mrb[24].mxu0  ;;  %v4253_v23 = vmul.f32 -1.442695, %v6667_v27 }
 0x21e   : > { %v5349_v10 = vpop.eup %5348  ;;  %5364 = vrcp.f32 %v3627_v54  ;;  %v3628_v39 = vadd.f32 1.0, %v5347_v8  ;;  %3810 = vst [vmem:[%s6621_s9 + $0x28] sm:$0xff] %v3778_v36  ;;  %v3469_v51 = vmul.f32 %v4953_v24, %v6514_v42  ;;  %v4955_v5 = vadd.f32 %v4909_v4, %v4717_v20  ;;  %v2286_v32 = vpop.f32.mrb[25].mxu1 }
 0x21f   : > { %5366 = vrcp.f32 %v3625_v6  ;;  %v3626_v14 = vadd.f32 1.0, %v5349_v10  ;;  %v5351_v1 = vpop.eup %5350  ;;  %v3376_v52 = vpop.f32.mrb[25].mxu0  ;;  %v4251_v26 = vmul.f32 -1.442695, %v6671_v7  ;;  %v3467_v46 = vmul.f32 %v4954_v11, %v6514_v42  ;;  %v3755_v10 = vld [vmem:[%s6594_s6 + $0x70] sm:$0xff] }
 0x220   : > { %5368 = vrcp.f32 %v3628_v39  ;;  %v5353_v12 = vpop.eup %5352  ;;  %v3719_v2 = vmul.f32 %v5351_v1, %v6565_v50  ;;  %v4718_v19 = vpop.f32.mrb[26].mxu1  ;;  %v6683_v13 = vadd.f32 %v6519_v57, %v3469_v51  ;;  %v3472_v50 = vmul.f32 %v4955_v5, %v6514_v42 }
 0x221   : > { %5370 = vrcp.f32 %v3626_v14  ;;  %v4910_v35 = vpop.f32.mrb[26].mxu0  ;;  %v5355_v21 = vpop.eup %5354  ;;  %v3717_v58 = vmul.f32 %v5353_v12, %v6569_v9  ;;  %v6689_v22 = vadd.f32 %v6519_v57, %v3467_v46  ;;  %v4956_v54 = vadd.f32 %v3376_v52, %v2286_v32 }
 0x222   : > { %5372 = vpow2.f32 %v4248_v49  ;;  %v2289_v29 = vpop.f32.mrb[27].mxu1  ;;  %v3379_v28 = vpop.f32.mrb[27].mxu0  ;;  %v3783_v47 = vadd.f32 %v3751_v30, %v3719_v2  ;;  %v3720_v45 = vmul.f32 %v5355_v21, %v6574_v62  ;;  %v4254_v41 = vmul.f32 -1.442695, %v6683_v13  ;;  %v3753_v30 = vld [vmem:[%s6594_s6 + $0x60] sm:$0xff]  ;;  %v3756_v2 = vld [vmem:[%s6594_s6 + $0x78] sm:$0xff] }
 0x223   : > { %v5357_v33 = vpop.eup %5356  ;;  %5374 = vpow2.f32 %v4253_v23  ;;  %v3781_v40 = vadd.f32 %v3749_v37, %v3717_v58  ;;  %v4252_v16 = vmul.f32 -1.442695, %v6689_v22  ;;  %v6696_v62 = vadd.f32 %v6519_v57, %v3472_v50  ;;  %v3754_v58 = vld [vmem:[%s6594_s6 + $0x68] sm:$0xff] }
 0x224   : > { %v5359_v9 = vpop.eup %5358  ;;  %v3718_v15 = vmul.f32 %v5357_v33, %v6578_v63  ;;  %5376 = vpow2.f32 %v4251_v26  ;;  %3815 = vst [vmem:[%s6621_s9 + $0x50] sm:$0xff] %v3783_v47  ;;  %v3784_v48 = vadd.f32 %v3752_v18, %v3720_v45  ;;  %v4957_v56 = vadd.f32 %v4910_v35, %v4718_v19  ;;  %v4721_v36 = vpop.f32.mrb[28].mxu1 }
 0x225   : > { %v5361_v17 = vpop.eup %5360  ;;  %v3631_v0 = vadd.f32 1.0, %v5359_v9  ;;  %3813 = vst [vmem:[%s6621_s9 + $0x40] sm:$0xff] %v3781_v40  ;;  %5378 = vpow2.f32 %v4254_v41  ;;  %v4257_v49 = vmul.f32 -1.442695, %v6696_v62  ;;  %v4958_v8 = vadd.f32 %v3379_v28, %v2289_v29  ;;  %v4913_v6 = vpop.f32.mrb[28].mxu0 }
 0x226   : > { %v3782_v59 = vadd.f32 %v3750_v61, %v3718_v15  ;;  %v3629_v25 = vadd.f32 1.0, %v5361_v17  ;;  %v5363_v63 = vpop.eup %5362  ;;  %3816 = vst [vmem:[%s6621_s9 + $0x58] sm:$0xff] %v3784_v48  ;;  %v3470_v24 = vmul.f32 %v4956_v54, %v6514_v42  ;;  %v4959_v14 = vadd.f32 %v4913_v6, %v4721_v36  ;;  %v2302_v11 = vpop.f32.mrb[29].mxu1  ;;  %v3759_v54 = vld [vmem:[%s6594_s6 + $0x90] sm:$0xff]  ;;  %v3757_v6 = vld [vmem:[%s6594_s6 + $0x80] sm:$0xff] }
 0x227   : > { %5380 = vrcp.f32 %v3631_v0  ;;  %v3632_v39 = vadd.f32 1.0, %v5363_v63  ;;  %v3392_v20 = vpop.f32.mrb[29].mxu0  ;;  %v3473_v23 = vmul.f32 %v4957_v56, %v6514_v42  ;;  %v3471_v51 = vmul.f32 %v4958_v8, %v6514_v42  ;;  %v4722_v5 = vpop.f32.mrb[30].mxu1 }
 0x228   : > { %v5365_v31 = vpop.eup %5364  ;;  %3814 = vst [vmem:[%s6621_s9 + $0x48] sm:$0xff] %v3782_v59  ;;  %5382 = vrcp.f32 %v3629_v25  ;;  %v4914_v32 = vpop.f32.mrb[30].mxu0  ;;  %v6711_v37 = vadd.f32 %v6519_v57, %v3470_v24  ;;  %v4960_v17 = vadd.f32 %v3392_v20, %v2302_v11 }
 0x229   : > { %v5367_v4 = vpop.eup %5366  ;;  %v3723_v1 = vmul.f32 %v5365_v31, %v6597_v38  ;;  %5384 = vpow2.f32 %v4252_v16  ;;  %v3476_v38 = vmul.f32 %v4959_v14, %v6514_v42  ;;  %v2305_v26 = vpop.f32.mrb[31].mxu1  ;;  %v6717_v18 = vadd.f32 %v6519_v57, %v3473_v23 }
 0x22a   : > { %v5369_v52 = vpop.eup %5368  ;;  %v3721_v12 = vmul.f32 %v5367_v4, %v6601_v3  ;;  %5386 = vrcp.f32 %v3632_v39  ;;  %v3395_v46 = vpop.f32.mrb[31].mxu0  ;;  %v4255_v28 = vmul.f32 -1.442695, %v6711_v37  ;;  %v6722_v33 = vadd.f32 %v6519_v57, %v3471_v51  ;;  %v3760_v4 = vld [vmem:[%s6594_s6 + $0x98] sm:$0xff] }
 0x22b   : > { %v5371_v19 = vpop.eup %5370  ;;  %v3787_v35 = vadd.f32 %v3755_v10, %v3723_v1  ;;  %v3724_v21 = vmul.f32 %v5369_v52, %v6606_v34  ;;  %5388 = vpow2.f32 %v4257_v49  ;;  %v6726_v61 = vadd.f32 %v6519_v57, %v3476_v38  ;;  %v3758_v38 = vld [vmem:[%s6594_s6 + $0x88] sm:$0xff] }
 0x22c   : > { %v5373_v3 = vpop.eup %5372  ;;  %v3785_v50 = vadd.f32 %v3753_v30, %v3721_v12  ;;  %v3722_v29 = vmul.f32 %v5371_v19, %v6611_v44  ;;  %5390 = vpow2.f32 %v4255_v28  ;;  %v4258_v44 = vmul.f32 -1.442695, %v6717_v18 }
 0x22d   : > { %v5375_v47 = vpop.eup %5374  ;;  %3819 = vst [vmem:[%s6621_s9 + $0x70] sm:$0xff] %v3787_v35  ;;  %v3788_v45 = vadd.f32 %v3756_v2, %v3724_v21  ;;  %v3630_v34 = vadd.f32 1.0, %v5373_v3  ;;  %v4256_v0 = vmul.f32 -1.442695, %v6722_v33  ;;  %v4961_v16 = vadd.f32 %v4914_v32, %v4722_v5 }
 0x22e   : > { %v5377_v9 = vpop.eup %5376  ;;  %3817 = vst [vmem:[%s6621_s9 + $0x60] sm:$0xff] %v3785_v50  ;;  %v3786_v40 = vadd.f32 %v3754_v58, %v3722_v29  ;;  %v3635_v15 = vadd.f32 1.0, %v5375_v47  ;;  %v4962_v59 = vadd.f32 %v3395_v46, %v2305_v26  ;;  %v4261_v49 = vmul.f32 -1.442695, %v6726_v61  ;;  %v3761_v58 = vld [vmem:[%s6594_s6 + $0xa0] sm:$0xff] }
 0x22f   : > { %3820 = vst [vmem:[%s6621_s9 + $0x78] sm:$0xff] %v3788_v45  ;;  %5392 = vrcp.f32 %v3630_v34  ;;  %v3633_v41 = vadd.f32 1.0, %v5377_v9  ;;  %v5379_v48 = vpop.eup %5378  ;;  %v3474_v56 = vmul.f32 %v4960_v17, %v6514_v42  ;;  %v3477_v31 = vmul.f32 %v4961_v16, %v6514_v42  ;;  %v3764_v45 = vld [vmem:[%s6594_s6 + $0xb8] sm:$0xff] }
 0x230   : > { %3818 = vst [vmem:[%s6621_s9 + $0x68] sm:$0xff] %v3786_v40  ;;  %5394 = vrcp.f32 %v3635_v15  ;;  %v3636_v63 = vadd.f32 1.0, %v5379_v48  ;;  %v3475_v10 = vmul.f32 %v4962_v59, %v6514_v42  ;;  %v3767_v59 = vld [vmem:[%s6594_s6 + $0xd0] sm:$0xff] }
 0x231   : > { %v5381_v25 = vpop.eup %5380  ;;  %5396 = vrcp.f32 %v3633_v41  ;;  %v6742_v14 = vadd.f32 %v6519_v57, %v3474_v56 }
 0x232   : > { %v5383_v8 = vpop.eup %5382  ;;  %v3727_v36 = vmul.f32 %v5381_v25, %v6633_v43  ;;  %5398 = vpow2.f32 %v4258_v44  ;;  %v6746_v43 = vadd.f32 %v6519_v57, %v3477_v31  ;;  %v6753_v32 = vadd.f32 %v6519_v57, %v3475_v10  ;;  %v3763_v57 = vld [vmem:[%s6594_s6 + $0xb0] sm:$0xff] }
 0x233   : > { %v5385_v39 = vpop.eup %5384  ;;  %v3725_v24 = vmul.f32 %v5383_v8, %v6637_v60  ;;  %5400 = vrcp.f32 %v3636_v63  ;;  %v4259_v60 = vmul.f32 -1.442695, %v6742_v14 }
 0x234   : > { %v5387_v11 = vpop.eup %5386  ;;  %v3791_v20 = vadd.f32 %v3759_v54, %v3727_v36  ;;  %v3634_v1 = vadd.f32 1.0, %v5385_v39  ;;  %5402 = vpow2.f32 %v4256_v0  ;;  %v4262_v5 = vmul.f32 -1.442695, %v6746_v43  ;;  %v3765_v36 = vld [vmem:[%s6594_s6 + $0xc0] sm:$0xff]  ;;  %v3768_v39 = vld [vmem:[%s6594_s6 + $0xd8] sm:$0xff] }
 0x235   : > { %v5389_v30 = vpop.eup %5388  ;;  %v3789_v23 = vadd.f32 %v3757_v6, %v3725_v24  ;;  %v3728_v42 = vmul.f32 %v5387_v11, %v6651_v55  ;;  %5404 = vpow2.f32 %v4261_v49  ;;  %v4260_v55 = vmul.f32 -1.442695, %v6753_v32 }
 0x236   : > { %3823 = vst [vmem:[%s6621_s9 + $0x90] sm:$0xff] %v3791_v20  ;;  %5406 = vrcp.f32 %v3634_v1  ;;  %v3639_v51 = vadd.f32 1.0, %v5389_v30  ;;  %v5391_v12 = vpop.eup %5390  ;;  %v3766_v20 = vld [vmem:[%s6594_s6 + $0xc8] sm:$0xff]  ;;  %v3771_v30 = vld [vmem:[%s6594_s6 + $0xf0] sm:$0xff] }
 0x237   : > { %3821 = vst [vmem:[%s6621_s9 + $0x80] sm:$0xff] %v3789_v23  ;;  %v3792_v52 = vadd.f32 %v3760_v4, %v3728_v42  ;;  %5408 = vpow2.f32 %v4259_v60  ;;  %v3637_v26 = vadd.f32 1.0, %v5391_v12  ;;  %v3772_v12 = vld [vmem:[%s6594_s6 + $0xf8] sm:$0xff] }
 0x238   : > { %5410 = vrcp.f32 %v3639_v51  ;;  %v3769_v51 = vld [vmem:[%s6594_s6 + $0xe0] sm:$0xff] }
 0x239   : > { %v5393_v2 = vpop.eup %5392  ;;  %3824 = vst [vmem:[%s6621_s9 + $0x98] sm:$0xff] %v3792_v52  ;;  %5412 = vpow2.f32 %v4262_v5 }
 0x23a   : > { %v5395_v46 = vpop.eup %5394  ;;  %v3726_v19 = vmul.f32 %v5393_v2, %v6656_v53  ;;  %5414 = vpow2.f32 %v4260_v55 }
 0x23b   : > { %v5397_v35 = vpop.eup %5396  ;;  %v3731_v21 = vmul.f32 %v5395_v46, %v6667_v27  ;;  %5416 = vrcp.f32 %v3637_v26 }
 0x23c   : > { %v5399_v3 = vpop.eup %5398  ;;  %v3790_v50 = vadd.f32 %v3758_v38, %v3726_v19  ;;  %v3729_v29 = vmul.f32 %v5397_v35, %v6671_v7  ;;  %v3762_v7 = vld [vmem:[%s6594_s6 + $0xa8] sm:$0xff] }
 0x23d   : > { %v5401_v28 = vpop.eup %5400  ;;  %v3795_v47 = vadd.f32 %v3763_v57, %v3731_v21  ;;  %v3640_v34 = vadd.f32 1.0, %v5399_v3  ;;  %v3770_v38 = vld [vmem:[%s6594_s6 + $0xe8] sm:$0xff] }
 0x23e   : > { %v5403_v9 = vpop.eup %5402  ;;  %3822 = vst [vmem:[%s6621_s9 + $0x88] sm:$0xff] %v3790_v50  ;;  %v3793_v53 = vadd.f32 %v3761_v58, %v3729_v29  ;;  %v3732_v40 = vmul.f32 %v5401_v28, %v6683_v13 }
 0x23f   : > { %v5405_v27 = vpop.eup %5404  ;;  %3827 = vst [vmem:[%s6621_s9 + $0xb0] sm:$0xff] %v3795_v47  ;;  %5418 = vrcp.f32 %v3640_v34  ;;  %v3638_v15 = vadd.f32 1.0, %v5403_v9 }
 0x240   : > { %v5407_v44 = vpop.eup %5406  ;;  %3825 = vst [vmem:[%s6621_s9 + $0xa0] sm:$0xff] %v3793_v53  ;;  %v3796_v41 = vadd.f32 %v3764_v45, %v3732_v40  ;;  %v3643_v17 = vadd.f32 1.0, %v5405_v27 }
 0x241   : > { %v5409_v48 = vpop.eup %5408  ;;  %v3730_v0 = vmul.f32 %v5407_v44, %v6689_v22  ;;  %5420 = vrcp.f32 %v3638_v15 }
 0x242   : > { %v5411_v16 = vpop.eup %5410  ;;  %3828 = vst [vmem:[%s6621_s9 + $0xb8] sm:$0xff] %v3796_v41  ;;  %5422 = vrcp.f32 %v3643_v17  ;;  %v3641_v13 = vadd.f32 1.0, %v5409_v48 }
 0x243   : > { %v5413_v25 = vpop.eup %5412  ;;  %v3794_v54 = vadd.f32 %v3762_v7, %v3730_v0  ;;  %v3735_v63 = vmul.f32 %v5411_v16, %v6696_v62 }
 0x244   : > { %v5415_v49 = vpop.eup %5414  ;;  %5424 = vrcp.f32 %v3641_v13  ;;  %v3644_v56 = vadd.f32 1.0, %v5413_v25 }
 0x245   : > { %v5417_v8 = vpop.eup %5416  ;;  %3826 = vst [vmem:[%s6621_s9 + $0xa8] sm:$0xff] %v3794_v54  ;;  %v3799_v22 = vadd.f32 %v3767_v59, %v3735_v63  ;;  %v3642_v6 = vadd.f32 1.0, %v5415_v49 }
 0x246   : > { %v3733_v31 = vmul.f32 %v5417_v8, %v6711_v37  ;;  %5426 = vrcp.f32 %v3644_v56 }
 0x247   : > { %3831 = vst [vmem:[%s6621_s9 + $0xd0] sm:$0xff] %v3799_v22  ;;  %5428 = vrcp.f32 %v3642_v6 }
 0x248   : > { %v3797_v10 = vadd.f32 %v3765_v36, %v3733_v31 }
 0x249   : > { %v5419_v62 = vpop.eup %5418 }
 0x24a   : > { %3829 = vst [vmem:[%s6621_s9 + $0xc0] sm:$0xff] %v3797_v10  ;;  %v3736_v24 = vmul.f32 %v5419_v62, %v6717_v18 }
 0x24b   : > { %v5421_v11 = vpop.eup %5420 }
 0x24c   : > { %v5423_v4 = vpop.eup %5422  ;;  %v3800_v1 = vadd.f32 %v3768_v39, %v3736_v24  ;;  %v3734_v37 = vmul.f32 %v5421_v11, %v6722_v33 }
 0x24d   : > { %v3739_v23 = vmul.f32 %v5423_v4, %v6726_v61 }
 0x24e   : > { %v5425_v42 = vpop.eup %5424  ;;  %3832 = vst [vmem:[%s6621_s9 + $0xd8] sm:$0xff] %v3800_v1  ;;  %v3798_v60 = vadd.f32 %v3766_v20, %v3734_v37 }
 0x24f   : > { %v3803_v18 = vadd.f32 %v3771_v30, %v3739_v23  ;;  %v3737_v5 = vmul.f32 %v5425_v42, %v6742_v14 }
 0x250   : > { %v5427_v52 = vpop.eup %5426  ;;  %3830 = vst [vmem:[%s6621_s9 + $0xc8] sm:$0xff] %v3798_v60 }
 0x251   : > { %v5429_v55 = vpop.eup %5428  ;;  %3835 = vst [vmem:[%s6621_s9 + $0xf0] sm:$0xff] %v3803_v18  ;;  %v3801_v33 = vadd.f32 %v3769_v51, %v3737_v5  ;;  %v3740_v2 = vmul.f32 %v5427_v52, %v6746_v43 }
 0x252   : > { %v3738_v61 = vmul.f32 %v5429_v55, %v6753_v32 }
 0x253   : > { %3833 = vst [vmem:[%s6621_s9 + $0xe0] sm:$0xff] %v3801_v33  ;;  %v3804_v26 = vadd.f32 %v3772_v12, %v3740_v2 }
 0x254   : > { %v3802_v46 = vadd.f32 %v3770_v38, %v3738_v61 }
 0x255   : > { %3836 = vst [vmem:[%s6621_s9 + $0xf8] sm:$0xff] %v3804_v26 }
 0x256   : > { %3834 = vst [vmem:[%s6621_s9 + $0xe8] sm:$0xff] %v3802_v46 }
 0x257 PF: > { %s15_s20 = sadd.s32 1, %s5469_s20   ;;  %s6855_s18 = smov %s5465_s19 }
 0x258   : > { %p12_p5 = scmp.ge.s32.totalorder %s15_s20, 4   ;;  %s6856_s19 = smov %s6858_s21 }
 0x25a   :  { %14 = sbr.rel (!%p12_p5) target bundleno = 2 (0x2), region = 82 }

</bundles_post_ra>
